<compile_context>
chip_gen: v5e
topology: v5e:2x2
jax: 0.10.0
libtpu: 0.0.40
codegen_flags: <defaults>
</compile_context>

<pallas_src>
import functools

import jax
import jax.numpy as jnp
from jax import lax
from jax.experimental import pallas as pl
from jax.experimental.pallas import tpu as pltpu

LANE = 128     # lane width: last dim of every kernel block is a multiple of this
SUBLANE = 8    # f32 sublane tile: batch dim padded to a multiple of this


def _round_up(x, m):
    return (x + m - 1) // m * m


# -----------------------------------------------------------------------------
# Kernel 1: hoisted input projection  P = x @ W_ih^T + (b_ih + b_hh)
# -----------------------------------------------------------------------------
def input_proj_kernel(x_ref, wih_ref, b_ref, p_ref):
    p_ref[...] = (
        jnp.dot(x_ref[...], wih_ref[...], preferred_element_type=jnp.float32)
        + b_ref[...]
    )


# -----------------------------------------------------------------------------
# Kernel 2: LSTM recurrence.  One grid step == TS timesteps (unrolled inner
# loop); per timestep only h_prev @ W_hh + pointwise gate math.  Gates are laid
# out [i | f | g | o] with every gate padded to H_pad (multiple of 128) so the
# slices below are lane-aligned and the output store is lane-dense.
# -----------------------------------------------------------------------------
def lstm_recurrent_kernel(p_ref, whh_ref, h_out_ref, h_sc, c_sc):
    ts = p_ref.shape[0]
    h_pad = h_sc.shape[-1]

    @pl.when(pl.program_id(0) == 0)
    def _():
        h_sc[...] = jnp.zeros_like(h_sc)
        c_sc[...] = jnp.zeros_like(c_sc)

    whh = whh_ref[...]                              # (H_pad, 4*H_pad), hoisted load

    def step(t, carry):
        h_prev, c_prev = carry
        gates = (
            jnp.dot(h_prev, whh, preferred_element_type=jnp.float32)
            + p_ref[t]                              # (B_pad, 4*H_pad) precomputed
        )
        i_g = jax.nn.sigmoid(gates[:, 0 * h_pad:1 * h_pad])
        f_g = jax.nn.sigmoid(gates[:, 1 * h_pad:2 * h_pad])
        g_g = jnp.tanh(gates[:, 2 * h_pad:3 * h_pad])
        o_g = jax.nn.sigmoid(gates[:, 3 * h_pad:4 * h_pad])
        c_new = f_g * c_prev + i_g * g_g
        h_new = o_g * jnp.tanh(c_new)
        h_out_ref[t] = h_new
        return h_new, c_new

    h_fin, c_fin = lax.fori_loop(0, ts, step, (h_sc[...], c_sc[...]), unroll=True)
    h_sc[...] = h_fin                               # carry state to next chunk
    c_sc[...] = c_fin


# -----------------------------------------------------------------------------
# One LSTM layer over the full (padded) sequence.
# -----------------------------------------------------------------------------
def lstm_layer(x_pad, w_ih_t_pad, w_hh_t_pad, b_pad, *, ts):
    """x_pad: (T_pad, B_pad, IN_pad) f32  ->  (T_pad, B_pad, H_pad) f32."""
    t_pad, b_p, in_pad = x_pad.shape
    h_pad, g4 = w_hh_t_pad.shape
    n_chunks = t_pad // ts
    rows = ts * b_p

    # ---- hoisted input projection (one MXU matmul per TS-chunk of rows) ----
    x2 = x_pad.reshape(t_pad * b_p, in_pad)
    p2 = pl.pallas_call(
        input_proj_kernel,
        out_shape=jax.ShapeDtypeStruct((t_pad * b_p, g4), jnp.float32),
        grid_spec=pltpu.PrefetchScalarGridSpec(
            num_scalar_prefetch=0,
            grid=(n_chunks,),
            in_specs=[
                pl.BlockSpec((rows, in_pad), lambda i: (i, 0)),
                pl.BlockSpec((in_pad, g4), lambda i: (0, 0)),
                pl.BlockSpec((1, g4), lambda i: (0, 0)),
            ],
            out_specs=pl.BlockSpec((rows, g4), lambda i: (i, 0)),
        ),
        compiler_params=pltpu.CompilerParams(
            dimension_semantics=("parallel",),
        ),
    )(x2, w_ih_t_pad, b_pad)
    p = p2.reshape(t_pad, b_p, g4)

    # ---- serial recurrence, TS timesteps per grid step ----
    h_seq = pl.pallas_call(
        lstm_recurrent_kernel,
        out_shape=jax.ShapeDtypeStruct((t_pad, b_p, h_pad), jnp.float32),
        grid_spec=pltpu.PrefetchScalarGridSpec(
            num_scalar_prefetch=0,
            grid=(n_chunks,),
            in_specs=[
                pl.BlockSpec((ts, b_p, g4), lambda c: (c, 0, 0)),
                # constant-index weight block; for production nhid use bf16 +
                # pipeline_mode=pl.Buffered(1) + explicit vmem_limit_bytes.
                pl.BlockSpec((h_pad, g4), lambda c: (0, 0)),
            ],
            out_specs=pl.BlockSpec((ts, b_p, h_pad), lambda c: (c, 0, 0)),
            scratch_shapes=[
                pltpu.VMEM((b_p, h_pad), jnp.float32),   # carried h state
                pltpu.VMEM((b_p, h_pad), jnp.float32),   # carried c state
            ],
        ),
        compiler_params=pltpu.CompilerParams(
            dimension_semantics=("arbitrary",),          # sequential recurrence
        ),
    )(p, w_hh_t_pad)
    return h_seq


# -----------------------------------------------------------------------------
# Parameter preparation: PyTorch layout -> padded, transposed kernel layout.
# -----------------------------------------------------------------------------
def _pad_gate_cols(w, h, h_pad):
    """w: (..., 4*h) with PyTorch gate order [i|f|g|o]; pad each gate to h_pad."""
    parts = [w[..., k * h:(k + 1) * h] for k in range(4)]
    pad = [(0, 0)] * (w.ndim - 1) + [(0, h_pad - h)]
    parts = [jnp.pad(p, pad) for p in parts]
    return jnp.concatenate(parts, axis=-1)


def _prep_layer(lp, in_pad, h_pad):
    w_ih, w_hh = lp["w_ih"], lp["w_hh"]              # (4H, IN), (4H, H)
    h = w_hh.shape[1]
    in_sz = w_ih.shape[1]
    w_ih_t = _pad_gate_cols(w_ih.T, h, h_pad)        # (IN, 4*H_pad)
    w_hh_t = _pad_gate_cols(w_hh.T, h, h_pad)        # (H,  4*H_pad)
    w_ih_t = jnp.pad(w_ih_t, ((0, in_pad - in_sz), (0, 0)))
    w_hh_t = jnp.pad(w_hh_t, ((0, h_pad - h), (0, 0)))
    b = _pad_gate_cols((lp["b_ih"] + lp["b_hh"])[None, :], h, h_pad)   # (1, 4*H_pad)
    return w_ih_t, w_hh_t, b


def init_params(key, n_tok, emb_sz, nhid, nlayers, initrange=0.1):
    keys = jax.random.split(key, 1 + 4 * nlayers)
    # encoder.weight.data.uniform_(-initrange, initrange) — overwrites the
    # padding row too, exactly like the module.
    emb_w = jax.random.uniform(keys[0], (n_tok, emb_sz),
                               minval=-initrange, maxval=initrange,
                               dtype=jnp.float32)
    lstm = []
    for l in range(nlayers):
        in_sz = emb_sz if l == 0 else nhid
        hid = nhid if l != nlayers - 1 else emb_sz
        k = 1.0 / float(hid) ** 0.5
        kw = keys[1 + 4 * l: 1 + 4 * (l + 1)]
        lstm.append({
            "w_ih": jax.random.uniform(kw[0], (4 * hid, in_sz), minval=-k, maxval=k,
                                       dtype=jnp.float32),
            "w_hh": jax.random.uniform(kw[1], (4 * hid, hid), minval=-k, maxval=k,
                                       dtype=jnp.float32),
            "b_ih": jax.random.uniform(kw[2], (4 * hid,), minval=-k, maxval=k,
                                       dtype=jnp.float32),
            "b_hh": jax.random.uniform(kw[3], (4 * hid,), minval=-k, maxval=k,
                                       dtype=jnp.float32),
        })
    return {"emb": emb_w, "lstm": lstm}


# -----------------------------------------------------------------------------
# Forward (eval mode).
# -----------------------------------------------------------------------------
@functools.partial(jax.jit, static_argnames=("ts",))
def rnn_encoder_forward(x_tokens, params, *, ts=32):
    """Eval-mode RNN_Encoder.forward.

    x_tokens: (sl, bs) int32 token ids (seq-first).
    Returns (raw_outputs, outputs): lists with one (sl, bs, H_l) f32 array per
    layer.  All dropouts are identity in eval mode, so raw_outputs == outputs.
    """
    sl, bs = x_tokens.shape

    # embedding lookup — gather kept as JAX glue
    emb = jnp.take(params["emb"], x_tokens, axis=0).astype(jnp.float32)

    # pad to hardware tile sizes: time -> multiple of the per-step chunk,
    # batch -> f32 sublane (8), feature -> lane width (128)
    ts = min(ts, sl)
    t_pad = _round_up(sl, ts)
    b_pad = _round_up(bs, SUBLANE)
    e_pad = _round_up(emb.shape[-1], LANE)
    act = jnp.pad(emb, ((0, t_pad - sl), (0, b_pad - bs), (0, e_pad - emb.shape[-1])))

    raw_outputs = []
    for lp in params["lstm"]:
        h = lp["w_hh"].shape[1]
        h_pad = _round_up(h, LANE)
        in_pad = act.shape[-1]
        w_ih_t, w_hh_t, b = _prep_layer(lp, in_pad, h_pad)
        act = lstm_layer(act, w_ih_t, w_hh_t, b, ts=ts)   # (t_pad, b_pad, h_pad)
        raw_outputs.append(act[:sl, :bs, :h])             # unpad for the caller

    # TODO(synk): carrying self.hidden across forward calls is not threaded
    # through; state is zero-initialized here, matching the call after reset().
    outputs = list(raw_outputs)   # dropouths are identity in eval mode
    return raw_outputs, outputs


# -----------------------------------------------------------------------------
# Pure-JAX reference (lax.scan LSTM) for a numerical check.
# -----------------------------------------------------------------------------
def _lstm_ref(x_seq, lp):
    hdim = lp["w_hh"].shape[1]
    b = lp["b_ih"] + lp["b_hh"]

    def step(carry, x_t):
        h, c = carry
        gates = x_t @ lp["w_ih"].T + h @ lp["w_hh"].T + b
        i_g = jax.nn.sigmoid(gates[:, 0 * hdim:1 * hdim])
        f_g = jax.nn.sigmoid(gates[:, 1 * hdim:2 * hdim])
        g_g = jnp.tanh(gates[:, 2 * hdim:3 * hdim])
        o_g = jax.nn.sigmoid(gates[:, 3 * hdim:4 * hdim])
        c = f_g * c + i_g * g_g
        h = o_g * jnp.tanh(c)
        return (h, c), h

    bsz = x_seq.shape[1]
    init = (jnp.zeros((bsz, hdim), jnp.float32), jnp.zeros((bsz, hdim), jnp.float32))
    _, hs = lax.scan(step, init, x_seq)
    return hs


@jax.jit
def rnn_encoder_forward_ref(x_tokens, params):
    raw = jnp.take(params["emb"], x_tokens, axis=0).astype(jnp.float32)
    outs = []
    for lp in params["lstm"]:
        raw = _lstm_ref(raw, lp)
        outs.append(raw)
    return outs, outs


if __name__ == "__main__":
    # Small shapes consistent with the module.
    n_tok, emb_sz, nhid, nlayers = 50, 32, 48, 2
    pad_token = 0          # its embedding row is re-randomized by initrange, as in the module
    sl, bs = 8, 2          # (seq_len, batch) — seq-first like PyTorch

    key = jax.random.PRNGKey(0)
    k_par, k_tok = jax.random.split(key)
    params = init_params(k_par, n_tok, emb_sz, nhid, nlayers)
    x = jax.random.randint(k_tok, (sl, bs), 0, n_tok, dtype=jnp.int32)

    raw_outputs, outputs = rnn_encoder_forward(x, params)
    jax.block_until_ready(raw_outputs)
    jax.block_until_ready(outputs)

    # shape checks
    assert raw_outputs[0].shape == (sl, bs, nhid)
    assert raw_outputs[-1].shape == (sl, bs, emb_sz)
    assert all(bool(jnp.all(a == b)) for a, b in zip(raw_outputs, outputs))

    # numerical check against the pure-JAX reference
    ref_raw, _ = rnn_encoder_forward_ref(x, params)
    for got, want in zip(raw_outputs, ref_raw):
        err = float(jnp.max(jnp.abs(got - want)))
        assert err < 2e-3, f"kernel/reference mismatch: max abs err {err}"

    print("KERNEL_OK")
</pallas_src>

<mosaic_0001>
module attributes {stable_mosaic.version = 11 : i64} {
  func.func @input_proj_kernel(%arg0: i32, %arg1: memref<64x128xf32, #tpu.memory_space<vmem>>, %arg2: memref<128x512xf32, #tpu.memory_space<vmem>>, %arg3: memref<1x512xf32, #tpu.memory_space<vmem>>, %arg4: memref<64x512xf32, #tpu.memory_space<vmem>>) attributes {dimension_semantics = [#tpu.dimension_semantics<parallel>], iteration_bounds = array<i64: 1>, scalar_prefetch = 0 : i64, scratch_operands = 0 : i64, tpu.core_type = #tpu.core_type<tc>, window_params = [{transform_indices = @transform_0, window_bounds = array<i64: 64, 128>}, {pipeline_mode = #tpu.pipeline_mode<synchronous>, transform_indices = @transform_1, window_bounds = array<i64: 128, 512>}, {pipeline_mode = #tpu.pipeline_mode<synchronous>, transform_indices = @transform_2, window_bounds = array<i64: 1, 512>}, {transform_indices = @transform_3, window_bounds = array<i64: 64, 512>}]} {
    %c0 = arith.constant 0 : index
    %c0_0 = arith.constant 0 : index
    %0 = vector.load %arg1[%c0, %c0_0] : memref<64x128xf32, #tpu.memory_space<vmem>>, vector<64x128xf32>
    %c0_1 = arith.constant 0 : index
    %c0_2 = arith.constant 0 : index
    %1 = vector.load %arg2[%c0_1, %c0_2] : memref<128x512xf32, #tpu.memory_space<vmem>>, vector<128x512xf32>
    %cst = arith.constant dense<0.000000e+00> : vector<64x512xf32>
    %2 = tpu.matmul %0, %1, %cst {dimension_numbers = #tpu.dot_dimension_numbers<[1], [0], [0], [1], [0, 0, 1, 1], [], []>} : vector<64x128xf32>, vector<128x512xf32>, vector<64x512xf32> -> vector<64x512xf32>
    %c0_3 = arith.constant 0 : index
    %c0_4 = arith.constant 0 : index
    %3 = vector.load %arg3[%c0_3, %c0_4] : memref<1x512xf32, #tpu.memory_space<vmem>>, vector<1x512xf32>
    %4 = vector.broadcast %3 : vector<1x512xf32> to vector<64x512xf32>
    %5 = arith.addf %2, %4 : vector<64x512xf32>
    %c0_5 = arith.constant 0 : index
    %c0_6 = arith.constant 0 : index
    %6 = vector.load %arg4[%c0_5, %c0_6] : memref<64x512xf32, #tpu.memory_space<vmem>>, vector<64x512xf32>
    tpu.vector_store %arg4[%c0_5, %c0_6], %5 {strides = array<i32>} : memref<64x512xf32, #tpu.memory_space<vmem>>, vector<64x512xf32>,
    return
  }
  func.func @transform_0(%arg0: i32) -> (i32, i32) {
    %c0_i32 = arith.constant 0 : i32
    %c0_i32_0 = arith.constant 0 : i32
    return %arg0, %c0_i32 : i32, i32
  }
  func.func @transform_1(%arg0: i32) -> (i32, i32) {
    %c0_i32 = arith.constant 0 : i32
    %c0_i32_0 = arith.constant 0 : i32
    %c0_i32_1 = arith.constant 0 : i32
    return %c0_i32, %c0_i32_0 : i32, i32
  }
  func.func @transform_2(%arg0: i32) -> (i32, i32) {
    %c0_i32 = arith.constant 0 : i32
    %c0_i32_0 = arith.constant 0 : i32
    %c0_i32_1 = arith.constant 0 : i32
    return %c0_i32, %c0_i32_0 : i32, i32
  }
  func.func @transform_3(%arg0: i32) -> (i32, i32) {
    %c0_i32 = arith.constant 0 : i32
    %c0_i32_0 = arith.constant 0 : i32
    return %arg0, %c0_i32 : i32, i32
  }
}

module attributes {stable_mosaic.version = 11 : i64} {
  func.func @lstm_recurrent_kernel(%arg0: i32, %arg1: memref<8x8x512xf32, #tpu.memory_space<vmem>>, %arg2: memref<128x512xf32, #tpu.memory_space<vmem>>, %arg3: memref<8x8x128xf32, #tpu.memory_space<vmem>>, %arg4: memref<8x128xf32, #tpu.memory_space<vmem>>, %arg5: memref<8x128xf32, #tpu.memory_space<vmem>>) attributes {dimension_semantics = [#tpu.dimension_semantics<arbitrary>], iteration_bounds = array<i64: 1>, scalar_prefetch = 0 : i64, scratch_operands = 2 : i64, tpu.core_type = #tpu.core_type<tc>, window_params = [{transform_indices = @transform_0, window_bounds = array<i64: 8, 8, 512>}, {pipeline_mode = #tpu.pipeline_mode<synchronous>, transform_indices = @transform_1, window_bounds = array<i64: 128, 512>}, {transform_indices = @transform_2, window_bounds = array<i64: 8, 8, 128>}]} {
    %c0_i32 = arith.constant 0 : i32
    %0 = arith.cmpi eq, %arg0, %c0_i32 : i32
    %1 = arith.extui %0 : i1 to i32
    %c0_i32_0 = arith.constant 0 : i32
    %2 = arith.cmpi ne, %1, %c0_i32_0 : i32
    scf.if %2 {
      %cst_74 = arith.constant 0.000000e+00 : f32
      %280 = vector.broadcast %cst_74 : f32 to vector<8x128xf32>
      %c0_75 = arith.constant 0 : index
      %c0_76 = arith.constant 0 : index
      %281 = vector.load %arg4[%c0_75, %c0_76] : memref<8x128xf32, #tpu.memory_space<vmem>>, vector<8x128xf32>
      tpu.vector_store %arg4[%c0_75, %c0_76], %280 {strides = array<i32>} : memref<8x128xf32, #tpu.memory_space<vmem>>, vector<8x128xf32>,
      %cst_77 = arith.constant 0.000000e+00 : f32
      %282 = vector.broadcast %cst_77 : f32 to vector<8x128xf32>
      %c0_78 = arith.constant 0 : index
      %c0_79 = arith.constant 0 : index
      %283 = vector.load %arg5[%c0_78, %c0_79] : memref<8x128xf32, #tpu.memory_space<vmem>>, vector<8x128xf32>
      tpu.vector_store %arg5[%c0_78, %c0_79], %282 {strides = array<i32>} : memref<8x128xf32, #tpu.memory_space<vmem>>, vector<8x128xf32>,
    } else {
    }
    %c0 = arith.constant 0 : index
    %c0_1 = arith.constant 0 : index
    %3 = vector.load %arg2[%c0, %c0_1] : memref<128x512xf32, #tpu.memory_space<vmem>>, vector<128x512xf32>
    %c0_2 = arith.constant 0 : index
    %c0_3 = arith.constant 0 : index
    %4 = vector.load %arg4[%c0_2, %c0_3] : memref<8x128xf32, #tpu.memory_space<vmem>>, vector<8x128xf32>
    %c0_4 = arith.constant 0 : index
    %c0_5 = arith.constant 0 : index
    %5 = vector.load %arg5[%c0_4, %c0_5] : memref<8x128xf32, #tpu.memory_space<vmem>>, vector<8x128xf32>
    %c0_i32_6 = arith.constant 0 : i32
    %cst = arith.constant dense<0.000000e+00> : vector<8x512xf32>
    %6 = tpu.matmul %4, %3, %cst {dimension_numbers = #tpu.dot_dimension_numbers<[1], [0], [0], [1], [0, 0, 1, 1], [], []>} : vector<8x128xf32>, vector<128x512xf32>, vector<8x512xf32> -> vector<8x512xf32>
    %7 = arith.index_cast %c0_i32_6 : i32 to index
    %c0_7 = arith.constant 0 : index
    %c0_8 = arith.constant 0 : index
    %8 = vector.load %arg1[%7, %c0_7, %c0_8] : memref<8x8x512xf32, #tpu.memory_space<vmem>>, vector<1x8x512xf32>
    %9 = vector.shape_cast %8 : vector<1x8x512xf32> to vector<8x512xf32>
    %10 = arith.addf %6, %9 : vector<8x512xf32>
    %11 = vector.extract_strided_slice %10 {offsets = [0, 0], sizes = [8, 128], strides = [1, 1]} : vector<8x512xf32> to vector<8x128xf32>
    %12 = arith.negf %11 : vector<8x128xf32>
    %13 = math.exp %12 : vector<8x128xf32>
    %cst_9 = arith.constant 1.000000e+00 : f32
    %14 = vector.broadcast %cst_9 : f32 to vector<8x128xf32>
    %15 = arith.addf %14, %13 : vector<8x128xf32>
    %16 = arith.divf %14, %15 : vector<8x128xf32>
    %17 = vector.extract_strided_slice %10 {offsets = [0, 128], sizes = [8, 128], strides = [1, 1]} : vector<8x512xf32> to vector<8x128xf32>
    %18 = arith.negf %17 : vector<8x128xf32>
    %19 = math.exp %18 : vector<8x128xf32>
    %cst_10 = arith.constant 1.000000e+00 : f32
    %20 = vector.broadcast %cst_10 : f32 to vector<8x128xf32>
    %21 = arith.addf %20, %19 : vector<8x128xf32>
    %22 = arith.divf %20, %21 : vector<8x128xf32>
    %23 = vector.extract_strided_slice %10 {offsets = [0, 256], sizes = [8, 128], strides = [1, 1]} : vector<8x512xf32> to vector<8x128xf32>
    %24 = math.tanh %23 : vector<8x128xf32>
    %25 = vector.extract_strided_slice %10 {offsets = [0, 384], sizes = [8, 128], strides = [1, 1]} : vector<8x512xf32> to vector<8x128xf32>
    %26 = arith.negf %25 : vector<8x128xf32>
    %27 = math.exp %26 : vector<8x128xf32>
    %cst_11 = arith.constant 1.000000e+00 : f32
    %28 = vector.broadcast %cst_11 : f32 to vector<8x128xf32>
    %29 = arith.addf %28, %27 : vector<8x128xf32>
    %30 = arith.divf %28, %29 : vector<8x128xf32>
    %31 = arith.mulf %22, %5 : vector<8x128xf32>
    %32 = arith.mulf %16, %24 : vector<8x128xf32>
    %33 = arith.addf %31, %32 : vector<8x128xf32>
    %34 = math.tanh %33 : vector<8x128xf32>
    %35 = arith.mulf %30, %34 : vector<8x128xf32>
    %36 = arith.index_cast %c0_i32_6 : i32 to index
    %c0_12 = arith.constant 0 : index
    %c0_13 = arith.constant 0 : index
    %37 = vector.load %arg3[%36, %c0_12, %c0_13] : memref<8x8x128xf32, #tpu.memory_space<vmem>>, vector<1x8x128xf32>
    %38 = vector.shape_cast %37 : vector<1x8x128xf32> to vector<8x128xf32>
    %39 = vector.shape_cast %35 : vector<8x128xf32> to vector<1x8x128xf32>
    tpu.vector_store %arg3[%36, %c0_12, %c0_13], %39 {strides = array<i32>} : memref<8x8x128xf32, #tpu.memory_space<vmem>>, vector<1x8x128xf32>,
    %c1_i32 = arith.constant 1 : i32
    %cst_14 = arith.constant dense<0.000000e+00> : vector<8x512xf32>
    %40 = tpu.matmul %35, %3, %cst_14 {dimension_numbers = #tpu.dot_dimension_numbers<[1], [0], [0], [1], [0, 0, 1, 1], [], []>} : vector<8x128xf32>, vector<128x512xf32>, vector<8x512xf32> -> vector<8x512xf32>
    %41 = arith.index_cast %c1_i32 : i32 to index
    %c0_15 = arith.constant 0 : index
    %c0_16 = arith.constant 0 : index
    %42 = vector.load %arg1[%41, %c0_15, %c0_16] : memref<8x8x512xf32, #tpu.memory_space<vmem>>, vector<1x8x512xf32>
    %43 = vector.shape_cast %42 : vector<1x8x512xf32> to vector<8x512xf32>
    %44 = arith.addf %40, %43 : vector<8x512xf32>
    %45 = vector.extract_strided_slice %44 {offsets = [0, 0], sizes = [8, 128], strides = [1, 1]} : vector<8x512xf32> to vector<8x128xf32>
    %46 = arith.negf %45 : vector<8x128xf32>
    %47 = math.exp %46 : vector<8x128xf32>
    %cst_17 = arith.constant 1.000000e+00 : f32
    %48 = vector.broadcast %cst_17 : f32 to vector<8x128xf32>
    %49 = arith.addf %48, %47 : vector<8x128xf32>
    %50 = arith.divf %48, %49 : vector<8x128xf32>
    %51 = vector.extract_strided_slice %44 {offsets = [0, 128], sizes = [8, 128], strides = [1, 1]} : vector<8x512xf32> to vector<8x128xf32>
    %52 = arith.negf %51 : vector<8x128xf32>
    %53 = math.exp %52 : vector<8x128xf32>
    %cst_18 = arith.constant 1.000000e+00 : f32
    %54 = vector.broadcast %cst_18 : f32 to vector<8x128xf32>
    %55 = arith.addf %54, %53 : vector<8x128xf32>
    %56 = arith.divf %54, %55 : vector<8x128xf32>
    %57 = vector.extract_strided_slice %44 {offsets = [0, 256], sizes = [8, 128], strides = [1, 1]} : vector<8x512xf32> to vector<8x128xf32>
    %58 = math.tanh %57 : vector<8x128xf32>
    %59 = vector.extract_strided_slice %44 {offsets = [0, 384], sizes = [8, 128], strides = [1, 1]} : vector<8x512xf32> to vector<8x128xf32>
    %60 = arith.negf %59 : vector<8x128xf32>
    %61 = math.exp %60 : vector<8x128xf32>
    %cst_19 = arith.constant 1.000000e+00 : f32
    %62 = vector.broadcast %cst_19 : f32 to vector<8x128xf32>
    %63 = arith.addf %62, %61 : vector<8x128xf32>
    %64 = arith.divf %62, %63 : vector<8x128xf32>
    %65 = arith.mulf %56, %33 : vector<8x128xf32>
    %66 = arith.mulf %50, %58 : vector<8x128xf32>
    %67 = arith.addf %65, %66 : vector<8x128xf32>
    %68 = math.tanh %67 : vector<8x128xf32>
    %69 = arith.mulf %64, %68 : vector<8x128xf32>
    %70 = arith.index_cast %c1_i32 : i32 to index
    %c0_20 = arith.constant 0 : index
    %c0_21 = arith.constant 0 : index
    %71 = vector.load %arg3[%70, %c0_20, %c0_21] : memref<8x8x128xf32, #tpu.memory_space<vmem>>, vector<1x8x128xf32>
    %72 = vector.shape_cast %71 : vector<1x8x128xf32> to vector<8x128xf32>
    %73 = vector.shape_cast %69 : vector<8x128xf32> to vector<1x8x128xf32>
    tpu.vector_store %arg3[%70, %c0_20, %c0_21], %73 {strides = array<i32>} : memref<8x8x128xf32, #tpu.memory_space<vmem>>, vector<1x8x128xf32>,
    %c2_i32 = arith.constant 2 : i32
    %cst_22 = arith.constant dense<0.000000e+00> : vector<8x512xf32>
    %74 = tpu.matmul %69, %3, %cst_22 {dimension_numbers = #tpu.dot_dimension_numbers<[1], [0], [0], [1], [0, 0, 1, 1], [], []>} : vector<8x128xf32>, vector<128x512xf32>, vector<8x512xf32> -> vector<8x512xf32>
    %75 = arith.index_cast %c2_i32 : i32 to index
    %c0_23 = arith.constant 0 : index
    %c0_24 = arith.constant 0 : index
    %76 = vector.load %arg1[%75, %c0_23, %c0_24] : memref<8x8x512xf32, #tpu.memory_space<vmem>>, vector<1x8x512xf32>
    %77 = vector.shape_cast %76 : vector<1x8x512xf32> to vector<8x512xf32>
    %78 = arith.addf %74, %77 : vector<8x512xf32>
    %79 = vector.extract_strided_slice %78 {offsets = [0, 0], sizes = [8, 128], strides = [1, 1]} : vector<8x512xf32> to vector<8x128xf32>
    %80 = arith.negf %79 : vector<8x128xf32>
    %81 = math.exp %80 : vector<8x128xf32>
    %cst_25 = arith.constant 1.000000e+00 : f32
    %82 = vector.broadcast %cst_25 : f32 to vector<8x128xf32>
    %83 = arith.addf %82, %81 : vector<8x128xf32>
    %84 = arith.divf %82, %83 : vector<8x128xf32>
    %85 = vector.extract_strided_slice %78 {offsets = [0, 128], sizes = [8, 128], strides = [1, 1]} : vector<8x512xf32> to vector<8x128xf32>
    %86 = arith.negf %85 : vector<8x128xf32>
    %87 = math.exp %86 : vector<8x128xf32>
    %cst_26 = arith.constant 1.000000e+00 : f32
    %88 = vector.broadcast %cst_26 : f32 to vector<8x128xf32>
    %89 = arith.addf %88, %87 : vector<8x128xf32>
    %90 = arith.divf %88, %89 : vector<8x128xf32>
    %91 = vector.extract_strided_slice %78 {offsets = [0, 256], sizes = [8, 128], strides = [1, 1]} : vector<8x512xf32> to vector<8x128xf32>
    %92 = math.tanh %91 : vector<8x128xf32>
    %93 = vector.extract_strided_slice %78 {offsets = [0, 384], sizes = [8, 128], strides = [1, 1]} : vector<8x512xf32> to vector<8x128xf32>
    %94 = arith.negf %93 : vector<8x128xf32>
    %95 = math.exp %94 : vector<8x128xf32>
    %cst_27 = arith.constant 1.000000e+00 : f32
    %96 = vector.broadcast %cst_27 : f32 to vector<8x128xf32>
    %97 = arith.addf %96, %95 : vector<8x128xf32>
    %98 = arith.divf %96, %97 : vector<8x128xf32>
    %99 = arith.mulf %90, %67 : vector<8x128xf32>
    %100 = arith.mulf %84, %92 : vector<8x128xf32>
    %101 = arith.addf %99, %100 : vector<8x128xf32>
    %102 = math.tanh %101 : vector<8x128xf32>
    %103 = arith.mulf %98, %102 : vector<8x128xf32>
    %104 = arith.index_cast %c2_i32 : i32 to index
    %c0_28 = arith.constant 0 : index
    %c0_29 = arith.constant 0 : index
    %105 = vector.load %arg3[%104, %c0_28, %c0_29] : memref<8x8x128xf32, #tpu.memory_space<vmem>>, vector<1x8x128xf32>
    %106 = vector.shape_cast %105 : vector<1x8x128xf32> to vector<8x128xf32>
    %107 = vector.shape_cast %103 : vector<8x128xf32> to vector<1x8x128xf32>
    tpu.vector_store %arg3[%104, %c0_28, %c0_29], %107 {strides = array<i32>} : memref<8x8x128xf32, #tpu.memory_space<vmem>>, vector<1x8x128xf32>,
    %c3_i32 = arith.constant 3 : i32
    %cst_30 = arith.constant dense<0.000000e+00> : vector<8x512xf32>
    %108 = tpu.matmul %103, %3, %cst_30 {dimension_numbers = #tpu.dot_dimension_numbers<[1], [0], [0], [1], [0, 0, 1, 1], [], []>} : vector<8x128xf32>, vector<128x512xf32>, vector<8x512xf32> -> vector<8x512xf32>
    %109 = arith.index_cast %c3_i32 : i32 to index
    %c0_31 = arith.constant 0 : index
    %c0_32 = arith.constant 0 : index
    %110 = vector.load %arg1[%109, %c0_31, %c0_32] : memref<8x8x512xf32, #tpu.memory_space<vmem>>, vector<1x8x512xf32>
    %111 = vector.shape_cast %110 : vector<1x8x512xf32> to vector<8x512xf32>
    %112 = arith.addf %108, %111 : vector<8x512xf32>
    %113 = vector.extract_strided_slice %112 {offsets = [0, 0], sizes = [8, 128], strides = [1, 1]} : vector<8x512xf32> to vector<8x128xf32>
    %114 = arith.negf %113 : vector<8x128xf32>
    %115 = math.exp %114 : vector<8x128xf32>
    %cst_33 = arith.constant 1.000000e+00 : f32
    %116 = vector.broadcast %cst_33 : f32 to vector<8x128xf32>
    %117 = arith.addf %116, %115 : vector<8x128xf32>
    %118 = arith.divf %116, %117 : vector<8x128xf32>
    %119 = vector.extract_strided_slice %112 {offsets = [0, 128], sizes = [8, 128], strides = [1, 1]} : vector<8x512xf32> to vector<8x128xf32>
    %120 = arith.negf %119 : vector<8x128xf32>
    %121 = math.exp %120 : vector<8x128xf32>
    %cst_34 = arith.constant 1.000000e+00 : f32
    %122 = vector.broadcast %cst_34 : f32 to vector<8x128xf32>
    %123 = arith.addf %122, %121 : vector<8x128xf32>
    %124 = arith.divf %122, %123 : vector<8x128xf32>
    %125 = vector.extract_strided_slice %112 {offsets = [0, 256], sizes = [8, 128], strides = [1, 1]} : vector<8x512xf32> to vector<8x128xf32>
    %126 = math.tanh %125 : vector<8x128xf32>
    %127 = vector.extract_strided_slice %112 {offsets = [0, 384], sizes = [8, 128], strides = [1, 1]} : vector<8x512xf32> to vector<8x128xf32>
    %128 = arith.negf %127 : vector<8x128xf32>
    %129 = math.exp %128 : vector<8x128xf32>
    %cst_35 = arith.constant 1.000000e+00 : f32
    %130 = vector.broadcast %cst_35 : f32 to vector<8x128xf32>
    %131 = arith.addf %130, %129 : vector<8x128xf32>
    %132 = arith.divf %130, %131 : vector<8x128xf32>
    %133 = arith.mulf %124, %101 : vector<8x128xf32>
    %134 = arith.mulf %118, %126 : vector<8x128xf32>
    %135 = arith.addf %133, %134 : vector<8x128xf32>
    %136 = math.tanh %135 : vector<8x128xf32>
    %137 = arith.mulf %132, %136 : vector<8x128xf32>
    %138 = arith.index_cast %c3_i32 : i32 to index
    %c0_36 = arith.constant 0 : index
    %c0_37 = arith.constant 0 : index
    %139 = vector.load %arg3[%138, %c0_36, %c0_37] : memref<8x8x128xf32, #tpu.memory_space<vmem>>, vector<1x8x128xf32>
    %140 = vector.shape_cast %139 : vector<1x8x128xf32> to vector<8x128xf32>
    %141 = vector.shape_cast %137 : vector<8x128xf32> to vector<1x8x128xf32>
    tpu.vector_store %arg3[%138, %c0_36, %c0_37], %141 {strides = array<i32>} : memref<8x8x128xf32, #tpu.memory_space<vmem>>, vector<1x8x128xf32>,
    %c4_i32 = arith.constant 4 : i32
    %cst_38 = arith.constant dense<0.000000e+00> : vector<8x512xf32>
    %142 = tpu.matmul %137, %3, %cst_38 {dimension_numbers = #tpu.dot_dimension_numbers<[1], [0], [0], [1], [0, 0, 1, 1], [], []>} : vector<8x128xf32>, vector<128x512xf32>, vector<8x512xf32> -> vector<8x512xf32>
    %143 = arith.index_cast %c4_i32 : i32 to index
    %c0_39 = arith.constant 0 : index
    %c0_40 = arith.constant 0 : index
    %144 = vector.load %arg1[%143, %c0_39, %c0_40] : memref<8x8x512xf32, #tpu.memory_space<vmem>>, vector<1x8x512xf32>
    %145 = vector.shape_cast %144 : vector<1x8x512xf32> to vector<8x512xf32>
    %146 = arith.addf %142, %145 : vector<8x512xf32>
    %147 = vector.extract_strided_slice %146 {offsets = [0, 0], sizes = [8, 128], strides = [1, 1]} : vector<8x512xf32> to vector<8x128xf32>
    %148 = arith.negf %147 : vector<8x128xf32>
    %149 = math.exp %148 : vector<8x128xf32>
    %cst_41 = arith.constant 1.000000e+00 : f32
    %150 = vector.broadcast %cst_41 : f32 to vector<8x128xf32>
    %151 = arith.addf %150, %149 : vector<8x128xf32>
    %152 = arith.divf %150, %151 : vector<8x128xf32>
    %153 = vector.extract_strided_slice %146 {offsets = [0, 128], sizes = [8, 128], strides = [1, 1]} : vector<8x512xf32> to vector<8x128xf32>
    %154 = arith.negf %153 : vector<8x128xf32>
    %155 = math.exp %154 : vector<8x128xf32>
    %cst_42 = arith.constant 1.000000e+00 : f32
    %156 = vector.broadcast %cst_42 : f32 to vector<8x128xf32>
    %157 = arith.addf %156, %155 : vector<8x128xf32>
    %158 = arith.divf %156, %157 : vector<8x128xf32>
    %159 = vector.extract_strided_slice %146 {offsets = [0, 256], sizes = [8, 128], strides = [1, 1]} : vector<8x512xf32> to vector<8x128xf32>
    %160 = math.tanh %159 : vector<8x128xf32>
    %161 = vector.extract_strided_slice %146 {offsets = [0, 384], sizes = [8, 128], strides = [1, 1]} : vector<8x512xf32> to vector<8x128xf32>
    %162 = arith.negf %161 : vector<8x128xf32>
    %163 = math.exp %162 : vector<8x128xf32>
    %cst_43 = arith.constant 1.000000e+00 : f32
    %164 = vector.broadcast %cst_43 : f32 to vector<8x128xf32>
    %165 = arith.addf %164, %163 : vector<8x128xf32>
    %166 = arith.divf %164, %165 : vector<8x128xf32>
    %167 = arith.mulf %158, %135 : vector<8x128xf32>
    %168 = arith.mulf %152, %160 : vector<8x128xf32>
    %169 = arith.addf %167, %168 : vector<8x128xf32>
    %170 = math.tanh %169 : vector<8x128xf32>
    %171 = arith.mulf %166, %170 : vector<8x128xf32>
    %172 = arith.index_cast %c4_i32 : i32 to index
    %c0_44 = arith.constant 0 : index
    %c0_45 = arith.constant 0 : index
    %173 = vector.load %arg3[%172, %c0_44, %c0_45] : memref<8x8x128xf32, #tpu.memory_space<vmem>>, vector<1x8x128xf32>
    %174 = vector.shape_cast %173 : vector<1x8x128xf32> to vector<8x128xf32>
    %175 = vector.shape_cast %171 : vector<8x128xf32> to vector<1x8x128xf32>
    tpu.vector_store %arg3[%172, %c0_44, %c0_45], %175 {strides = array<i32>} : memref<8x8x128xf32, #tpu.memory_space<vmem>>, vector<1x8x128xf32>,
    %c5_i32 = arith.constant 5 : i32
    %cst_46 = arith.constant dense<0.000000e+00> : vector<8x512xf32>
    %176 = tpu.matmul %171, %3, %cst_46 {dimension_numbers = #tpu.dot_dimension_numbers<[1], [0], [0], [1], [0, 0, 1, 1], [], []>} : vector<8x128xf32>, vector<128x512xf32>, vector<8x512xf32> -> vector<8x512xf32>
    %177 = arith.index_cast %c5_i32 : i32 to index
    %c0_47 = arith.constant 0 : index
    %c0_48 = arith.constant 0 : index
    %178 = vector.load %arg1[%177, %c0_47, %c0_48] : memref<8x8x512xf32, #tpu.memory_space<vmem>>, vector<1x8x512xf32>
    %179 = vector.shape_cast %178 : vector<1x8x512xf32> to vector<8x512xf32>
    %180 = arith.addf %176, %179 : vector<8x512xf32>
    %181 = vector.extract_strided_slice %180 {offsets = [0, 0], sizes = [8, 128], strides = [1, 1]} : vector<8x512xf32> to vector<8x128xf32>
    %182 = arith.negf %181 : vector<8x128xf32>
    %183 = math.exp %182 : vector<8x128xf32>
    %cst_49 = arith.constant 1.000000e+00 : f32
    %184 = vector.broadcast %cst_49 : f32 to vector<8x128xf32>
    %185 = arith.addf %184, %183 : vector<8x128xf32>
    %186 = arith.divf %184, %185 : vector<8x128xf32>
    %187 = vector.extract_strided_slice %180 {offsets = [0, 128], sizes = [8, 128], strides = [1, 1]} : vector<8x512xf32> to vector<8x128xf32>
    %188 = arith.negf %187 : vector<8x128xf32>
    %189 = math.exp %188 : vector<8x128xf32>
    %cst_50 = arith.constant 1.000000e+00 : f32
    %190 = vector.broadcast %cst_50 : f32 to vector<8x128xf32>
    %191 = arith.addf %190, %189 : vector<8x128xf32>
    %192 = arith.divf %190, %191 : vector<8x128xf32>
    %193 = vector.extract_strided_slice %180 {offsets = [0, 256], sizes = [8, 128], strides = [1, 1]} : vector<8x512xf32> to vector<8x128xf32>
    %194 = math.tanh %193 : vector<8x128xf32>
    %195 = vector.extract_strided_slice %180 {offsets = [0, 384], sizes = [8, 128], strides = [1, 1]} : vector<8x512xf32> to vector<8x128xf32>
    %196 = arith.negf %195 : vector<8x128xf32>
    %197 = math.exp %196 : vector<8x128xf32>
    %cst_51 = arith.constant 1.000000e+00 : f32
    %198 = vector.broadcast %cst_51 : f32 to vector<8x128xf32>
    %199 = arith.addf %198, %197 : vector<8x128xf32>
    %200 = arith.divf %198, %199 : vector<8x128xf32>
    %201 = arith.mulf %192, %169 : vector<8x128xf32>
    %202 = arith.mulf %186, %194 : vector<8x128xf32>
    %203 = arith.addf %201, %202 : vector<8x128xf32>
    %204 = math.tanh %203 : vector<8x128xf32>
    %205 = arith.mulf %200, %204 : vector<8x128xf32>
    %206 = arith.index_cast %c5_i32 : i32 to index
    %c0_52 = arith.constant 0 : index
    %c0_53 = arith.constant 0 : index
    %207 = vector.load %arg3[%206, %c0_52, %c0_53] : memref<8x8x128xf32, #tpu.memory_space<vmem>>, vector<1x8x128xf32>
    %208 = vector.shape_cast %207 : vector<1x8x128xf32> to vector<8x128xf32>
    %209 = vector.shape_cast %205 : vector<8x128xf32> to vector<1x8x128xf32>
    tpu.vector_store %arg3[%206, %c0_52, %c0_53], %209 {strides = array<i32>} : memref<8x8x128xf32, #tpu.memory_space<vmem>>, vector<1x8x128xf32>,
    %c6_i32 = arith.constant 6 : i32
    %cst_54 = arith.constant dense<0.000000e+00> : vector<8x512xf32>
    %210 = tpu.matmul %205, %3, %cst_54 {dimension_numbers = #tpu.dot_dimension_numbers<[1], [0], [0], [1], [0, 0, 1, 1], [], []>} : vector<8x128xf32>, vector<128x512xf32>, vector<8x512xf32> -> vector<8x512xf32>
    %211 = arith.index_cast %c6_i32 : i32 to index
    %c0_55 = arith.constant 0 : index
    %c0_56 = arith.constant 0 : index
    %212 = vector.load %arg1[%211, %c0_55, %c0_56] : memref<8x8x512xf32, #tpu.memory_space<vmem>>, vector<1x8x512xf32>
    %213 = vector.shape_cast %212 : vector<1x8x512xf32> to vector<8x512xf32>
    %214 = arith.addf %210, %213 : vector<8x512xf32>
    %215 = vector.extract_strided_slice %214 {offsets = [0, 0], sizes = [8, 128], strides = [1, 1]} : vector<8x512xf32> to vector<8x128xf32>
    %216 = arith.negf %215 : vector<8x128xf32>
    %217 = math.exp %216 : vector<8x128xf32>
    %cst_57 = arith.constant 1.000000e+00 : f32
    %218 = vector.broadcast %cst_57 : f32 to vector<8x128xf32>
    %219 = arith.addf %218, %217 : vector<8x128xf32>
    %220 = arith.divf %218, %219 : vector<8x128xf32>
    %221 = vector.extract_strided_slice %214 {offsets = [0, 128], sizes = [8, 128], strides = [1, 1]} : vector<8x512xf32> to vector<8x128xf32>
    %222 = arith.negf %221 : vector<8x128xf32>
    %223 = math.exp %222 : vector<8x128xf32>
    %cst_58 = arith.constant 1.000000e+00 : f32
    %224 = vector.broadcast %cst_58 : f32 to vector<8x128xf32>
    %225 = arith.addf %224, %223 : vector<8x128xf32>
    %226 = arith.divf %224, %225 : vector<8x128xf32>
    %227 = vector.extract_strided_slice %214 {offsets = [0, 256], sizes = [8, 128], strides = [1, 1]} : vector<8x512xf32> to vector<8x128xf32>
    %228 = math.tanh %227 : vector<8x128xf32>
    %229 = vector.extract_strided_slice %214 {offsets = [0, 384], sizes = [8, 128], strides = [1, 1]} : vector<8x512xf32> to vector<8x128xf32>
    %230 = arith.negf %229 : vector<8x128xf32>
    %231 = math.exp %230 : vector<8x128xf32>
    %cst_59 = arith.constant 1.000000e+00 : f32
    %232 = vector.broadcast %cst_59 : f32 to vector<8x128xf32>
    %233 = arith.addf %232, %231 : vector<8x128xf32>
    %234 = arith.divf %232, %233 : vector<8x128xf32>
    %235 = arith.mulf %226, %203 : vector<8x128xf32>
    %236 = arith.mulf %220, %228 : vector<8x128xf32>
    %237 = arith.addf %235, %236 : vector<8x128xf32>
    %238 = math.tanh %237 : vector<8x128xf32>
    %239 = arith.mulf %234, %238 : vector<8x128xf32>
    %240 = arith.index_cast %c6_i32 : i32 to index
    %c0_60 = arith.constant 0 : index
    %c0_61 = arith.constant 0 : index
    %241 = vector.load %arg3[%240, %c0_60, %c0_61] : memref<8x8x128xf32, #tpu.memory_space<vmem>>, vector<1x8x128xf32>
    %242 = vector.shape_cast %241 : vector<1x8x128xf32> to vector<8x128xf32>
    %243 = vector.shape_cast %239 : vector<8x128xf32> to vector<1x8x128xf32>
    tpu.vector_store %arg3[%240, %c0_60, %c0_61], %243 {strides = array<i32>} : memref<8x8x128xf32, #tpu.memory_space<vmem>>, vector<1x8x128xf32>,
    %c7_i32 = arith.constant 7 : i32
    %cst_62 = arith.constant dense<0.000000e+00> : vector<8x512xf32>
    %244 = tpu.matmul %239, %3, %cst_62 {dimension_numbers = #tpu.dot_dimension_numbers<[1], [0], [0], [1], [0, 0, 1, 1], [], []>} : vector<8x128xf32>, vector<128x512xf32>, vector<8x512xf32> -> vector<8x512xf32>
    %245 = arith.index_cast %c7_i32 : i32 to index
    %c0_63 = arith.constant 0 : index
    %c0_64 = arith.constant 0 : index
    %246 = vector.load %arg1[%245, %c0_63, %c0_64] : memref<8x8x512xf32, #tpu.memory_space<vmem>>, vector<1x8x512xf32>
    %247 = vector.shape_cast %246 : vector<1x8x512xf32> to vector<8x512xf32>
    %248 = arith.addf %244, %247 : vector<8x512xf32>
    %249 = vector.extract_strided_slice %248 {offsets = [0, 0], sizes = [8, 128], strides = [1, 1]} : vector<8x512xf32> to vector<8x128xf32>
    %250 = arith.negf %249 : vector<8x128xf32>
    %251 = math.exp %250 : vector<8x128xf32>
    %cst_65 = arith.constant 1.000000e+00 : f32
    %252 = vector.broadcast %cst_65 : f32 to vector<8x128xf32>
    %253 = arith.addf %252, %251 : vector<8x128xf32>
    %254 = arith.divf %252, %253 : vector<8x128xf32>
    %255 = vector.extract_strided_slice %248 {offsets = [0, 128], sizes = [8, 128], strides = [1, 1]} : vector<8x512xf32> to vector<8x128xf32>
    %256 = arith.negf %255 : vector<8x128xf32>
    %257 = math.exp %256 : vector<8x128xf32>
    %cst_66 = arith.constant 1.000000e+00 : f32
    %258 = vector.broadcast %cst_66 : f32 to vector<8x128xf32>
    %259 = arith.addf %258, %257 : vector<8x128xf32>
    %260 = arith.divf %258, %259 : vector<8x128xf32>
    %261 = vector.extract_strided_slice %248 {offsets = [0, 256], sizes = [8, 128], strides = [1, 1]} : vector<8x512xf32> to vector<8x128xf32>
    %262 = math.tanh %261 : vector<8x128xf32>
    %263 = vector.extract_strided_slice %248 {offsets = [0, 384], sizes = [8, 128], strides = [1, 1]} : vector<8x512xf32> to vector<8x128xf32>
    %264 = arith.negf %263 : vector<8x128xf32>
    %265 = math.exp %264 : vector<8x128xf32>
    %cst_67 = arith.constant 1.000000e+00 : f32
    %266 = vector.broadcast %cst_67 : f32 to vector<8x128xf32>
    %267 = arith.addf %266, %265 : vector<8x128xf32>
    %268 = arith.divf %266, %267 : vector<8x128xf32>
    %269 = arith.mulf %260, %237 : vector<8x128xf32>
    %270 = arith.mulf %254, %262 : vector<8x128xf32>
    %271 = arith.addf %269, %270 : vector<8x128xf32>
    %272 = math.tanh %271 : vector<8x128xf32>
    %273 = arith.mulf %268, %272 : vector<8x128xf32>
    %274 = arith.index_cast %c7_i32 : i32 to index
    %c0_68 = arith.constant 0 : index
    %c0_69 = arith.constant 0 : index
    %275 = vector.load %arg3[%274, %c0_68, %c0_69] : memref<8x8x128xf32, #tpu.memory_space<vmem>>, vector<1x8x128xf32>
    %276 = vector.shape_cast %275 : vector<1x8x128xf32> to vector<8x128xf32>
    %277 = vector.shape_cast %273 : vector<8x128xf32> to vector<1x8x128xf32>
    tpu.vector_store %arg3[%274, %c0_68, %c0_69], %277 {strides = array<i32>} : memref<8x8x128xf32, #tpu.memory_space<vmem>>, vector<1x8x128xf32>,
    %c8_i32 = arith.constant 8 : i32
    %c0_70 = arith.constant 0 : index
    %c0_71 = arith.constant 0 : index
    %278 = vector.load %arg4[%c0_70, %c0_71] : memref<8x128xf32, #tpu.memory_space<vmem>>, vector<8x128xf32>
    tpu.vector_store %arg4[%c0_70, %c0_71], %273 {strides = array<i32>} : memref<8x128xf32, #tpu.memory_space<vmem>>, vector<8x128xf32>,
    %c0_72 = arith.constant 0 : index
    %c0_73 = arith.constant 0 : index
    %279 = vector.load %arg5[%c0_72, %c0_73] : memref<8x128xf32, #tpu.memory_space<vmem>>, vector<8x128xf32>
    tpu.vector_store %arg5[%c0_72, %c0_73], %271 {strides = array<i32>} : memref<8x128xf32, #tpu.memory_space<vmem>>, vector<8x128xf32>,
    return
  }
  func.func @transform_0(%arg0: i32) -> (i32, i32, i32) {
    %c0_i32 = arith.constant 0 : i32
    %c0_i32_0 = arith.constant 0 : i32
    %c0_i32_1 = arith.constant 0 : i32
    return %arg0, %c0_i32, %c0_i32_0 : i32, i32, i32
  }
  func.func @transform_1(%arg0: i32) -> (i32, i32) {
    %c0_i32 = arith.constant 0 : i32
    %c0_i32_0 = arith.constant 0 : i32
    %c0_i32_1 = arith.constant 0 : i32
    return %c0_i32, %c0_i32_0 : i32, i32
  }
  func.func @transform_2(%arg0: i32) -> (i32, i32, i32) {
    %c0_i32 = arith.constant 0 : i32
    %c0_i32_0 = arith.constant 0 : i32
    %c0_i32_1 = arith.constant 0 : i32
    return %arg0, %c0_i32, %c0_i32_0 : i32, i32, i32
  }
}

</mosaic_0001>

<bundles_post_ra>
// kernel: rnn_encoder_forward.4
= control target key start
LH: loop header
LB: loop body
LE: loop exit
PB: predicated region body
PF: predicated region fallthrough
CT: control target
= control target key end

     0   :  { %s671_s1 = inlined_call_operand.vmem [shape: f32[128,512], index: 1, kind: input, shape index: {}]   ;;  %s672_s0 = inlined_call_operand.vmem [shape: f32[64,128], index: 0, kind: input, shape index: {}]   ;;  %s673_s2 = inlined_call_operand.vmem [shape: f32[1,512], index: 2, kind: input, shape index: {}]   ;;  %s674_s3 = inlined_call_operand.vmem [shape: f32[64,512], index: 3, kind: output, shape index: {}]  }
   0x1   :  { %v84_v0 = vld [vmem:[%s671_s1 + $0x1f0] sm:$0xff]  ;;  %v85_v1 = vld [vmem:[%s671_s1 + $0x1f8] sm:$0xff]  ;;  %v82_v6 = vld [vmem:[%s671_s1 + $0x1e0] sm:$0xff] }
   0x2   :  { %v80_v2 = vld [vmem:[%s671_s1 + $0x1d0] sm:$0xff]  ;;  %178 = vmatpush.msra.mxu2 %v84_v0  ;;  %219 = vmatpush.msra.mxu3 %v85_v1  ;;  %v81_v3 = vld [vmem:[%s671_s1 + $0x1d8] sm:$0xff]  ;;  %v83_v7 = vld [vmem:[%s671_s1 + $0x1e8] sm:$0xff] }
   0x3   :  { %v76_v4 = vld [vmem:[%s671_s1 + $0x1b0] sm:$0xff]  ;;  %v77_v5 = vld [vmem:[%s671_s1 + $0x1b8] sm:$0xff]  ;;  %v78_v8 = vld [vmem:[%s671_s1 + $0x1c0] sm:$0xff]  ;;  %96 = vmatpush.msra.mxu0 %v82_v6  ;;  %137 = vmatpush.msra.mxu1 %v83_v7 }
   0x4   :  { %179 = vmatpush.msra.mxu2 %v80_v2  ;;  %220 = vmatpush.msra.mxu3 %v81_v3  ;;  %v79_v9 = vld [vmem:[%s671_s1 + $0x1c8] sm:$0xff]  ;;  %v72_v10 = vld [vmem:[%s671_s1 + $0x190] sm:$0xff]  ;;  %v73_v11 = vld [vmem:[%s671_s1 + $0x198] sm:$0xff] }
   0x5   :  { %v74_v12 = vld [vmem:[%s671_s1 + $0x1a0] sm:$0xff]  ;;  %v75_v13 = vld [vmem:[%s671_s1 + $0x1a8] sm:$0xff]  ;;  %97 = vmatpush.msra.mxu0 %v78_v8  ;;  %138 = vmatpush.msra.mxu1 %v79_v9  ;;  %v68_v14 = vld [vmem:[%s671_s1 + $0x170] sm:$0xff] }
   0x6   :  { %180 = vmatpush.msra.mxu2 %v76_v4  ;;  %221 = vmatpush.msra.mxu3 %v77_v5  ;;  %v69_v15 = vld [vmem:[%s671_s1 + $0x178] sm:$0xff]  ;;  %v70_v16 = vld [vmem:[%s671_s1 + $0x180] sm:$0xff]  ;;  %v71_v17 = vld [vmem:[%s671_s1 + $0x188] sm:$0xff] }
   0x7   :  { %98 = vmatpush.msra.mxu0 %v74_v12  ;;  %139 = vmatpush.msra.mxu1 %v75_v13  ;;  %v64_v18 = vld [vmem:[%s671_s1 + $0x150] sm:$0xff]  ;;  %v65_v19 = vld [vmem:[%s671_s1 + $0x158] sm:$0xff]  ;;  %v66_v20 = vld [vmem:[%s671_s1 + $0x160] sm:$0xff] }
   0x8   :  { %181 = vmatpush.msra.mxu2 %v72_v10  ;;  %222 = vmatpush.msra.mxu3 %v73_v11  ;;  %v67_v21 = vld [vmem:[%s671_s1 + $0x168] sm:$0xff]  ;;  %v60_v22 = vld [vmem:[%s671_s1 + $0x130] sm:$0xff]  ;;  %v61_v23 = vld [vmem:[%s671_s1 + $0x138] sm:$0xff] }
   0x9   :  { %99 = vmatpush.msra.mxu0 %v70_v16  ;;  %140 = vmatpush.msra.mxu1 %v71_v17  ;;  %v62_v24 = vld [vmem:[%s671_s1 + $0x140] sm:$0xff]  ;;  %v63_v25 = vld [vmem:[%s671_s1 + $0x148] sm:$0xff]  ;;  %v56_v26 = vld [vmem:[%s671_s1 + $0x110] sm:$0xff] }
   0xa   :  { %182 = vmatpush.msra.mxu2 %v68_v14  ;;  %223 = vmatpush.msra.mxu3 %v69_v15  ;;  %v57_v27 = vld [vmem:[%s671_s1 + $0x118] sm:$0xff]  ;;  %v58_v28 = vld [vmem:[%s671_s1 + $0x120] sm:$0xff]  ;;  %v59_v29 = vld [vmem:[%s671_s1 + $0x128] sm:$0xff] }
   0xb   :  { %100 = vmatpush.msra.mxu0 %v66_v20  ;;  %141 = vmatpush.msra.mxu1 %v67_v21  ;;  %v52_v30 = vld [vmem:[%s671_s1 + $0xf0] sm:$0xff]  ;;  %v53_v31 = vld [vmem:[%s671_s1 + $0xf8] sm:$0xff]  ;;  %v54_v32 = vld [vmem:[%s671_s1 + $0x100] sm:$0xff] }
   0xc   :  { %183 = vmatpush.msra.mxu2 %v64_v18  ;;  %224 = vmatpush.msra.mxu3 %v65_v19  ;;  %v55_v33 = vld [vmem:[%s671_s1 + $0x108] sm:$0xff]  ;;  %v48_v34 = vld [vmem:[%s671_s1 + $0xd0] sm:$0xff]  ;;  %v49_v35 = vld [vmem:[%s671_s1 + $0xd8] sm:$0xff] }
   0xd   :  { %101 = vmatpush.msra.mxu0 %v62_v24  ;;  %142 = vmatpush.msra.mxu1 %v63_v25  ;;  %v50_v36 = vld [vmem:[%s671_s1 + $0xe0] sm:$0xff]  ;;  %v51_v37 = vld [vmem:[%s671_s1 + $0xe8] sm:$0xff]  ;;  %v44_v38 = vld [vmem:[%s671_s1 + $0xb0] sm:$0xff] }
   0xe   :  { %184 = vmatpush.msra.mxu2 %v60_v22  ;;  %225 = vmatpush.msra.mxu3 %v61_v23  ;;  %v45_v39 = vld [vmem:[%s671_s1 + $0xb8] sm:$0xff]  ;;  %v46_v40 = vld [vmem:[%s671_s1 + $0xc0] sm:$0xff]  ;;  %v47_v41 = vld [vmem:[%s671_s1 + $0xc8] sm:$0xff] }
   0xf   :  { %102 = vmatpush.msra.mxu0 %v58_v28  ;;  %143 = vmatpush.msra.mxu1 %v59_v29  ;;  %v40_v42 = vld [vmem:[%s671_s1 + $0x90] sm:$0xff]  ;;  %v41_v43 = vld [vmem:[%s671_s1 + $0x98] sm:$0xff]  ;;  %v42_v44 = vld [vmem:[%s671_s1 + $0xa0] sm:$0xff] }
  0x10   :  { %185 = vmatpush.msra.mxu2 %v56_v26  ;;  %226 = vmatpush.msra.mxu3 %v57_v27  ;;  %v43_v45 = vld [vmem:[%s671_s1 + $0xa8] sm:$0xff]  ;;  %v36_v46 = vld [vmem:[%s671_s1 + $0x70] sm:$0xff]  ;;  %v37_v47 = vld [vmem:[%s671_s1 + $0x78] sm:$0xff] }
  0x11   :  { %103 = vmatpush.msra.mxu0 %v54_v32  ;;  %144 = vmatpush.msra.mxu1 %v55_v33  ;;  %v38_v48 = vld [vmem:[%s671_s1 + $0x80] sm:$0xff]  ;;  %v39_v49 = vld [vmem:[%s671_s1 + $0x88] sm:$0xff]  ;;  %v32_v50 = vld [vmem:[%s671_s1 + $0x50] sm:$0xff] }
  0x12   :  { %186 = vmatpush.msra.mxu2 %v52_v30  ;;  %227 = vmatpush.msra.mxu3 %v53_v31  ;;  %v33_v51 = vld [vmem:[%s671_s1 + $0x58] sm:$0xff]  ;;  %v34_v52 = vld [vmem:[%s671_s1 + $0x60] sm:$0xff]  ;;  %v35_v53 = vld [vmem:[%s671_s1 + $0x68] sm:$0xff] }
  0x13   :  { %104 = vmatpush.msra.mxu0 %v50_v36  ;;  %145 = vmatpush.msra.mxu1 %v51_v37  ;;  %v28_v54 = vld [vmem:[%s671_s1 + $0x30] sm:$0xff]  ;;  %v29_v55 = vld [vmem:[%s671_s1 + $0x38] sm:$0xff]  ;;  %v30_v56 = vld [vmem:[%s671_s1 + $0x40] sm:$0xff] }
  0x14   :  { %187 = vmatpush.msra.mxu2 %v48_v34  ;;  %228 = vmatpush.msra.mxu3 %v49_v35  ;;  %v31_v57 = vld [vmem:[%s671_s1 + $0x48] sm:$0xff]  ;;  %v24_v58 = vld [vmem:[%s671_s1 + $0x10] sm:$0xff]  ;;  %v25_v59 = vld [vmem:[%s671_s1 + $0x18] sm:$0xff] }
  0x15   :  { %105 = vmatpush.msra.mxu0 %v46_v40  ;;  %146 = vmatpush.msra.mxu1 %v47_v41  ;;  %v14_v60 = vld [vmem:[%s672_s0] sm:$0xff]  ;;  %v27_v62 = vld [vmem:[%s671_s1 + $0x28] sm:$0xff]  ;;  %v16_v2 = vld [vmem:[%s672_s0 + $0x10] sm:$0xff] }
  0x16   :  { %188 = vmatpush.msra.mxu2 %v44_v38  ;;  %229 = vmatpush.msra.mxu3 %v45_v39  ;;  %v26_v61 = vld [vmem:[%s671_s1 + $0x20] sm:$0xff]  ;;  %v23_v0 = vld [vmem:[%s671_s1 + $0x8] sm:$0xff]  ;;  %v17_v3 = vld [vmem:[%s672_s0 + $0x18] sm:$0xff] }
  0x17   :  { %106 = vmatpush.msra.mxu0 %v42_v44  ;;  %147 = vmatpush.msra.mxu1 %v43_v45  ;;  %v22_v63 = vld [vmem:[%s671_s1] sm:$0xff]  ;;  %v15_v1 = vld [vmem:[%s672_s0 + $0x8] sm:$0xff]  ;;  %v20_v6 = vld [vmem:[%s672_s0 + $0x30] sm:$0xff] }
  0x18   :  { %189 = vmatpush.msra.mxu2 %v40_v42  ;;  %230 = vmatpush.msra.mxu3 %v41_v43  ;;  %v18_v4 = vld [vmem:[%s672_s0 + $0x20] sm:$0xff]  ;;  %v19_v5 = vld [vmem:[%s672_s0 + $0x28] sm:$0xff]  ;;  %v21_v7 = vld [vmem:[%s672_s0 + $0x38] sm:$0xff] }
  0x19   :  { %107 = vmatpush.msra.mxu0 %v38_v48  ;;  %148 = vmatpush.msra.mxu1 %v39_v49  ;;  %v86_v8 = vld [vmem:[%s673_s2] sm:$0xf] }
  0x1a   :  { %190 = vmatpush.msra.mxu2 %v36_v46  ;;  %231 = vmatpush.msra.mxu3 %v37_v47  ;;  %v535_v9 = vperm.slane %v86_v8, 0  ;;  %v537_v10 = vperm.slane %v86_v8, 1  ;;  %v539_v11 = vperm.slane %v86_v8, 2  ;;  %v541_v12 = vperm.slane %v86_v8, 3 }
  0x1b   :  { %108 = vmatpush.msra.mxu0 %v34_v52  ;;  %149 = vmatpush.msra.mxu1 %v35_v53 }
  0x1c   :  { %191 = vmatpush.msra.mxu2 %v32_v50  ;;  %232 = vmatpush.msra.mxu3 %v33_v51 }
  0x1d   :  { %109 = vmatpush.msra.mxu0 %v30_v56  ;;  %150 = vmatpush.msra.mxu1 %v31_v57 }
  0x1e   :  { %192 = vmatpush.msra.mxu2 %v28_v54  ;;  %233 = vmatpush.msra.mxu3 %v29_v55 }
  0x1f   :  { %110 = vmatpush.msra.mxu0 %v26_v61  ;;  %151 = vmatpush.msra.mxu1 %v27_v62 }
  0x20   :  { %193 = vmatpush.msra.mxu2 %v24_v58  ;;  %234 = vmatpush.msra.mxu3 %v25_v59 }
  0x21   :  { %194 = vmatmul.f32.vlgmr.msra.gmra.mxu2 %v14_v60  ;;  %235 = vmatmul.f32.vlgmr.msra.gmra.mxu3 %v14_v60 }
  0x22   :  { %111 = vmatpush.msra.mxu0 %v22_v63  ;;  %152 = vmatpush.msra.mxu1 %v23_v0 }
  0x23   :  { %112 = vmatmul.f32.vlgmr.msra.gmra.mxu0 %v14_v60  ;;  %153 = vmatmul.f32.vlgmr.msra.gmra.mxu1 %v14_v60 }
  0x29   :  { %197 = vmatmul.f32.gmra.mxu2 %v15_v1  ;;  %238 = vmatmul.f32.gmra.mxu3 %v15_v1 }
  0x2b   :  { %115 = vmatmul.f32.gmra.mxu0 %v15_v1  ;;  %156 = vmatmul.f32.gmra.mxu1 %v15_v1 }
  0x31   :  { %200 = vmatmul.f32.gmra.mxu2 %v16_v2  ;;  %241 = vmatmul.f32.gmra.mxu3 %v16_v2 }
  0x33   :  { %118 = vmatmul.f32.gmra.mxu0 %v16_v2  ;;  %159 = vmatmul.f32.gmra.mxu1 %v16_v2 }
  0x39   :  { %203 = vmatmul.f32.gmra.mxu2 %v17_v3  ;;  %244 = vmatmul.f32.gmra.mxu3 %v17_v3 }
  0x3b   :  { %121 = vmatmul.f32.gmra.mxu0 %v17_v3  ;;  %162 = vmatmul.f32.gmra.mxu1 %v17_v3 }
  0x41   :  { %206 = vmatmul.f32.gmra.mxu2 %v18_v4  ;;  %247 = vmatmul.f32.gmra.mxu3 %v18_v4 }
  0x43   :  { %124 = vmatmul.f32.gmra.mxu0 %v18_v4  ;;  %165 = vmatmul.f32.gmra.mxu1 %v18_v4 }
  0x49   :  { %209 = vmatmul.f32.gmra.mxu2 %v19_v5  ;;  %250 = vmatmul.f32.gmra.mxu3 %v19_v5 }
  0x4b   :  { %127 = vmatmul.f32.gmra.mxu0 %v19_v5  ;;  %168 = vmatmul.f32.gmra.mxu1 %v19_v5 }
  0x51   :  { %212 = vmatmul.f32.gmra.mxu2 %v20_v6  ;;  %253 = vmatmul.f32.gmra.mxu3 %v20_v6 }
  0x53   :  { %130 = vmatmul.f32.gmra.mxu0 %v20_v6  ;;  %171 = vmatmul.f32.gmra.mxu1 %v20_v6 }
  0x59   :  { %215 = vmatmul.f32.gmra.mxu2 %v21_v7  ;;  %256 = vmatmul.f32.gmra.mxu3 %v21_v7 }
  0x5b   :  { %133 = vmatmul.f32.gmra.mxu0 %v21_v7  ;;  %174 = vmatmul.f32.gmra.mxu1 %v21_v7 }
  0xa0   :  { %v113_v13 = vpop.f32.mrf.mxu0  ;;  %v154_v14 = vpop.f32.mrf.mxu1 }
  0xa1   :  { %v114_v15 = vadd.f32 %v113_v13, %v535_v9  ;;  %v155_v16 = vadd.f32 %v154_v14, %v537_v10 }
  0xa3   :  { %260 = vst [vmem:[%s674_s3] sm:$0xff] %v114_v15 }
  0xa4   :  { %v195_v17 = vpop.f32.mrf.mxu2  ;;  %v236_v18 = vpop.f32.mrf.mxu3  ;;  %261 = vst [vmem:[%s674_s3 + $0x8] sm:$0xff] %v155_v16 }
  0xa5   :  { %v196_v19 = vadd.f32 %v195_v17, %v539_v11  ;;  %v237_v20 = vadd.f32 %v236_v18, %v541_v12 }
  0xa7   :  { %262 = vst [vmem:[%s674_s3 + $0x10] sm:$0xff] %v196_v19 }
  0xa8   :  { %263 = vst [vmem:[%s674_s3 + $0x18] sm:$0xff] %v237_v20  ;;  %v116_v21 = vpop.f32.mrf.mxu0  ;;  %v157_v22 = vpop.f32.mrf.mxu1 }
  0xa9   :  { %v117_v23 = vadd.f32 %v116_v21, %v535_v9  ;;  %v158_v24 = vadd.f32 %v157_v22, %v537_v10 }
  0xab   :  { %264 = vst [vmem:[%s674_s3 + $0x20] sm:$0xff] %v117_v23 }
  0xac   :  { %v198_v25 = vpop.f32.mrf.mxu2  ;;  %v239_v26 = vpop.f32.mrf.mxu3  ;;  %265 = vst [vmem:[%s674_s3 + $0x28] sm:$0xff] %v158_v24 }
  0xad   :  { %v199_v27 = vadd.f32 %v198_v25, %v539_v11  ;;  %v240_v28 = vadd.f32 %v239_v26, %v541_v12 }
  0xaf   :  { %266 = vst [vmem:[%s674_s3 + $0x30] sm:$0xff] %v199_v27 }
  0xb0   :  { %267 = vst [vmem:[%s674_s3 + $0x38] sm:$0xff] %v240_v28  ;;  %v119_v29 = vpop.f32.mrf.mxu0  ;;  %v160_v30 = vpop.f32.mrf.mxu1 }
  0xb1   :  { %v120_v31 = vadd.f32 %v119_v29, %v535_v9  ;;  %v161_v32 = vadd.f32 %v160_v30, %v537_v10 }
  0xb3   :  { %268 = vst [vmem:[%s674_s3 + $0x40] sm:$0xff] %v120_v31 }
  0xb4   :  { %v201_v33 = vpop.f32.mrf.mxu2  ;;  %v242_v34 = vpop.f32.mrf.mxu3  ;;  %269 = vst [vmem:[%s674_s3 + $0x48] sm:$0xff] %v161_v32 }
  0xb5   :  { %v202_v35 = vadd.f32 %v201_v33, %v539_v11  ;;  %v243_v36 = vadd.f32 %v242_v34, %v541_v12 }
  0xb7   :  { %270 = vst [vmem:[%s674_s3 + $0x50] sm:$0xff] %v202_v35 }
  0xb8   :  { %271 = vst [vmem:[%s674_s3 + $0x58] sm:$0xff] %v243_v36  ;;  %v122_v37 = vpop.f32.mrf.mxu0  ;;  %v163_v38 = vpop.f32.mrf.mxu1 }
  0xb9   :  { %v123_v39 = vadd.f32 %v122_v37, %v535_v9  ;;  %v164_v40 = vadd.f32 %v163_v38, %v537_v10 }
  0xbb   :  { %272 = vst [vmem:[%s674_s3 + $0x60] sm:$0xff] %v123_v39 }
  0xbc   :  { %v204_v41 = vpop.f32.mrf.mxu2  ;;  %v245_v42 = vpop.f32.mrf.mxu3  ;;  %273 = vst [vmem:[%s674_s3 + $0x68] sm:$0xff] %v164_v40 }
  0xbd   :  { %v205_v43 = vadd.f32 %v204_v41, %v539_v11  ;;  %v246_v44 = vadd.f32 %v245_v42, %v541_v12 }
  0xbf   :  { %274 = vst [vmem:[%s674_s3 + $0x70] sm:$0xff] %v205_v43 }
  0xc0   :  { %275 = vst [vmem:[%s674_s3 + $0x78] sm:$0xff] %v246_v44  ;;  %v125_v45 = vpop.f32.mrf.mxu0  ;;  %v166_v46 = vpop.f32.mrf.mxu1 }
  0xc1   :  { %v126_v47 = vadd.f32 %v125_v45, %v535_v9  ;;  %v167_v48 = vadd.f32 %v166_v46, %v537_v10 }
  0xc3   :  { %276 = vst [vmem:[%s674_s3 + $0x80] sm:$0xff] %v126_v47 }
  0xc4   :  { %v207_v49 = vpop.f32.mrf.mxu2  ;;  %v248_v50 = vpop.f32.mrf.mxu3  ;;  %277 = vst [vmem:[%s674_s3 + $0x88] sm:$0xff] %v167_v48 }
  0xc5   :  { %v208_v51 = vadd.f32 %v207_v49, %v539_v11  ;;  %v249_v52 = vadd.f32 %v248_v50, %v541_v12 }
  0xc7   :  { %278 = vst [vmem:[%s674_s3 + $0x90] sm:$0xff] %v208_v51 }
  0xc8   :  { %279 = vst [vmem:[%s674_s3 + $0x98] sm:$0xff] %v249_v52  ;;  %v128_v53 = vpop.f32.mrf.mxu0  ;;  %v169_v54 = vpop.f32.mrf.mxu1 }
  0xc9   :  { %v129_v55 = vadd.f32 %v128_v53, %v535_v9  ;;  %v170_v56 = vadd.f32 %v169_v54, %v537_v10 }
  0xcb   :  { %280 = vst [vmem:[%s674_s3 + $0xa0] sm:$0xff] %v129_v55 }
  0xcc   :  { %v210_v57 = vpop.f32.mrf.mxu2  ;;  %v251_v58 = vpop.f32.mrf.mxu3  ;;  %281 = vst [vmem:[%s674_s3 + $0xa8] sm:$0xff] %v170_v56 }
  0xcd   :  { %v211_v59 = vadd.f32 %v210_v57, %v539_v11  ;;  %v252_v60 = vadd.f32 %v251_v58, %v541_v12 }
  0xcf   :  { %282 = vst [vmem:[%s674_s3 + $0xb0] sm:$0xff] %v211_v59 }
  0xd0   :  { %283 = vst [vmem:[%s674_s3 + $0xb8] sm:$0xff] %v252_v60  ;;  %v131_v61 = vpop.f32.mrf.mxu0  ;;  %v172_v62 = vpop.f32.mrf.mxu1 }
  0xd1   :  { %v132_v63 = vadd.f32 %v131_v61, %v535_v9  ;;  %v173_v0 = vadd.f32 %v172_v62, %v537_v10 }
  0xd3   :  { %284 = vst [vmem:[%s674_s3 + $0xc0] sm:$0xff] %v132_v63 }
  0xd4   :  { %v213_v1 = vpop.f32.mrf.mxu2  ;;  %v254_v2 = vpop.f32.mrf.mxu3  ;;  %285 = vst [vmem:[%s674_s3 + $0xc8] sm:$0xff] %v173_v0 }
  0xd5   :  { %v214_v3 = vadd.f32 %v213_v1, %v539_v11  ;;  %v255_v4 = vadd.f32 %v254_v2, %v541_v12 }
  0xd7   :  { %286 = vst [vmem:[%s674_s3 + $0xd0] sm:$0xff] %v214_v3 }
  0xd8   :  { %287 = vst [vmem:[%s674_s3 + $0xd8] sm:$0xff] %v255_v4  ;;  %v134_v5 = vpop.f32.mrf.mxu0  ;;  %v175_v6 = vpop.f32.mrf.mxu1 }
  0xd9   :  { %v135_v7 = vadd.f32 %v134_v5, %v535_v9  ;;  %v176_v8 = vadd.f32 %v175_v6, %v537_v10 }
  0xdb   :  { %288 = vst [vmem:[%s674_s3 + $0xe0] sm:$0xff] %v135_v7 }
  0xdc   :  { %v216_v13 = vpop.f32.mrf.mxu2  ;;  %v257_v14 = vpop.f32.mrf.mxu3  ;;  %289 = vst [vmem:[%s674_s3 + $0xe8] sm:$0xff] %v176_v8 }
  0xdd   :  { %v217_v15 = vadd.f32 %v216_v13, %v539_v11  ;;  %v258_v16 = vadd.f32 %v257_v14, %v541_v12 }
  0xdf   :  { %290 = vst [vmem:[%s674_s3 + $0xf0] sm:$0xff] %v217_v15 }
  0xe0   :  { %291 = vst [vmem:[%s674_s3 + $0xf8] sm:$0xff] %v258_v16 }

// kernel: rnn_encoder_forward.5
= control target key start
LH: loop header
LB: loop body
LE: loop exit
PB: predicated region body
PF: predicated region fallthrough
CT: control target
= control target key end

     0   :  { %v1539_v60 = vmov 0.0   ;;  %s2855_s1 = inlined_call_operand.vmem [shape: f32[128,512], index: 1, kind: input, shape index: {}]   ;;  %s2856_s0 = inlined_call_operand.vmem [shape: f32[8,8,512], index: 0, kind: input, shape index: {}]   ;;  %s2857_s2 = inlined_call_operand.vmem [shape: f32[8,8,128], index: 2, kind: output, shape index: {}]  }
   0x1   :  { %v1558_v0 = vld [vmem:[%s2855_s1 + $0x1e0] sm:$0xff]  ;;  %v1563_v1 = vld [vmem:[%s2855_s1 + $0x1e8] sm:$0xff]  ;;  %v1568_v2 = vld [vmem:[%s2855_s1 + $0x1f8] sm:$0xff] }
   0x2   :  { %2964 = vst [vmem:[#allocation4_spill] sm:$0xff] %v1568_v2  ;;  %87 = vmatpush.msra.mxu0 %v1558_v0  ;;  %107 = vmatpush.msra.mxu1 %v1563_v1  ;;  %v1575_v3 = vld [vmem:[%s2855_s1 + $0x1c0] sm:$0xff]  ;;  %v1580_v4 = vld [vmem:[%s2855_s1 + $0x1c8] sm:$0xff]  ;;  %v1585_v5 = vld [vmem:[%s2855_s1 + $0x1d8] sm:$0xff] }
   0x3   :  { %147 = vmatpush.msra.mxu3 %v1568_v2  ;;  %v1591_v6 = vld [vmem:[%s2855_s1 + $0x1a0] sm:$0xff]  ;;  %v1596_v7 = vld [vmem:[%s2855_s1 + $0x1a8] sm:$0xff]  ;;  %v1603_v8 = vld [vmem:[%s2855_s1 + $0x1b8] sm:$0xff] }
   0x4   :  { %88 = vmatpush.msra.mxu0 %v1575_v3  ;;  %108 = vmatpush.msra.mxu1 %v1580_v4  ;;  %v1609_v9 = vld [vmem:[%s2855_s1 + $0x180] sm:$0xff]  ;;  %v1614_v10 = vld [vmem:[%s2855_s1 + $0x188] sm:$0xff]  ;;  %v1621_v11 = vld [vmem:[%s2855_s1 + $0x198] sm:$0xff] }
   0x5   :  { %148 = vmatpush.msra.mxu3 %v1585_v5  ;;  %v1627_v12 = vld [vmem:[%s2855_s1 + $0x160] sm:$0xff]  ;;  %v1632_v13 = vld [vmem:[%s2855_s1 + $0x168] sm:$0xff]  ;;  %v1639_v14 = vld [vmem:[%s2855_s1 + $0x178] sm:$0xff] }
   0x6   :  { %89 = vmatpush.msra.mxu0 %v1591_v6  ;;  %109 = vmatpush.msra.mxu1 %v1596_v7  ;;  %v1645_v15 = vld [vmem:[%s2855_s1 + $0x140] sm:$0xff]  ;;  %v1650_v16 = vld [vmem:[%s2855_s1 + $0x148] sm:$0xff]  ;;  %v1655_v17 = vld [vmem:[%s2855_s1 + $0x1f0] sm:$0xff] }
   0x7   :  { %149 = vmatpush.msra.mxu3 %v1603_v8  ;;  %v1662_v18 = vld [vmem:[%s2855_s1 + $0x158] sm:$0xff]  ;;  %v1667_v19 = vld [vmem:[%s2855_s1 + $0x1d0] sm:$0xff]  ;;  %v1673_v20 = vld [vmem:[%s2855_s1 + $0x120] sm:$0xff]  ;;  %127 = vmatpush.msra.mxu2 %v1655_v17 }
   0x8   :  { %90 = vmatpush.msra.mxu0 %v1609_v9  ;;  %110 = vmatpush.msra.mxu1 %v1614_v10  ;;  %v1678_v21 = vld [vmem:[%s2855_s1 + $0x128] sm:$0xff]  ;;  %v1686_v22 = vld [vmem:[%s2855_s1 + $0x138] sm:$0xff]  ;;  %v1691_v23 = vld [vmem:[%s2855_s1 + $0x1b0] sm:$0xff] }
   0x9   :  { %150 = vmatpush.msra.mxu3 %v1621_v11  ;;  %v1697_v24 = vld [vmem:[%s2855_s1 + $0x100] sm:$0xff]  ;;  %v1702_v25 = vld [vmem:[%s2855_s1 + $0x108] sm:$0xff]  ;;  %128 = vmatpush.msra.mxu2 %v1667_v19  ;;  %v1710_v26 = vld [vmem:[%s2855_s1 + $0x118] sm:$0xff] }
   0xa   :  { %91 = vmatpush.msra.mxu0 %v1627_v12  ;;  %111 = vmatpush.msra.mxu1 %v1632_v13  ;;  %v1715_v27 = vld [vmem:[%s2855_s1 + $0x190] sm:$0xff]  ;;  %v1721_v28 = vld [vmem:[%s2855_s1 + $0xe0] sm:$0xff]  ;;  %v1726_v29 = vld [vmem:[%s2855_s1 + $0xe8] sm:$0xff] }
   0xb   :  { %151 = vmatpush.msra.mxu3 %v1639_v14  ;;  %129 = vmatpush.msra.mxu2 %v1691_v23  ;;  %v1734_v30 = vld [vmem:[%s2855_s1 + $0xf8] sm:$0xff]  ;;  %v1739_v31 = vld [vmem:[%s2855_s1 + $0x170] sm:$0xff]  ;;  %v1745_v32 = vld [vmem:[%s2855_s1 + $0xc0] sm:$0xff] }
   0xc   :  { %92 = vmatpush.msra.mxu0 %v1645_v15  ;;  %112 = vmatpush.msra.mxu1 %v1650_v16  ;;  %v1750_v33 = vld [vmem:[%s2855_s1 + $0xc8] sm:$0xff]  ;;  %v1758_v34 = vld [vmem:[%s2855_s1 + $0xd8] sm:$0xff]  ;;  %v1763_v35 = vld [vmem:[%s2855_s1 + $0x150] sm:$0xff] }
   0xd   :  { %152 = vmatpush.msra.mxu3 %v1662_v18  ;;  %130 = vmatpush.msra.mxu2 %v1715_v27  ;;  %2965 = vst [vmem:[#allocation5_spill] sm:$0xff] %v1758_v34  ;;  %v1769_v36 = vld [vmem:[%s2855_s1 + $0xa0] sm:$0xff]  ;;  %v1774_v37 = vld [vmem:[%s2855_s1 + $0xa8] sm:$0xff]  ;;  %v1782_v38 = vld [vmem:[%s2855_s1 + $0xb8] sm:$0xff] }
   0xe   :  { %93 = vmatpush.msra.mxu0 %v1673_v20  ;;  %113 = vmatpush.msra.mxu1 %v1678_v21  ;;  %2966 = vst [vmem:[#allocation6_spill] sm:$0xff] %v1769_v36  ;;  %v1787_v39 = vld [vmem:[%s2855_s1 + $0x130] sm:$0xff]  ;;  %v1793_v40 = vld [vmem:[%s2855_s1 + $0x80] sm:$0xff]  ;;  %v1798_v41 = vld [vmem:[%s2855_s1 + $0x88] sm:$0xff] }
   0xf   :  { %153 = vmatpush.msra.mxu3 %v1686_v22  ;;  %2967 = vst [vmem:[#allocation7_spill] sm:$0xff] %v1774_v37  ;;  %131 = vmatpush.msra.mxu2 %v1739_v31  ;;  %v1806_v42 = vld [vmem:[%s2855_s1 + $0x98] sm:$0xff]  ;;  %v1811_v43 = vld [vmem:[%s2855_s1 + $0x110] sm:$0xff]  ;;  %v1817_v44 = vld [vmem:[%s2855_s1 + $0x60] sm:$0xff] }
  0x10   :  { %94 = vmatpush.msra.mxu0 %v1697_v24  ;;  %114 = vmatpush.msra.mxu1 %v1702_v25  ;;  %2968 = vst [vmem:[#allocation8_spill] sm:$0xff] %v1782_v38  ;;  %v1822_v45 = vld [vmem:[%s2855_s1 + $0x68] sm:$0xff]  ;;  %v1830_v46 = vld [vmem:[%s2855_s1 + $0x78] sm:$0xff]  ;;  %v1835_v47 = vld [vmem:[%s2855_s1 + $0xf0] sm:$0xff] }
  0x11   :  { %154 = vmatpush.msra.mxu3 %v1710_v26  ;;  %2969 = vst [vmem:[#allocation9_spill] sm:$0xff] %v1793_v40  ;;  %132 = vmatpush.msra.mxu2 %v1763_v35  ;;  %v1841_v48 = vld [vmem:[%s2855_s1 + $0x40] sm:$0xff]  ;;  %v1846_v49 = vld [vmem:[%s2855_s1 + $0x48] sm:$0xff]  ;;  %v1854_v50 = vld [vmem:[%s2855_s1 + $0x58] sm:$0xff] }
  0x12   :  { %95 = vmatpush.msra.mxu0 %v1721_v28  ;;  %115 = vmatpush.msra.mxu1 %v1726_v29  ;;  %2970 = vst [vmem:[#allocation10_spill] sm:$0xff] %v1798_v41  ;;  %v1859_v51 = vld [vmem:[%s2855_s1 + $0xd0] sm:$0xff]  ;;  %v1865_v52 = vld [vmem:[%s2855_s1 + $0x20] sm:$0xff]  ;;  %v1870_v53 = vld [vmem:[%s2855_s1 + $0x28] sm:$0xff] }
  0x13   :  { %155 = vmatpush.msra.mxu3 %v1734_v30  ;;  %2971 = vst [vmem:[#allocation11_spill] sm:$0xff] %v1806_v42  ;;  %133 = vmatpush.msra.mxu2 %v1787_v39  ;;  %v1878_v54 = vld [vmem:[%s2855_s1 + $0x38] sm:$0xff]  ;;  %v1883_v55 = vld [vmem:[%s2855_s1 + $0xb0] sm:$0xff]  ;;  %v1889_v56 = vld [vmem:[%s2855_s1] sm:$0xff] }
  0x14   :  { %96 = vmatpush.msra.mxu0 %v1745_v32  ;;  %116 = vmatpush.msra.mxu1 %v1750_v33  ;;  %2972 = vst [vmem:[#allocation12_spill] sm:$0xff] %v1817_v44  ;;  %v1894_v57 = vld [vmem:[%s2855_s1 + $0x8] sm:$0xff]  ;;  %v1902_v58 = vld [vmem:[%s2855_s1 + $0x18] sm:$0xff]  ;;  %v1911_v59 = vld [vmem:[%s2855_s1 + $0x90] sm:$0xff] }
  0x15   :  { %156 = vmatpush.msra.mxu3 %v1758_v34  ;;  %2973 = vst [vmem:[#allocation13_spill] sm:$0xff] %v1822_v45  ;;  %134 = vmatpush.msra.mxu2 %v1811_v43  ;;  %v1917_v61 = vld [vmem:[%s2855_s1 + $0x70] sm:$0xff] }
  0x16   :  { %97 = vmatpush.msra.mxu0 %v1769_v36  ;;  %117 = vmatpush.msra.mxu1 %v1774_v37  ;;  %2974 = vst [vmem:[#allocation14_spill] sm:$0xff] %v1830_v46  ;;  %v1924_v62 = vld [vmem:[%s2855_s1 + $0x50] sm:$0xff] }
  0x17   :  { %157 = vmatpush.msra.mxu3 %v1782_v38  ;;  %2975 = vst [vmem:[#allocation15_spill] sm:$0xff] %v1841_v48  ;;  %135 = vmatpush.msra.mxu2 %v1835_v47  ;;  %v1933_v63 = vld [vmem:[%s2855_s1 + $0x30] sm:$0xff] }
  0x18   :  { %98 = vmatpush.msra.mxu0 %v1793_v40  ;;  %118 = vmatpush.msra.mxu1 %v1798_v41  ;;  %2976 = vst [vmem:[#allocation16_spill] sm:$0xff] %v1846_v49 }
  0x19   :  { %158 = vmatpush.msra.mxu3 %v1806_v42  ;;  %2977 = vst [vmem:[#allocation17_spill] sm:$0xff] %v1854_v50  ;;  %136 = vmatpush.msra.mxu2 %v1859_v51 }
  0x1a   :  { %99 = vmatpush.msra.mxu0 %v1817_v44  ;;  %119 = vmatpush.msra.mxu1 %v1822_v45  ;;  %2978 = vst [vmem:[#allocation18_spill] sm:$0xff] %v1859_v51 }
  0x1b   :  { %159 = vmatpush.msra.mxu3 %v1830_v46  ;;  %2979 = vst [vmem:[#allocation19_spill] sm:$0xff] %v1865_v52  ;;  %137 = vmatpush.msra.mxu2 %v1883_v55 }
  0x1c   :  { %2980 = vst [vmem:[#allocation20_spill] sm:$0xff] %v1870_v53  ;;  %100 = vmatpush.msra.mxu0 %v1841_v48  ;;  %120 = vmatpush.msra.mxu1 %v1846_v49 }
  0x1d   :  { %2981 = vst [vmem:[#allocation21_spill] sm:$0xff] %v1878_v54  ;;  %160 = vmatpush.msra.mxu3 %v1854_v50  ;;  %138 = vmatpush.msra.mxu2 %v1911_v59 }
  0x1e   :  { %2982 = vst [vmem:[#allocation22_spill] sm:$0xff] %v1883_v55  ;;  %101 = vmatpush.msra.mxu0 %v1865_v52  ;;  %121 = vmatpush.msra.mxu1 %v1870_v53 }
  0x1f   :  { %2983 = vst [vmem:[#allocation23_spill] sm:$0xff] %v1889_v56  ;;  %161 = vmatpush.msra.mxu3 %v1878_v54  ;;  %139 = vmatpush.msra.mxu2 %v1917_v61 }
  0x20   :  { %2984 = vst [vmem:[#allocation24_spill] sm:$0xff] %v1894_v57  ;;  %102 = vmatpush.msra.mxu0 %v1889_v56  ;;  %122 = vmatpush.msra.mxu1 %v1894_v57 }
  0x21   :  { %2985 = vst [vmem:[#allocation25_spill] sm:$0xff] %v1902_v58  ;;  %162 = vmatpush.msra.mxu3 %v1902_v58  ;;  %103 = vmatmul.f32.vlgmr.msra.gmra.mxu0 %v1539_v60 }
  0x22   :  { %2986 = vst [vmem:[#allocation26_spill] sm:$0xff] %v1911_v59  ;;  %123 = vmatmul.f32.vlgmr.msra.gmra.mxu1 %v1539_v60  ;;  %163 = vmatmul.f32.vlgmr.msra.gmra.mxu3 %v1539_v60 }
  0x23   :  { %2987 = vst [vmem:[#allocation27_spill] sm:$0xff] %v1917_v61  ;;  %236 = vmatpush.msrb.mxu0 %v1558_v0  ;;  %256 = vmatpush.msrb.mxu1 %v1563_v1 }
  0x24   :  { %2988 = vst [vmem:[#allocation28_spill] sm:$0xff] %v1924_v62  ;;  %296 = vmatpush.msrb.mxu3 %v1568_v2  ;;  %140 = vmatpush.msra.mxu2 %v1924_v62  ;;  %v1942_v2 = vld [vmem:[%s2855_s1 + $0x10] sm:$0xff] }
  0x25   :  { %237 = vmatpush.msrb.mxu0 %v1575_v3  ;;  %2989 = vst [vmem:[#allocation29_spill] sm:$0xff] %v1933_v63  ;;  %257 = vmatpush.msrb.mxu1 %v1580_v4 }
  0x26   :  { %297 = vmatpush.msrb.mxu3 %v1585_v5  ;;  %2990 = vst [vmem:[#allocation30_spill] sm:$0xff] %v1942_v2  ;;  %141 = vmatpush.msra.mxu2 %v1933_v63 }
  0x27   :  { %238 = vmatpush.msrb.mxu0 %v1591_v6  ;;  %258 = vmatpush.msrb.mxu1 %v1596_v7 }
  0x28   :  { %298 = vmatpush.msrb.mxu3 %v1603_v8  ;;  %142 = vmatpush.msra.mxu2 %v1942_v2 }
  0x29   :  { %239 = vmatpush.msrb.mxu0 %v1609_v9  ;;  %259 = vmatpush.msrb.mxu1 %v1614_v10 }
  0x2a   :  { %299 = vmatpush.msrb.mxu3 %v1621_v11  ;;  %143 = vmatmul.f32.vlgmr.msra.gmra.mxu2 %v1539_v60  ;;  %v2991_v60 = vld [vmem:[#allocation4_spill] sm:$0xff] }
  0x2b   :  { %240 = vmatpush.msrb.mxu0 %v1627_v12  ;;  %260 = vmatpush.msrb.mxu1 %v1632_v13 }
  0x2c   :  { %276 = vmatpush.msrb.mxu2 %v1655_v17  ;;  %300 = vmatpush.msrb.mxu3 %v1639_v14 }
  0x2d   :  { %241 = vmatpush.msrb.mxu0 %v1645_v15  ;;  %261 = vmatpush.msrb.mxu1 %v1650_v16 }
  0x2e   :  { %277 = vmatpush.msrb.mxu2 %v1667_v19  ;;  %301 = vmatpush.msrb.mxu3 %v1662_v18 }
  0x2f   :  { %242 = vmatpush.msrb.mxu0 %v1673_v20  ;;  %262 = vmatpush.msrb.mxu1 %v1678_v21 }
  0x30   :  { %278 = vmatpush.msrb.mxu2 %v1691_v23  ;;  %302 = vmatpush.msrb.mxu3 %v1686_v22 }
  0x31   :  { %243 = vmatpush.msrb.mxu0 %v1697_v24  ;;  %263 = vmatpush.msrb.mxu1 %v1702_v25 }
  0x32   :  { %279 = vmatpush.msrb.mxu2 %v1715_v27  ;;  %303 = vmatpush.msrb.mxu3 %v1710_v26 }
  0x33   :  { %244 = vmatpush.msrb.mxu0 %v1721_v28  ;;  %264 = vmatpush.msrb.mxu1 %v1726_v29 }
  0x34   :  { %280 = vmatpush.msrb.mxu2 %v1739_v31  ;;  %304 = vmatpush.msrb.mxu3 %v1734_v30 }
  0x35   :  { %245 = vmatpush.msrb.mxu0 %v1745_v32  ;;  %265 = vmatpush.msrb.mxu1 %v1750_v33 }
  0x36   :  { %281 = vmatpush.msrb.mxu2 %v1763_v35  ;;  %305 = vmatpush.msrb.mxu3 %v1758_v34 }
  0x37   :  { %246 = vmatpush.msrb.mxu0 %v1769_v36  ;;  %266 = vmatpush.msrb.mxu1 %v1774_v37 }
  0x38   :  { %282 = vmatpush.msrb.mxu2 %v1787_v39  ;;  %306 = vmatpush.msrb.mxu3 %v1782_v38 }
  0x39   :  { %247 = vmatpush.msrb.mxu0 %v1793_v40  ;;  %267 = vmatpush.msrb.mxu1 %v1798_v41 }
  0x3a   :  { %283 = vmatpush.msrb.mxu2 %v1811_v43  ;;  %307 = vmatpush.msrb.mxu3 %v1806_v42 }
  0x3b   :  { %248 = vmatpush.msrb.mxu0 %v1817_v44  ;;  %268 = vmatpush.msrb.mxu1 %v1822_v45 }
  0x3c   :  { %284 = vmatpush.msrb.mxu2 %v1835_v47  ;;  %308 = vmatpush.msrb.mxu3 %v1830_v46 }
  0x3d   :  { %249 = vmatpush.msrb.mxu0 %v1841_v48  ;;  %269 = vmatpush.msrb.mxu1 %v1846_v49 }
  0x3e   :  { %285 = vmatpush.msrb.mxu2 %v1859_v51  ;;  %309 = vmatpush.msrb.mxu3 %v1854_v50 }
  0x3f   :  { %250 = vmatpush.msrb.mxu0 %v1865_v52  ;;  %270 = vmatpush.msrb.mxu1 %v1870_v53 }
  0x40   :  { %286 = vmatpush.msrb.mxu2 %v1883_v55  ;;  %310 = vmatpush.msrb.mxu3 %v1878_v54 }
  0x41   :  { %251 = vmatpush.msrb.mxu0 %v1889_v56  ;;  %271 = vmatpush.msrb.mxu1 %v1894_v57 }
  0x42   :  { %287 = vmatpush.msrb.mxu2 %v1911_v59  ;;  %311 = vmatpush.msrb.mxu3 %v1902_v58 }
  0x43   :  { %386 = vmatpush.msra.mxu0 %v1558_v0  ;;  %406 = vmatpush.msra.mxu1 %v1563_v1 }
  0x44   :  { %288 = vmatpush.msrb.mxu2 %v1917_v61  ;;  %446 = vmatpush.msra.mxu3 %v2991_v60 }
  0x45   :  { %387 = vmatpush.msra.mxu0 %v1575_v3  ;;  %407 = vmatpush.msra.mxu1 %v1580_v4 }
  0x46   :  { %289 = vmatpush.msrb.mxu2 %v1924_v62  ;;  %447 = vmatpush.msra.mxu3 %v1585_v5 }
  0x47   :  { %388 = vmatpush.msra.mxu0 %v1591_v6  ;;  %408 = vmatpush.msra.mxu1 %v1596_v7 }
  0x48   :  { %290 = vmatpush.msrb.mxu2 %v1933_v63  ;;  %448 = vmatpush.msra.mxu3 %v1603_v8 }
  0x49   :  { %389 = vmatpush.msra.mxu0 %v1609_v9  ;;  %409 = vmatpush.msra.mxu1 %v1614_v10 }
  0x4a   :  { %291 = vmatpush.msrb.mxu2 %v1942_v2  ;;  %449 = vmatpush.msra.mxu3 %v1621_v11 }
  0x4b   :  { %390 = vmatpush.msra.mxu0 %v1627_v12  ;;  %410 = vmatpush.msra.mxu1 %v1632_v13 }
  0x4c   :  { %426 = vmatpush.msra.mxu2 %v1655_v17  ;;  %450 = vmatpush.msra.mxu3 %v1639_v14 }
  0x4d   :  { %391 = vmatpush.msra.mxu0 %v1645_v15  ;;  %411 = vmatpush.msra.mxu1 %v1650_v16 }
  0x4e   :  { %427 = vmatpush.msra.mxu2 %v1667_v19  ;;  %451 = vmatpush.msra.mxu3 %v1662_v18 }
  0x4f   :  { %392 = vmatpush.msra.mxu0 %v1673_v20  ;;  %412 = vmatpush.msra.mxu1 %v1678_v21 }
  0x50   :  { %428 = vmatpush.msra.mxu2 %v1691_v23  ;;  %452 = vmatpush.msra.mxu3 %v1686_v22 }
  0x51   :  { %393 = vmatpush.msra.mxu0 %v1697_v24  ;;  %413 = vmatpush.msra.mxu1 %v1702_v25 }
  0x52   :  { %429 = vmatpush.msra.mxu2 %v1715_v27  ;;  %453 = vmatpush.msra.mxu3 %v1710_v26 }
  0x53   :  { %394 = vmatpush.msra.mxu0 %v1721_v28  ;;  %414 = vmatpush.msra.mxu1 %v1726_v29 }
  0x54   :  { %430 = vmatpush.msra.mxu2 %v1739_v31  ;;  %454 = vmatpush.msra.mxu3 %v1734_v30 }
  0x55   :  { %395 = vmatpush.msra.mxu0 %v1745_v32  ;;  %415 = vmatpush.msra.mxu1 %v1750_v33 }
  0x56   :  { %431 = vmatpush.msra.mxu2 %v1763_v35  ;;  %455 = vmatpush.msra.mxu3 %v1758_v34 }
  0x57   :  { %396 = vmatpush.msra.mxu0 %v1769_v36  ;;  %416 = vmatpush.msra.mxu1 %v1774_v37 }
  0x58   :  { %432 = vmatpush.msra.mxu2 %v1787_v39  ;;  %456 = vmatpush.msra.mxu3 %v1782_v38 }
  0x59   :  { %397 = vmatpush.msra.mxu0 %v1793_v40  ;;  %417 = vmatpush.msra.mxu1 %v1798_v41 }
  0x5a   :  { %433 = vmatpush.msra.mxu2 %v1811_v43  ;;  %457 = vmatpush.msra.mxu3 %v1806_v42 }
  0x5b   :  { %398 = vmatpush.msra.mxu0 %v1817_v44  ;;  %418 = vmatpush.msra.mxu1 %v1822_v45 }
  0x5c   :  { %434 = vmatpush.msra.mxu2 %v1835_v47  ;;  %458 = vmatpush.msra.mxu3 %v1830_v46 }
  0x5d   :  { %399 = vmatpush.msra.mxu0 %v1841_v48  ;;  %419 = vmatpush.msra.mxu1 %v1846_v49 }
  0x5e   :  { %435 = vmatpush.msra.mxu2 %v1859_v51  ;;  %459 = vmatpush.msra.mxu3 %v1854_v50 }
  0x5f   :  { %400 = vmatpush.msra.mxu0 %v1865_v52  ;;  %420 = vmatpush.msra.mxu1 %v1870_v53 }
  0x60   :  { %436 = vmatpush.msra.mxu2 %v1883_v55  ;;  %460 = vmatpush.msra.mxu3 %v1878_v54  ;;  %v83_v54 = vld [vmem:[%s2856_s0] sm:$0xff] }
  0x61   :  { %401 = vmatpush.msra.mxu0 %v1889_v56  ;;  %421 = vmatpush.msra.mxu1 %v1894_v57  ;;  %v84_v56 = vld [vmem:[%s2856_s0 + $0x8] sm:$0xff] }
  0x62   :  { %437 = vmatpush.msra.mxu2 %v1911_v59  ;;  %461 = vmatpush.msra.mxu3 %v1902_v58 }
  0x64   :  { %438 = vmatpush.msra.mxu2 %v1917_v61 }
  0x66   :  { %439 = vmatpush.msra.mxu2 %v1924_v62 }
  0x68   :  { %440 = vmatpush.msra.mxu2 %v1933_v63  ;;  %v86_v63 = vld [vmem:[%s2856_s0 + $0x18] sm:$0xff] }
  0x6a   :  { %441 = vmatpush.msra.mxu2 %v1942_v2 }
  0x9e   :  { %v104_v53 = vpop.f32.mrf.mxu0 }
  0x9f   :  { %v105_v57 = vadd.f32 %v104_v53, %v83_v54  ;;  %v124_v52 = vpop.f32.mrf.mxu1 }
  0xa0   :  { %v125_v58 = vadd.f32 %v124_v52, %v84_v56  ;;  %v85_v52 = vld [vmem:[%s2856_s0 + $0x10] sm:$0xff] }
  0xa1   :  { %v1287_v50 = vmul.f32 -1.442695, %v105_v57 }
  0xa2   :  { %v1288_v49 = vmul.f32 -1.442695, %v125_v58 }
  0xa3   :  { %1347 = vpow2.f32 %v1287_v50 }
  0xa4   :  { %1349 = vpow2.f32 %v1288_v49 }
  0xa5   :  { %v164_v2 = vpop.f32.mrf.mxu3 }
  0xa6   :  { %v165_v62 = vadd.f32 %v164_v2, %v86_v63 }
  0xa8   :  { %v1289_v48 = vmul.f32 -1.442695, %v165_v62 }
  0xa9   :  { %v1348_v46 = vpop.eup %1347 }
  0xaa   :  { %v1350_v61 = vpop.eup %1349  ;;  %v170_v45 = vadd.f32 1.0, %v1348_v46  ;;  %1351 = vpow2.f32 %v1289_v48 }
  0xab   :  { %v189_v44 = vadd.f32 1.0, %v1350_v61 }
  0xac   :  { %1353 = vrcp.f32 %v170_v45  ;;  %v182_v48 = vand.u32 2147483648, %v170_v45  ;;  %v180_v42 = vand.u32 2147483647, %v170_v45  ;;  %vm176_vm2 = vweird.f32 %v170_v45 }
  0xad   :  { %1355 = vrcp.f32 %v189_v44  ;;  %v144_v50 = vpop.f32.mrf.mxu2  ;;  %v201_v61 = vand.u32 2147483648, %v189_v44  ;;  %v199_v41 = vand.u32 2147483647, %v189_v44  ;;  %vm195_vm3 = vweird.f32 %v189_v44 }
  0xae   :  { %v145_v54 = vadd.f32 %v144_v50, %v85_v52  ;;  %vm181_vm5 = vcmp.eq.f32.partialorder %v180_v42, 8.507059e+37 }
  0xaf   :  { %vm200_vm7 = vcmp.eq.f32.partialorder %v199_v41, 8.507059e+37 }
  0xb0   :  { %v1352_v53 = vpop.eup %1351 }
  0xb1   :  { %v209_v56 = vadd.f32 1.0, %v1352_v53  ;;  %v183_v53 = vor.u32 1.1754944e-38, %v182_v48  ;;  %v2999_v48 = vld [vmem:[#allocation10_spill] sm:$0xff] }
  0xb2   :  { %v1354_v57 = vpop.eup %1353 }
  0xb3   :  { %v1356_v49 = vpop.eup %1355  ;;  %v172_v58 = vmul.f32 %v1354_v57, %v170_v45  ;;  %1357 = vrcp.f32 %v209_v56  ;;  %vm177_vm0 = vweird.f32 %v1354_v57  ;;  %v221_v45 = vand.u32 2147483648, %v209_v56 }
  0xb4   :  { %v191_v2 = vmul.f32 %v1356_v49, %v189_v44  ;;  %1359 = vtanh.f32 %v145_v54  ;;  %vm196_vm1 = vweird.f32 %v1356_v49  ;;  %vm178_vm4 = vmor %vm176_vm2, %vm177_vm0  ;;  %v202_v54 = vor.u32 1.1754944e-38, %v201_v61  ;;  %v3000_v61 = vld [vmem:[#allocation26_spill] sm:$0xff] }
  0xb5   :  { %v173_v62 = vsub.f32 1.0, %v172_v58  ;;  %vm197_vm6 = vmor %vm195_vm3, %vm196_vm1  ;;  %vm215_vm9 = vweird.f32 %v209_v56  ;;  %v222_v42 = vor.u32 1.1754944e-38, %v221_v45  ;;  %v3010_v45 = vld [vmem:[#allocation19_spill] sm:$0xff] }
  0xb6   :  { %v192_v46 = vsub.f32 1.0, %v191_v2 }
  0xb7   :  { %v174_v63 = vmul.f32 %v1354_v57, %v173_v62 }
  0xb8   :  { %v193_v59 = vmul.f32 %v1356_v49, %v192_v46 }
  0xb9   :  { %v1358_v40 = vpop.eup %1357  ;;  %v175_v38 = vadd.f32 %v1354_v57, %v174_v63 }
  0xba   :  { %v1360_v52 = vpop.eup %1359  ;;  %v211_v50 = vmul.f32 %v1358_v40, %v209_v56  ;;  %v194_v55 = vadd.f32 %v1356_v49, %v193_v59  ;;  %vm216_vm8 = vweird.f32 %v1358_v40  ;;  %v219_v59 = vand.u32 2147483647, %v209_v56  ;;  %v2997_v56 = vld [vmem:[#allocation8_spill] sm:$0xff] }
  0xbb   :  { %v179_v58 = vsel %vm178_vm4, %v1354_v57, %v175_v38  ;;  %vm217_vm10 = vmor %vm215_vm9, %vm216_vm8 }
  0xbc   :  { %v212_v2 = vsub.f32 1.0, %v211_v50  ;;  %v184_v62 = vsel %vm181_vm5, %v183_v53, %v179_v58  ;;  %v198_v37 = vsel %vm197_vm6, %v1356_v49, %v194_v55  ;;  %vm220_vm11 = vcmp.eq.f32.partialorder %v219_v59, 8.507059e+37  ;;  %v2998_v49 = vld [vmem:[#allocation9_spill] sm:$0xff]  ;;  %v3002_v50 = vld [vmem:[#allocation12_spill] sm:$0xff]  ;;  %v3005_v58 = vld [vmem:[#allocation14_spill] sm:$0xff] }
  0xbd   :  { %v203_v46 = vsel %vm200_vm7, %v202_v54, %v198_v37  ;;  %v226_v36 = vmul.f32 %v1360_v52, %v184_v62  ;;  %v2994_v37 = vld [vmem:[#allocation6_spill] sm:$0xff]  ;;  %v3001_v52 = vld [vmem:[#allocation11_spill] sm:$0xff]  ;;  %v3003_v53 = vld [vmem:[#allocation13_spill] sm:$0xff] }
  0xbe   :  { %v213_v34 = vmul.f32 %v1358_v40, %v212_v2  ;;  %v225_v51 = vmul.f32 0.0, %v203_v46  ;;  %v3004_v54 = vld [vmem:[#allocation27_spill] sm:$0xff]  ;;  %v3007_v62 = vld [vmem:[#allocation16_spill] sm:$0xff] }
  0xbf   :  { %v3006_v2 = vld [vmem:[#allocation15_spill] sm:$0xff]  ;;  %v3008_v46 = vld [vmem:[#allocation28_spill] sm:$0xff] }
  0xc0   :  { %v2079_v63 = vadd.f32 %v226_v36, %v225_v51  ;;  %v214_v44 = vadd.f32 %v1358_v40, %v213_v34  ;;  %v2992_v34 = vld [vmem:[#allocation18_spill] sm:$0xff]  ;;  %v2993_v36 = vld [vmem:[#allocation5_spill] sm:$0xff]  ;;  %v3011_v59 = vld [vmem:[#allocation20_spill] sm:$0xff] }
  0xc1   :  { %v2996_v51 = vld [vmem:[#allocation22_spill] sm:$0xff] }
  0xc2   :  { %1361 = vtanh.f32 %v2079_v63  ;;  %v218_v38 = vsel %vm217_vm10, %v1358_v40, %v214_v44  ;;  %v2995_v40 = vld [vmem:[#allocation7_spill] sm:$0xff]  ;;  %v3009_v44 = vld [vmem:[#allocation17_spill] sm:$0xff] }
  0xc3   :  { %v223_v55 = vsel %vm220_vm11, %v222_v42, %v218_v38  ;;  %v3012_v38 = vld [vmem:[#allocation29_spill] sm:$0xff] }
  0xc4   :  { %v3013_v42 = vld [vmem:[#allocation21_spill] sm:$0xff] }
  0xc8   :  { %v1362_v57 = vpop.eup %1361 }
  0xc9   :  { %v229_v41 = vmul.f32 %v1362_v57, %v223_v55  ;;  %v3014_v57 = vld [vmem:[#allocation23_spill] sm:$0xff]  ;;  %v3015_v55 = vld [vmem:[#allocation24_spill] sm:$0xff] }
  0xcb   :  { %230 = vst [vmem:[%s2857_s2] sm:$0xff] %v229_v41  ;;  %252 = vmatmul.f32.vlgmr.msrb.gmra.mxu0 %v229_v41  ;;  %272 = vmatmul.f32.vlgmr.msrb.gmra.mxu1 %v229_v41 }
  0xcc   :  { %292 = vmatmul.f32.vlgmr.msrb.gmra.mxu2 %v229_v41  ;;  %312 = vmatmul.f32.vlgmr.msrb.gmra.mxu3 %v229_v41  ;;  %v3016_v41 = vld [vmem:[#allocation30_spill] sm:$0xff] }
  0xcd   :  { %536 = vmatpush.msrb.mxu0 %v1558_v0  ;;  %556 = vmatpush.msrb.mxu1 %v1563_v1 }
  0xce   :  { %576 = vmatpush.msrb.mxu2 %v1655_v17  ;;  %596 = vmatpush.msrb.mxu3 %v2991_v60 }
  0xcf   :  { %537 = vmatpush.msrb.mxu0 %v1575_v3  ;;  %557 = vmatpush.msrb.mxu1 %v1580_v4 }
  0xd0   :  { %577 = vmatpush.msrb.mxu2 %v1667_v19  ;;  %597 = vmatpush.msrb.mxu3 %v1585_v5 }
  0xd1   :  { %538 = vmatpush.msrb.mxu0 %v1591_v6  ;;  %558 = vmatpush.msrb.mxu1 %v1596_v7 }
  0xd2   :  { %578 = vmatpush.msrb.mxu2 %v1691_v23  ;;  %598 = vmatpush.msrb.mxu3 %v1603_v8 }
  0xd3   :  { %539 = vmatpush.msrb.mxu0 %v1609_v9  ;;  %559 = vmatpush.msrb.mxu1 %v1614_v10 }
  0xd4   :  { %579 = vmatpush.msrb.mxu2 %v1715_v27  ;;  %599 = vmatpush.msrb.mxu3 %v1621_v11 }
  0xd5   :  { %540 = vmatpush.msrb.mxu0 %v1627_v12  ;;  %560 = vmatpush.msrb.mxu1 %v1632_v13 }
  0xd6   :  { %580 = vmatpush.msrb.mxu2 %v1739_v31  ;;  %600 = vmatpush.msrb.mxu3 %v1639_v14 }
  0xd7   :  { %541 = vmatpush.msrb.mxu0 %v1645_v15  ;;  %561 = vmatpush.msrb.mxu1 %v1650_v16 }
  0xd8   :  { %581 = vmatpush.msrb.mxu2 %v1763_v35  ;;  %601 = vmatpush.msrb.mxu3 %v1662_v18 }
  0xd9   :  { %542 = vmatpush.msrb.mxu0 %v1673_v20  ;;  %562 = vmatpush.msrb.mxu1 %v1678_v21 }
  0xda   :  { %582 = vmatpush.msrb.mxu2 %v1787_v39  ;;  %602 = vmatpush.msrb.mxu3 %v1686_v22 }
  0xdb   :  { %543 = vmatpush.msrb.mxu0 %v1697_v24  ;;  %563 = vmatpush.msrb.mxu1 %v1702_v25 }
  0xdc   :  { %583 = vmatpush.msrb.mxu2 %v1811_v43  ;;  %603 = vmatpush.msrb.mxu3 %v1710_v26 }
  0xdd   :  { %544 = vmatpush.msrb.mxu0 %v1721_v28  ;;  %564 = vmatpush.msrb.mxu1 %v1726_v29 }
  0xde   :  { %584 = vmatpush.msrb.mxu2 %v1835_v47  ;;  %604 = vmatpush.msrb.mxu3 %v1734_v30 }
  0xdf   :  { %545 = vmatpush.msrb.mxu0 %v1745_v32  ;;  %565 = vmatpush.msrb.mxu1 %v1750_v33 }
  0xe0   :  { %585 = vmatpush.msrb.mxu2 %v2992_v34  ;;  %605 = vmatpush.msrb.mxu3 %v2993_v36 }
  0xe1   :  { %546 = vmatpush.msrb.mxu0 %v2994_v37  ;;  %566 = vmatpush.msrb.mxu1 %v2995_v40 }
  0xe2   :  { %586 = vmatpush.msrb.mxu2 %v2996_v51  ;;  %606 = vmatpush.msrb.mxu3 %v2997_v56 }
  0xe3   :  { %547 = vmatpush.msrb.mxu0 %v2998_v49  ;;  %567 = vmatpush.msrb.mxu1 %v2999_v48 }
  0xe4   :  { %587 = vmatpush.msrb.mxu2 %v3000_v61  ;;  %607 = vmatpush.msrb.mxu3 %v3001_v52 }
  0xe5   :  { %548 = vmatpush.msrb.mxu0 %v3002_v50  ;;  %568 = vmatpush.msrb.mxu1 %v3003_v53 }
  0xe6   :  { %588 = vmatpush.msrb.mxu2 %v3004_v54  ;;  %608 = vmatpush.msrb.mxu3 %v3005_v58 }
  0xe7   :  { %549 = vmatpush.msrb.mxu0 %v3006_v2  ;;  %569 = vmatpush.msrb.mxu1 %v3007_v62  ;;  %v3017_v2 = vld [vmem:[#allocation25_spill] sm:$0xff] }
  0xe8   :  { %589 = vmatpush.msrb.mxu2 %v3008_v46  ;;  %609 = vmatpush.msrb.mxu3 %v3009_v44  ;;  %v1290_v44 = vld [vmem:[%s2856_s0 + $0x20] sm:$0xff] }
  0xe9   :  { %550 = vmatpush.msrb.mxu0 %v3010_v45  ;;  %570 = vmatpush.msrb.mxu1 %v3011_v59  ;;  %v1291_v59 = vld [vmem:[%s2856_s0 + $0x28] sm:$0xff] }
  0xea   :  { %590 = vmatpush.msrb.mxu2 %v3012_v38  ;;  %610 = vmatpush.msrb.mxu3 %v3013_v42 }
  0xeb   :  { %551 = vmatpush.msrb.mxu0 %v3014_v57  ;;  %571 = vmatpush.msrb.mxu1 %v3015_v55 }
  0xec   :  { %591 = vmatpush.msrb.mxu2 %v3016_v41  ;;  %611 = vmatpush.msrb.mxu3 %v3017_v2  ;;  %v1293_v41 = vld [vmem:[%s2856_s0 + $0x38] sm:$0xff] }
 0x148   :  { %v253_v45 = vpop.f32.mrf.mxu0  ;;  %v273_v38 = vpop.f32.mrf.mxu1 }
 0x149   :  { %v254_v46 = vadd.f32 %v1290_v44, %v253_v45  ;;  %v274_v42 = vadd.f32 %v1291_v59, %v273_v38 }
 0x14b   :  { %v1294_v62 = vmul.f32 -1.442695, %v254_v46  ;;  %v1295_v57 = vmul.f32 -1.442695, %v274_v42  ;;  %v1292_v46 = vld [vmem:[%s2856_s0 + $0x30] sm:$0xff] }
 0x14d   :  { %1363 = vpow2.f32 %v1294_v62 }
 0x14e   :  { %1365 = vpow2.f32 %v1295_v57 }
 0x14f   :  { %v313_v2 = vpop.f32.mrf.mxu3  ;;  %v293_v62 = vpop.f32.mrf.mxu2 }
 0x150   :  { %v314_v55 = vadd.f32 %v1293_v41, %v313_v2  ;;  %v294_v38 = vadd.f32 %v1292_v46, %v293_v62 }
 0x152   :  { %v1296_v58 = vmul.f32 -1.442695, %v314_v55 }
 0x153   :  { %v1364_v54 = vpop.eup %1363 }
 0x154   :  { %v1366_v53 = vpop.eup %1365  ;;  %v319_v50 = vadd.f32 1.0, %v1364_v54  ;;  %1367 = vpow2.f32 %v1296_v58 }
 0x155   :  { %v338_v52 = vadd.f32 1.0, %v1366_v53 }
 0x156   :  { %1369 = vrcp.f32 %v319_v50  ;;  %v331_v54 = vand.u32 2147483648, %v319_v50  ;;  %v329_v61 = vand.u32 2147483647, %v319_v50  ;;  %vm325_vm14 = vweird.f32 %v319_v50 }
 0x157   :  { %1371 = vrcp.f32 %v338_v52  ;;  %v350_v53 = vand.u32 2147483648, %v338_v52  ;;  %v348_v49 = vand.u32 2147483647, %v338_v52  ;;  %vm344_vm15 = vweird.f32 %v338_v52 }
 0x158   :  { %v332_v46 = vor.u32 1.1754944e-38, %v331_v54  ;;  %vm330_vm2 = vcmp.eq.f32.partialorder %v329_v61, 8.507059e+37 }
 0x159   :  { %vm349_vm3 = vcmp.eq.f32.partialorder %v348_v49, 8.507059e+37 }
 0x15a   :  { %v1368_v44 = vpop.eup %1367 }
 0x15b   :  { %v358_v45 = vadd.f32 1.0, %v1368_v44 }
 0x15c   :  { %v1370_v59 = vpop.eup %1369 }
 0x15d   :  { %v1372_v42 = vpop.eup %1371  ;;  %v321_v57 = vmul.f32 %v1370_v59, %v319_v50  ;;  %1373 = vrcp.f32 %v358_v45  ;;  %vm326_vm12 = vweird.f32 %v1370_v59  ;;  %vm364_vm5 = vweird.f32 %v358_v45 }
 0x15e   :  { %v340_v2 = vmul.f32 %v1372_v42, %v338_v52  ;;  %1375 = vtanh.f32 %v294_v38  ;;  %vm345_vm13 = vweird.f32 %v1372_v42  ;;  %vm327_vm0 = vmor %vm325_vm14, %vm326_vm12 }
 0x15f   :  { %v322_v55 = vsub.f32 1.0, %v321_v57  ;;  %vm346_vm1 = vmor %vm344_vm15, %vm345_vm13  ;;  %v351_v57 = vor.u32 1.1754944e-38, %v350_v53 }
 0x160   :  { %v341_v41 = vsub.f32 1.0, %v340_v2 }
 0x161   :  { %v323_v58 = vmul.f32 %v1370_v59, %v322_v55 }
 0x162   :  { %v342_v48 = vmul.f32 %v1372_v42, %v341_v41 }
 0x163   :  { %v1374_v56 = vpop.eup %1373  ;;  %v324_v51 = vadd.f32 %v1370_v59, %v323_v58 }
 0x164   :  { %v343_v62 = vadd.f32 %v1372_v42, %v342_v48  ;;  %v360_v44 = vmul.f32 %v1374_v56, %v358_v45  ;;  %v1376_v38 = vpop.eup %1375  ;;  %vm365_vm4 = vweird.f32 %v1374_v56  ;;  %v370_v48 = vand.u32 2147483648, %v358_v45 }
 0x165   :  { %v328_v2 = vsel %vm327_vm0, %v1370_v59, %v324_v51  ;;  %v368_v51 = vand.u32 2147483647, %v358_v45  ;;  %vm366_vm6 = vmor %vm364_vm5, %vm365_vm4 }
 0x166   :  { %v333_v40 = vsel %vm330_vm2, %v332_v46, %v328_v2  ;;  %v347_v55 = vsel %vm346_vm1, %v1372_v42, %v343_v62  ;;  %v361_v37 = vsub.f32 1.0, %v360_v44  ;;  %v371_v59 = vor.u32 1.1754944e-38, %v370_v48 }
 0x167   :  { %v352_v41 = vsel %vm349_vm3, %v351_v57, %v347_v55  ;;  %v375_v36 = vmul.f32 %v1376_v38, %v333_v40  ;;  %vm369_vm7 = vcmp.eq.f32.partialorder %v368_v51, 8.507059e+37  ;;  %v1300_v40 = vld [vmem:[%s2856_s0 + $0x50] sm:$0xff] }
 0x168   :  { %v374_v34 = vmul.f32 %v352_v41, %v2079_v63  ;;  %v362_v58 = vmul.f32 %v1374_v56, %v361_v37 }
 0x16a   :  { %v2162_v50 = vadd.f32 %v375_v36, %v374_v34  ;;  %v363_v52 = vadd.f32 %v1374_v56, %v362_v58 }
 0x16c   :  { %1377 = vtanh.f32 %v2162_v50  ;;  %v367_v61 = vsel %vm366_vm6, %v1374_v56, %v363_v52 }
 0x16d   :  { %v372_v42 = vsel %vm369_vm7, %v371_v59, %v367_v61 }
 0x172   :  { %v1378_v49 = vpop.eup %1377 }
 0x173   :  { %v378_v54 = vmul.f32 %v1378_v49, %v372_v42 }
 0x175   :  { %1297 = vst [vmem:[%s2857_s2 + $0x8] sm:$0xff] %v378_v54  ;;  %402 = vmatmul.f32.vlgmr.msra.gmra.mxu0 %v378_v54  ;;  %422 = vmatmul.f32.vlgmr.msra.gmra.mxu1 %v378_v54 }
 0x176   :  { %442 = vmatmul.f32.vlgmr.msra.gmra.mxu2 %v378_v54  ;;  %462 = vmatmul.f32.vlgmr.msra.gmra.mxu3 %v378_v54 }
 0x177   :  { %686 = vmatpush.msra.mxu0 %v1558_v0  ;;  %706 = vmatpush.msra.mxu1 %v1563_v1  ;;  %v3018_v0 = vld [vmem:[#allocation18_spill] sm:$0xff]  ;;  %v3019_v1 = vld [vmem:[#allocation5_spill] sm:$0xff] }
 0x178   :  { %726 = vmatpush.msra.mxu2 %v1655_v17  ;;  %746 = vmatpush.msra.mxu3 %v2991_v60  ;;  %v3034_v17 = vld [vmem:[#allocation28_spill] sm:$0xff] }
 0x179   :  { %687 = vmatpush.msra.mxu0 %v1575_v3  ;;  %707 = vmatpush.msra.mxu1 %v1580_v4  ;;  %v3020_v3 = vld [vmem:[#allocation6_spill] sm:$0xff]  ;;  %v3021_v4 = vld [vmem:[#allocation7_spill] sm:$0xff] }
 0x17a   :  { %727 = vmatpush.msra.mxu2 %v1667_v19  ;;  %747 = vmatpush.msra.mxu3 %v1585_v5  ;;  %v3022_v5 = vld [vmem:[#allocation22_spill] sm:$0xff]  ;;  %v3036_v19 = vld [vmem:[#allocation19_spill] sm:$0xff] }
 0x17b   :  { %688 = vmatpush.msra.mxu0 %v1591_v6  ;;  %708 = vmatpush.msra.mxu1 %v1596_v7  ;;  %v3023_v6 = vld [vmem:[#allocation8_spill] sm:$0xff]  ;;  %v3024_v7 = vld [vmem:[#allocation9_spill] sm:$0xff] }
 0x17c   :  { %728 = vmatpush.msra.mxu2 %v1691_v23  ;;  %748 = vmatpush.msra.mxu3 %v1603_v8  ;;  %v3025_v8 = vld [vmem:[#allocation10_spill] sm:$0xff]  ;;  %v3040_v23 = vld [vmem:[#allocation23_spill] sm:$0xff] }
 0x17d   :  { %689 = vmatpush.msra.mxu0 %v1609_v9  ;;  %709 = vmatpush.msra.mxu1 %v1614_v10  ;;  %v3026_v9 = vld [vmem:[#allocation26_spill] sm:$0xff]  ;;  %v3027_v10 = vld [vmem:[#allocation11_spill] sm:$0xff] }
 0x17e   :  { %729 = vmatpush.msra.mxu2 %v1715_v27  ;;  %749 = vmatpush.msra.mxu3 %v1621_v11  ;;  %v3028_v11 = vld [vmem:[#allocation12_spill] sm:$0xff] }
 0x17f   :  { %690 = vmatpush.msra.mxu0 %v1627_v12  ;;  %710 = vmatpush.msra.mxu1 %v1632_v13  ;;  %v3029_v12 = vld [vmem:[#allocation13_spill] sm:$0xff]  ;;  %v3030_v13 = vld [vmem:[#allocation27_spill] sm:$0xff]  ;;  %v1298_v27 = vld [vmem:[%s2856_s0 + $0x40] sm:$0xff] }
 0x180   :  { %730 = vmatpush.msra.mxu2 %v1739_v31  ;;  %750 = vmatpush.msra.mxu3 %v1639_v14  ;;  %v3031_v14 = vld [vmem:[#allocation14_spill] sm:$0xff] }
 0x181   :  { %691 = vmatpush.msra.mxu0 %v1645_v15  ;;  %711 = vmatpush.msra.mxu1 %v1650_v16  ;;  %v3032_v15 = vld [vmem:[#allocation15_spill] sm:$0xff]  ;;  %v3033_v16 = vld [vmem:[#allocation16_spill] sm:$0xff] }
 0x182   :  { %731 = vmatpush.msra.mxu2 %v1763_v35  ;;  %751 = vmatpush.msra.mxu3 %v1662_v18  ;;  %v3035_v18 = vld [vmem:[#allocation17_spill] sm:$0xff] }
 0x183   :  { %692 = vmatpush.msra.mxu0 %v1673_v20  ;;  %712 = vmatpush.msra.mxu1 %v1678_v21  ;;  %v3037_v20 = vld [vmem:[#allocation20_spill] sm:$0xff]  ;;  %v3038_v21 = vld [vmem:[#allocation29_spill] sm:$0xff] }
 0x184   :  { %732 = vmatpush.msra.mxu2 %v1787_v39  ;;  %752 = vmatpush.msra.mxu3 %v1686_v22  ;;  %v3039_v22 = vld [vmem:[#allocation21_spill] sm:$0xff]  ;;  %v1301_v39 = vld [vmem:[%s2856_s0 + $0x58] sm:$0xff] }
 0x185   :  { %693 = vmatpush.msra.mxu0 %v1697_v24  ;;  %713 = vmatpush.msra.mxu1 %v1702_v25  ;;  %v3041_v24 = vld [vmem:[#allocation24_spill] sm:$0xff]  ;;  %v3042_v25 = vld [vmem:[#allocation30_spill] sm:$0xff] }
 0x186   :  { %733 = vmatpush.msra.mxu2 %v1811_v43  ;;  %753 = vmatpush.msra.mxu3 %v1710_v26  ;;  %v3043_v26 = vld [vmem:[#allocation25_spill] sm:$0xff] }
 0x187   :  { %694 = vmatpush.msra.mxu0 %v1721_v28  ;;  %714 = vmatpush.msra.mxu1 %v1726_v29  ;;  %v1299_v28 = vld [vmem:[%s2856_s0 + $0x48] sm:$0xff] }
 0x188   :  { %734 = vmatpush.msra.mxu2 %v1835_v47  ;;  %754 = vmatpush.msra.mxu3 %v1734_v30 }
 0x189   :  { %695 = vmatpush.msra.mxu0 %v1745_v32  ;;  %715 = vmatpush.msra.mxu1 %v1750_v33 }
 0x18a   :  { %735 = vmatpush.msra.mxu2 %v3018_v0  ;;  %755 = vmatpush.msra.mxu3 %v3019_v1 }
 0x18b   :  { %696 = vmatpush.msra.mxu0 %v3020_v3  ;;  %716 = vmatpush.msra.mxu1 %v3021_v4 }
 0x18c   :  { %736 = vmatpush.msra.mxu2 %v3022_v5  ;;  %756 = vmatpush.msra.mxu3 %v3023_v6 }
 0x18d   :  { %697 = vmatpush.msra.mxu0 %v3024_v7  ;;  %717 = vmatpush.msra.mxu1 %v3025_v8 }
 0x18e   :  { %737 = vmatpush.msra.mxu2 %v3026_v9  ;;  %757 = vmatpush.msra.mxu3 %v3027_v10 }
 0x18f   :  { %698 = vmatpush.msra.mxu0 %v3028_v11  ;;  %718 = vmatpush.msra.mxu1 %v3029_v12 }
 0x190   :  { %738 = vmatpush.msra.mxu2 %v3030_v13  ;;  %758 = vmatpush.msra.mxu3 %v3031_v14 }
 0x191   :  { %699 = vmatpush.msra.mxu0 %v3032_v15  ;;  %719 = vmatpush.msra.mxu1 %v3033_v16 }
 0x192   :  { %739 = vmatpush.msra.mxu2 %v3034_v17  ;;  %759 = vmatpush.msra.mxu3 %v3035_v18 }
 0x193   :  { %700 = vmatpush.msra.mxu0 %v3036_v19  ;;  %720 = vmatpush.msra.mxu1 %v3037_v20 }
 0x194   :  { %740 = vmatpush.msra.mxu2 %v3038_v21  ;;  %760 = vmatpush.msra.mxu3 %v3039_v22  ;;  %v2260_v21 = vld [vmem:[%s2855_s1 + $0x1e8] sm:$0xff]  ;;  %v2266_v22 = vld [vmem:[%s2855_s1 + $0x1f0] sm:$0xff] }
 0x195   :  { %701 = vmatpush.msra.mxu0 %v3040_v23  ;;  %721 = vmatpush.msra.mxu1 %v3041_v24  ;;  %v2272_v23 = vld [vmem:[%s2855_s1 + $0x1f8] sm:$0xff]  ;;  %v2278_v24 = vld [vmem:[%s2855_s1 + $0x1c0] sm:$0xff] }
 0x196   :  { %741 = vmatpush.msra.mxu2 %v3042_v25  ;;  %761 = vmatpush.msra.mxu3 %v3043_v26  ;;  %v2284_v25 = vld [vmem:[%s2855_s1 + $0x1c8] sm:$0xff]  ;;  %v2290_v26 = vld [vmem:[%s2855_s1 + $0x1d0] sm:$0xff] }
 0x1f2   :  { %v403_v29 = vpop.f32.mrf.mxu0  ;;  %v423_v30 = vpop.f32.mrf.mxu1 }
 0x1f3   :  { %v404_v31 = vadd.f32 %v1298_v27, %v403_v29  ;;  %v424_v32 = vadd.f32 %v1299_v28, %v423_v30  ;;  %v2296_v27 = vld [vmem:[%s2855_s1 + $0x1d8] sm:$0xff]  ;;  %v2302_v28 = vld [vmem:[%s2855_s1 + $0x1a0] sm:$0xff]  ;;  %v2308_v29 = vld [vmem:[%s2855_s1 + $0x1a8] sm:$0xff] }
 0x1f4   :  { %v2314_v30 = vld [vmem:[%s2855_s1 + $0x1b0] sm:$0xff] }
 0x1f5   :  { %v1302_v33 = vmul.f32 -1.442695, %v404_v31  ;;  %v1303_v35 = vmul.f32 -1.442695, %v424_v32  ;;  %v2320_v31 = vld [vmem:[%s2855_s1 + $0x1b8] sm:$0xff]  ;;  %v2326_v32 = vld [vmem:[%s2855_s1 + $0x180] sm:$0xff] }
 0x1f7   :  { %1379 = vpow2.f32 %v1302_v33  ;;  %v2332_v33 = vld [vmem:[%s2855_s1 + $0x188] sm:$0xff] }
 0x1f8   :  { %1381 = vpow2.f32 %v1303_v35  ;;  %v2338_v35 = vld [vmem:[%s2855_s1 + $0x190] sm:$0xff] }
 0x1f9   :  { %v463_v43 = vpop.f32.mrf.mxu3  ;;  %v443_v56 = vpop.f32.mrf.mxu2 }
 0x1fa   :  { %v464_v47 = vadd.f32 %v1301_v39, %v463_v43  ;;  %v444_v62 = vadd.f32 %v1300_v40, %v443_v56  ;;  %v2344_v39 = vld [vmem:[%s2855_s1 + $0x198] sm:$0xff]  ;;  %v2350_v43 = vld [vmem:[%s2855_s1 + $0x160] sm:$0xff] }
 0x1fb   :  { %v2392_v40 = vld [vmem:[%s2855_s1 + $0x158] sm:$0xff]  ;;  %v2398_v56 = vld [vmem:[%s2855_s1 + $0x120] sm:$0xff] }
 0x1fc   :  { %v1304_v60 = vmul.f32 -1.442695, %v464_v47  ;;  %v2356_v47 = vld [vmem:[%s2855_s1 + $0x168] sm:$0xff] }
 0x1fd   :  { %v1380_v63 = vpop.eup %1379 }
 0x1fe   :  { %v1382_v34 = vpop.eup %1381  ;;  %v469_v36 = vadd.f32 1.0, %v1380_v63  ;;  %1383 = vpow2.f32 %v1304_v60  ;;  %v2362_v60 = vld [vmem:[%s2855_s1 + $0x170] sm:$0xff]  ;;  %v2368_v63 = vld [vmem:[%s2855_s1 + $0x178] sm:$0xff] }
 0x1ff   :  { %v488_v37 = vadd.f32 1.0, %v1382_v34  ;;  %v2374_v34 = vld [vmem:[%s2855_s1 + $0x140] sm:$0xff] }
 0x200   :  { %1385 = vrcp.f32 %v469_v36  ;;  %v481_v41 = vand.u32 2147483648, %v469_v36  ;;  %v479_v48 = vand.u32 2147483647, %v469_v36  ;;  %vm475_vm10 = vweird.f32 %v469_v36 }
 0x201   :  { %1387 = vrcp.f32 %v488_v37  ;;  %v500_v58 = vand.u32 2147483648, %v488_v37  ;;  %v498_v61 = vand.u32 2147483647, %v488_v37  ;;  %vm494_vm11 = vweird.f32 %v488_v37 }
 0x202   :  { %v482_v42 = vor.u32 1.1754944e-38, %v481_v41  ;;  %vm480_vm14 = vcmp.eq.f32.partialorder %v479_v48, 8.507059e+37  ;;  %v2458_v41 = vld [vmem:[%s2855_s1 + $0xf0] sm:$0xff]  ;;  %v2476_v48 = vld [vmem:[%s2855_s1 + $0xc8] sm:$0xff] }
 0x203   :  { %v501_v1 = vor.u32 1.1754944e-38, %v500_v58  ;;  %vm499_vm15 = vcmp.eq.f32.partialorder %v498_v61, 8.507059e+37  ;;  %v2464_v58 = vld [vmem:[%s2855_s1 + $0xf8] sm:$0xff] }
 0x204   :  { %v1384_v45 = vpop.eup %1383  ;;  %v2488_v61 = vld [vmem:[%s2855_s1 + $0xd8] sm:$0xff] }
 0x205   :  { %v508_v53 = vadd.f32 1.0, %v1384_v45  ;;  %v2404_v45 = vld [vmem:[%s2855_s1 + $0x128] sm:$0xff]  ;;  %3045 = vst [vmem:[#allocation18_spill] sm:$0xff] %v2488_v61 }
 0x206   :  { %v1386_v46 = vpop.eup %1385 }
 0x207   :  { %v1388_v44 = vpop.eup %1387  ;;  %v471_v57 = vmul.f32 %v1386_v46, %v469_v36  ;;  %1389 = vrcp.f32 %v508_v53  ;;  %vm476_vm8 = vweird.f32 %v1386_v46  ;;  %v520_v14 = vand.u32 2147483648, %v508_v53  ;;  %v2380_v36 = vld [vmem:[%s2855_s1 + $0x148] sm:$0xff] }
 0x208   :  { %v490_v2 = vmul.f32 %v1388_v44, %v488_v37  ;;  %1391 = vtanh.f32 %v444_v62  ;;  %vm495_vm9 = vweird.f32 %v1388_v44  ;;  %vm477_vm12 = vmor %vm475_vm10, %vm476_vm8  ;;  %vm514_vm1 = vweird.f32 %v508_v53  ;;  %v2386_v37 = vld [vmem:[%s2855_s1 + $0x150] sm:$0xff]  ;;  %v2422_v62 = vld [vmem:[%s2855_s1 + $0x100] sm:$0xff] }
 0x209   :  { %v472_v38 = vsub.f32 1.0, %v471_v57  ;;  %vm496_vm13 = vmor %vm494_vm11, %vm495_vm9  ;;  %v518_v15 = vand.u32 2147483647, %v508_v53  ;;  %v521_v17 = vor.u32 1.1754944e-38, %v520_v14  ;;  %v2434_v57 = vld [vmem:[%s2855_s1 + $0x110] sm:$0xff]  ;;  %v2590_v14 = vld [vmem:[%s2855_s1 + $0x20] sm:$0xff] }
 0x20a   :  { %v491_v55 = vsub.f32 1.0, %v490_v2  ;;  %v2440_v2 = vld [vmem:[%s2855_s1 + $0x118] sm:$0xff]  ;;  %3062 = vst [vmem:[#allocation17_spill] sm:$0xff] %v2590_v14 }
 0x20b   :  { %v473_v52 = vmul.f32 %v1386_v46, %v472_v38  ;;  %vm519_vm3 = vcmp.eq.f32.partialorder %v518_v15, 8.507059e+37  ;;  %v2446_v38 = vld [vmem:[%s2855_s1 + $0xe0] sm:$0xff]  ;;  %v2596_v15 = vld [vmem:[%s2855_s1 + $0x28] sm:$0xff] }
 0x20c   :  { %v492_v51 = vmul.f32 %v1388_v44, %v491_v55  ;;  %v2452_v55 = vld [vmem:[%s2855_s1 + $0xe8] sm:$0xff]  ;;  %3063 = vst [vmem:[#allocation19_spill] sm:$0xff] %v2596_v15 }
 0x20d   :  { %v1390_v59 = vpop.eup %1389  ;;  %v474_v49 = vadd.f32 %v1386_v46, %v473_v52  ;;  %v2470_v52 = vld [vmem:[%s2855_s1 + $0xc0] sm:$0xff] }
 0x20e   :  { %v493_v54 = vadd.f32 %v1388_v44, %v492_v51  ;;  %v510_v0 = vmul.f32 %v1390_v59, %v508_v53  ;;  %v1392_v4 = vpop.eup %1391  ;;  %vm515_vm0 = vweird.f32 %v1390_v59  ;;  %v2410_v53 = vld [vmem:[%s2855_s1 + $0x130] sm:$0xff] }
 0x20f   :  { %v478_v3 = vsel %vm477_vm12, %v1386_v46, %v474_v49  ;;  %vm516_vm2 = vmor %vm514_vm1, %vm515_vm0  ;;  %v2416_v46 = vld [vmem:[%s2855_s1 + $0x138] sm:$0xff]  ;;  %v2482_v51 = vld [vmem:[%s2855_s1 + $0xd0] sm:$0xff] }
 0x210   :  { %v483_v5 = vsel %vm480_vm14, %v482_v42, %v478_v3  ;;  %v497_v6 = vsel %vm496_vm13, %v1388_v44, %v493_v54  ;;  %v511_v7 = vsub.f32 1.0, %v510_v0  ;;  %v2428_v44 = vld [vmem:[%s2855_s1 + $0x108] sm:$0xff]  ;;  %3044 = vst [vmem:[#allocation4_spill] sm:$0xff] %v2482_v51  ;;  %v2506_v42 = vld [vmem:[%s2855_s1 + $0xb0] sm:$0xff]  ;;  %v2512_v54 = vld [vmem:[%s2855_s1 + $0xb8] sm:$0xff] }
 0x211   :  { %v502_v8 = vsel %vm499_vm15, %v501_v1, %v497_v6  ;;  %v525_v9 = vmul.f32 %v1392_v4, %v483_v5  ;;  %v2500_v49 = vld [vmem:[%s2855_s1 + $0xa8] sm:$0xff]  ;;  %3048 = vst [vmem:[#allocation7_spill] sm:$0xff] %v2506_v42  ;;  %v2518_v0 = vld [vmem:[%s2855_s1 + $0x80] sm:$0xff]  ;;  %v2530_v3 = vld [vmem:[%s2855_s1 + $0x90] sm:$0xff] }
 0x212   :  { %v524_v10 = vmul.f32 %v502_v8, %v2162_v50  ;;  %v512_v11 = vmul.f32 %v1390_v59, %v511_v7  ;;  %v2254_v50 = vld [vmem:[%s2855_s1 + $0x1e0] sm:$0xff]  ;;  %3047 = vst [vmem:[#allocation6_spill] sm:$0xff] %v2500_v49  ;;  %v2524_v1 = vld [vmem:[%s2855_s1 + $0x88] sm:$0xff]  ;;  %v2536_v4 = vld [vmem:[%s2855_s1 + $0x98] sm:$0xff] }
 0x213   :  { %3049 = vst [vmem:[#allocation22_spill] sm:$0xff] %v2512_v54  ;;  %v2542_v5 = vld [vmem:[%s2855_s1 + $0x60] sm:$0xff]  ;;  %v2548_v6 = vld [vmem:[%s2855_s1 + $0x68] sm:$0xff]  ;;  %v2554_v7 = vld [vmem:[%s2855_s1 + $0x70] sm:$0xff] }
 0x214   :  { %v2245_v12 = vadd.f32 %v525_v9, %v524_v10  ;;  %v513_v13 = vadd.f32 %v1390_v59, %v512_v11  ;;  %3050 = vst [vmem:[#allocation8_spill] sm:$0xff] %v2518_v0  ;;  %v2560_v8 = vld [vmem:[%s2855_s1 + $0x78] sm:$0xff]  ;;  %v2566_v9 = vld [vmem:[%s2855_s1 + $0x40] sm:$0xff]  ;;  %v2572_v10 = vld [vmem:[%s2855_s1 + $0x48] sm:$0xff] }
 0x215   :  { %3051 = vst [vmem:[#allocation9_spill] sm:$0xff] %v2524_v1  ;;  %v2578_v11 = vld [vmem:[%s2855_s1 + $0x50] sm:$0xff] }
 0x216   :  { %1393 = vtanh.f32 %v2245_v12  ;;  %v517_v16 = vsel %vm516_vm2, %v1390_v59, %v513_v13  ;;  %v2494_v59 = vld [vmem:[%s2855_s1 + $0xa0] sm:$0xff]  ;;  %3052 = vst [vmem:[#allocation10_spill] sm:$0xff] %v2530_v3  ;;  %v2584_v13 = vld [vmem:[%s2855_s1 + $0x58] sm:$0xff] }
 0x217   :  { %v522_v19 = vsel %vm519_vm3, %v521_v17, %v517_v16  ;;  %3046 = vst [vmem:[#allocation5_spill] sm:$0xff] %v2494_v59  ;;  %v2602_v16 = vld [vmem:[%s2855_s1 + $0x30] sm:$0xff]  ;;  %v2608_v17 = vld [vmem:[%s2855_s1 + $0x38] sm:$0xff] }
 0x218   :  { %3053 = vst [vmem:[#allocation26_spill] sm:$0xff] %v2536_v4 }
 0x219   :  { %3054 = vst [vmem:[#allocation11_spill] sm:$0xff] %v2542_v5 }
 0x21a   :  { %3055 = vst [vmem:[#allocation12_spill] sm:$0xff] %v2548_v6 }
 0x21b   :  { %3056 = vst [vmem:[#allocation13_spill] sm:$0xff] %v2554_v7 }
 0x21c   :  { %v1394_v18 = vpop.eup %1393  ;;  %3057 = vst [vmem:[#allocation27_spill] sm:$0xff] %v2560_v8 }
 0x21d   :  { %v528_v20 = vmul.f32 %v1394_v18, %v522_v19  ;;  %3058 = vst [vmem:[#allocation14_spill] sm:$0xff] %v2566_v9  ;;  %v2614_v18 = vld [vmem:[%s2855_s1] sm:$0xff]  ;;  %v2620_v19 = vld [vmem:[%s2855_s1 + $0x8] sm:$0xff] }
 0x21e   :  { %3059 = vst [vmem:[#allocation15_spill] sm:$0xff] %v2572_v10 }
 0x21f   :  { %1305 = vst [vmem:[%s2857_s2 + $0x10] sm:$0xff] %v528_v20  ;;  %552 = vmatmul.f32.vlgmr.msrb.gmra.mxu0 %v528_v20  ;;  %572 = vmatmul.f32.vlgmr.msrb.gmra.mxu1 %v528_v20 }
 0x220   :  { %592 = vmatmul.f32.vlgmr.msrb.gmra.mxu2 %v528_v20  ;;  %612 = vmatmul.f32.vlgmr.msrb.gmra.mxu3 %v528_v20  ;;  %3060 = vst [vmem:[#allocation16_spill] sm:$0xff] %v2578_v11  ;;  %v2626_v20 = vld [vmem:[%s2855_s1 + $0x10] sm:$0xff] }
 0x221   :  { %836 = vmatpush.msrb.mxu0 %v2254_v50  ;;  %856 = vmatpush.msrb.mxu1 %v2260_v21  ;;  %3061 = vst [vmem:[#allocation28_spill] sm:$0xff] %v2584_v13 }
 0x222   :  { %876 = vmatpush.msrb.mxu2 %v2266_v22  ;;  %896 = vmatpush.msrb.mxu3 %v2272_v23  ;;  %3064 = vst [vmem:[#allocation20_spill] sm:$0xff] %v2602_v16 }
 0x223   :  { %837 = vmatpush.msrb.mxu0 %v2278_v24  ;;  %857 = vmatpush.msrb.mxu1 %v2284_v25  ;;  %3065 = vst [vmem:[#allocation29_spill] sm:$0xff] %v2608_v17 }
 0x224   :  { %877 = vmatpush.msrb.mxu2 %v2290_v26  ;;  %897 = vmatpush.msrb.mxu3 %v2296_v27  ;;  %3066 = vst [vmem:[#allocation21_spill] sm:$0xff] %v2614_v18 }
 0x225   :  { %838 = vmatpush.msrb.mxu0 %v2302_v28  ;;  %858 = vmatpush.msrb.mxu1 %v2308_v29  ;;  %3067 = vst [vmem:[#allocation23_spill] sm:$0xff] %v2620_v19 }
 0x226   :  { %878 = vmatpush.msrb.mxu2 %v2314_v30  ;;  %898 = vmatpush.msrb.mxu3 %v2320_v31  ;;  %3068 = vst [vmem:[#allocation24_spill] sm:$0xff] %v2626_v20 }
 0x227   :  { %839 = vmatpush.msrb.mxu0 %v2326_v32  ;;  %859 = vmatpush.msrb.mxu1 %v2332_v33 }
 0x228   :  { %879 = vmatpush.msrb.mxu2 %v2338_v35  ;;  %899 = vmatpush.msrb.mxu3 %v2344_v39 }
 0x229   :  { %840 = vmatpush.msrb.mxu0 %v2350_v43  ;;  %860 = vmatpush.msrb.mxu1 %v2356_v47 }
 0x22a   :  { %880 = vmatpush.msrb.mxu2 %v2362_v60  ;;  %900 = vmatpush.msrb.mxu3 %v2368_v63 }
 0x22b   :  { %841 = vmatpush.msrb.mxu0 %v2374_v34  ;;  %861 = vmatpush.msrb.mxu1 %v2380_v36 }
 0x22c   :  { %881 = vmatpush.msrb.mxu2 %v2386_v37  ;;  %901 = vmatpush.msrb.mxu3 %v2392_v40 }
 0x22d   :  { %842 = vmatpush.msrb.mxu0 %v2398_v56  ;;  %862 = vmatpush.msrb.mxu1 %v2404_v45 }
 0x22e   :  { %882 = vmatpush.msrb.mxu2 %v2410_v53  ;;  %902 = vmatpush.msrb.mxu3 %v2416_v46 }
 0x22f   :  { %843 = vmatpush.msrb.mxu0 %v2422_v62  ;;  %863 = vmatpush.msrb.mxu1 %v2428_v44 }
 0x230   :  { %883 = vmatpush.msrb.mxu2 %v2434_v57  ;;  %903 = vmatpush.msrb.mxu3 %v2440_v2 }
 0x231   :  { %844 = vmatpush.msrb.mxu0 %v2446_v38  ;;  %864 = vmatpush.msrb.mxu1 %v2452_v55 }
 0x232   :  { %884 = vmatpush.msrb.mxu2 %v2458_v41  ;;  %904 = vmatpush.msrb.mxu3 %v2464_v58 }
 0x233   :  { %845 = vmatpush.msrb.mxu0 %v2470_v52  ;;  %865 = vmatpush.msrb.mxu1 %v2476_v48 }
 0x234   :  { %885 = vmatpush.msrb.mxu2 %v2482_v51  ;;  %905 = vmatpush.msrb.mxu3 %v2488_v61 }
 0x235   :  { %846 = vmatpush.msrb.mxu0 %v2494_v59  ;;  %866 = vmatpush.msrb.mxu1 %v2500_v49 }
 0x236   :  { %886 = vmatpush.msrb.mxu2 %v2506_v42  ;;  %906 = vmatpush.msrb.mxu3 %v2512_v54 }
 0x237   :  { %847 = vmatpush.msrb.mxu0 %v2518_v0  ;;  %867 = vmatpush.msrb.mxu1 %v2524_v1 }
 0x238   :  { %887 = vmatpush.msrb.mxu2 %v2530_v3  ;;  %907 = vmatpush.msrb.mxu3 %v2536_v4 }
 0x239   :  { %848 = vmatpush.msrb.mxu0 %v2542_v5  ;;  %868 = vmatpush.msrb.mxu1 %v2548_v6 }
 0x23a   :  { %888 = vmatpush.msrb.mxu2 %v2554_v7  ;;  %908 = vmatpush.msrb.mxu3 %v2560_v8 }
 0x23b   :  { %849 = vmatpush.msrb.mxu0 %v2566_v9  ;;  %869 = vmatpush.msrb.mxu1 %v2572_v10  ;;  %v1309_v10 = vld [vmem:[%s2856_s0 + $0x78] sm:$0xff] }
 0x23c   :  { %889 = vmatpush.msrb.mxu2 %v2578_v11  ;;  %909 = vmatpush.msrb.mxu3 %v2584_v13 }
 0x23d   :  { %850 = vmatpush.msrb.mxu0 %v2590_v14  ;;  %870 = vmatpush.msrb.mxu1 %v2596_v15 }
 0x23e   :  { %890 = vmatpush.msrb.mxu2 %v2602_v16  ;;  %910 = vmatpush.msrb.mxu3 %v2608_v17  ;;  %v2632_v17 = vld [vmem:[%s2855_s1 + $0x18] sm:$0xff] }
 0x23f   :  { %851 = vmatpush.msrb.mxu0 %v2614_v18  ;;  %871 = vmatpush.msrb.mxu1 %v2620_v19  ;;  %3069 = vst [vmem:[#allocation30_spill] sm:$0xff] %v2632_v17  ;;  %v1306_v18 = vld [vmem:[%s2856_s0 + $0x60] sm:$0xff]  ;;  %v1307_v19 = vld [vmem:[%s2856_s0 + $0x68] sm:$0xff] }
 0x240   :  { %891 = vmatpush.msrb.mxu2 %v2626_v20  ;;  %911 = vmatpush.msrb.mxu3 %v2632_v17 }
 0x29c   :  { %v553_v16 = vpop.f32.mrf.mxu0  ;;  %v573_v15 = vpop.f32.mrf.mxu1 }
 0x29d   :  { %v554_v14 = vadd.f32 %v1306_v18, %v553_v16  ;;  %v574_v13 = vadd.f32 %v1307_v19, %v573_v15 }
 0x29f   :  { %v1310_v20 = vmul.f32 -1.442695, %v554_v14  ;;  %v1311_v11 = vmul.f32 -1.442695, %v574_v13  ;;  %v1308_v13 = vld [vmem:[%s2856_s0 + $0x70] sm:$0xff] }
 0x2a1   :  { %1395 = vpow2.f32 %v1310_v20 }
 0x2a2   :  { %1397 = vpow2.f32 %v1311_v11 }
 0x2a3   :  { %v613_v17 = vpop.f32.mrf.mxu3  ;;  %v593_v14 = vpop.f32.mrf.mxu2 }
 0x2a4   :  { %v614_v9 = vadd.f32 %v1309_v10, %v613_v17  ;;  %v594_v19 = vadd.f32 %v1308_v13, %v593_v14 }
 0x2a6   :  { %v1312_v8 = vmul.f32 -1.442695, %v614_v9 }
 0x2a7   :  { %v1396_v7 = vpop.eup %1395 }
 0x2a8   :  { %v1398_v6 = vpop.eup %1397  ;;  %v619_v5 = vadd.f32 1.0, %v1396_v7  ;;  %1399 = vpow2.f32 %v1312_v8 }
 0x2a9   :  { %v638_v4 = vadd.f32 1.0, %v1398_v6 }
 0x2aa   :  { %1401 = vrcp.f32 %v619_v5  ;;  %v631_v7 = vand.u32 2147483648, %v619_v5  ;;  %v629_v3 = vand.u32 2147483647, %v619_v5  ;;  %vm625_vm6 = vweird.f32 %v619_v5 }
 0x2ab   :  { %1403 = vrcp.f32 %v638_v4  ;;  %v650_v6 = vand.u32 2147483648, %v638_v4  ;;  %v648_v0 = vand.u32 2147483647, %v638_v4  ;;  %vm644_vm7 = vweird.f32 %v638_v4 }
 0x2ac   :  { %v632_v13 = vor.u32 1.1754944e-38, %v631_v7  ;;  %vm630_vm10 = vcmp.eq.f32.partialorder %v629_v3, 8.507059e+37 }
 0x2ad   :  { %vm649_vm11 = vcmp.eq.f32.partialorder %v648_v0, 8.507059e+37 }
 0x2ae   :  { %v1400_v15 = vpop.eup %1399 }
 0x2af   :  { %v658_v16 = vadd.f32 1.0, %v1400_v15 }
 0x2b0   :  { %v1402_v18 = vpop.eup %1401 }
 0x2b1   :  { %v1404_v11 = vpop.eup %1403  ;;  %v621_v20 = vmul.f32 %v1402_v18, %v619_v5  ;;  %1405 = vrcp.f32 %v658_v16  ;;  %vm626_vm4 = vweird.f32 %v1402_v18  ;;  %vm664_vm13 = vweird.f32 %v658_v16 }
 0x2b2   :  { %v640_v9 = vmul.f32 %v1404_v11, %v638_v4  ;;  %1407 = vtanh.f32 %v594_v19  ;;  %vm645_vm5 = vweird.f32 %v1404_v11  ;;  %vm627_vm8 = vmor %vm625_vm6, %vm626_vm4 }
 0x2b3   :  { %v622_v10 = vsub.f32 1.0, %v621_v20  ;;  %vm646_vm9 = vmor %vm644_vm7, %vm645_vm5  ;;  %v651_v20 = vor.u32 1.1754944e-38, %v650_v6  ;;  %v3077_v6 = vld [vmem:[#allocation9_spill] sm:$0xff] }
 0x2b4   :  { %v641_v17 = vsub.f32 1.0, %v640_v9 }
 0x2b5   :  { %v623_v8 = vmul.f32 %v1402_v18, %v622_v10 }
 0x2b6   :  { %v642_v1 = vmul.f32 %v1404_v11, %v641_v17 }
 0x2b7   :  { %v1406_v54 = vpop.eup %1405  ;;  %v624_v42 = vadd.f32 %v1402_v18, %v623_v8 }
 0x2b8   :  { %v643_v14 = vadd.f32 %v1404_v11, %v642_v1  ;;  %v660_v15 = vmul.f32 %v1406_v54, %v658_v16  ;;  %v1408_v19 = vpop.eup %1407  ;;  %vm665_vm12 = vweird.f32 %v1406_v54  ;;  %v670_v1 = vand.u32 2147483648, %v658_v16 }
 0x2b9   :  { %v628_v9 = vsel %vm627_vm8, %v1402_v18, %v624_v42  ;;  %v668_v42 = vand.u32 2147483647, %v658_v16  ;;  %vm666_vm14 = vmor %vm664_vm13, %vm665_vm12  ;;  %v3076_v16 = vld [vmem:[#allocation8_spill] sm:$0xff] }
 0x2ba   :  { %v633_v49 = vsel %vm630_vm10, %v632_v13, %v628_v9  ;;  %v647_v10 = vsel %vm646_vm9, %v1404_v11, %v643_v14  ;;  %v661_v59 = vsub.f32 1.0, %v660_v15  ;;  %v671_v18 = vor.u32 1.1754944e-38, %v670_v1  ;;  %v3078_v13 = vld [vmem:[#allocation10_spill] sm:$0xff]  ;;  %v3080_v15 = vld [vmem:[#allocation11_spill] sm:$0xff]  ;;  %v3082_v9 = vld [vmem:[#allocation13_spill] sm:$0xff] }
 0x2bb   :  { %v652_v17 = vsel %vm649_vm11, %v651_v20, %v647_v10  ;;  %v675_v61 = vmul.f32 %v1408_v19, %v633_v49  ;;  %vm669_vm15 = vcmp.eq.f32.partialorder %v668_v42, 8.507059e+37  ;;  %v3074_v49 = vld [vmem:[#allocation7_spill] sm:$0xff]  ;;  %v3079_v14 = vld [vmem:[#allocation26_spill] sm:$0xff]  ;;  %v3081_v20 = vld [vmem:[#allocation12_spill] sm:$0xff] }
 0x2bc   :  { %v674_v51 = vmul.f32 %v652_v17, %v2245_v12  ;;  %v662_v8 = vmul.f32 %v1406_v54, %v661_v59  ;;  %v3070_v12 = vld [vmem:[#allocation4_spill] sm:$0xff]  ;;  %v3073_v59 = vld [vmem:[#allocation6_spill] sm:$0xff]  ;;  %v3083_v19 = vld [vmem:[#allocation27_spill] sm:$0xff] }
 0x2bd   :  { %v3084_v10 = vld [vmem:[#allocation14_spill] sm:$0xff]  ;;  %v3085_v17 = vld [vmem:[#allocation15_spill] sm:$0xff]  ;;  %v3088_v1 = vld [vmem:[#allocation17_spill] sm:$0xff] }
 0x2be   :  { %v2648_v5 = vadd.f32 %v675_v61, %v674_v51  ;;  %v663_v4 = vadd.f32 %v1406_v54, %v662_v8  ;;  %v3071_v51 = vld [vmem:[#allocation18_spill] sm:$0xff]  ;;  %v3072_v61 = vld [vmem:[#allocation5_spill] sm:$0xff]  ;;  %v3086_v8 = vld [vmem:[#allocation16_spill] sm:$0xff] }
 0x2bf   :  { %v3089_v42 = vld [vmem:[#allocation19_spill] sm:$0xff] }
 0x2c0   :  { %1409 = vtanh.f32 %v2648_v5  ;;  %v667_v3 = vsel %vm666_vm14, %v1406_v54, %v663_v4  ;;  %v3075_v54 = vld [vmem:[#allocation22_spill] sm:$0xff]  ;;  %v3087_v4 = vld [vmem:[#allocation28_spill] sm:$0xff] }
 0x2c1   :  { %v672_v11 = vsel %vm669_vm15, %v671_v18, %v667_v3  ;;  %v3090_v3 = vld [vmem:[#allocation20_spill] sm:$0xff]  ;;  %v3091_v18 = vld [vmem:[#allocation29_spill] sm:$0xff] }
 0x2c6   :  { %v1410_v0 = vpop.eup %1409 }
 0x2c7   :  { %v678_v7 = vmul.f32 %v1410_v0, %v672_v11  ;;  %v3092_v0 = vld [vmem:[#allocation21_spill] sm:$0xff]  ;;  %v3093_v11 = vld [vmem:[#allocation23_spill] sm:$0xff] }
 0x2c9   :  { %1313 = vst [vmem:[%s2857_s2 + $0x18] sm:$0xff] %v678_v7  ;;  %702 = vmatmul.f32.vlgmr.msra.gmra.mxu0 %v678_v7  ;;  %722 = vmatmul.f32.vlgmr.msra.gmra.mxu1 %v678_v7 }
 0x2ca   :  { %742 = vmatmul.f32.vlgmr.msra.gmra.mxu2 %v678_v7  ;;  %762 = vmatmul.f32.vlgmr.msra.gmra.mxu3 %v678_v7  ;;  %v3094_v7 = vld [vmem:[#allocation24_spill] sm:$0xff] }
 0x2cb   :  { %986 = vmatpush.msra.mxu0 %v2254_v50  ;;  %1006 = vmatpush.msra.mxu1 %v2260_v21 }
 0x2cc   :  { %1026 = vmatpush.msra.mxu2 %v2266_v22  ;;  %1046 = vmatpush.msra.mxu3 %v2272_v23 }
 0x2cd   :  { %987 = vmatpush.msra.mxu0 %v2278_v24  ;;  %1007 = vmatpush.msra.mxu1 %v2284_v25 }
 0x2ce   :  { %1027 = vmatpush.msra.mxu2 %v2290_v26  ;;  %1047 = vmatpush.msra.mxu3 %v2296_v27 }
 0x2cf   :  { %988 = vmatpush.msra.mxu0 %v2302_v28  ;;  %1008 = vmatpush.msra.mxu1 %v2308_v29 }
 0x2d0   :  { %1028 = vmatpush.msra.mxu2 %v2314_v30  ;;  %1048 = vmatpush.msra.mxu3 %v2320_v31 }
 0x2d1   :  { %989 = vmatpush.msra.mxu0 %v2326_v32  ;;  %1009 = vmatpush.msra.mxu1 %v2332_v33 }
 0x2d2   :  { %1029 = vmatpush.msra.mxu2 %v2338_v35  ;;  %1049 = vmatpush.msra.mxu3 %v2344_v39 }
 0x2d3   :  { %990 = vmatpush.msra.mxu0 %v2350_v43  ;;  %1010 = vmatpush.msra.mxu1 %v2356_v47 }
 0x2d4   :  { %1030 = vmatpush.msra.mxu2 %v2362_v60  ;;  %1050 = vmatpush.msra.mxu3 %v2368_v63 }
 0x2d5   :  { %991 = vmatpush.msra.mxu0 %v2374_v34  ;;  %1011 = vmatpush.msra.mxu1 %v2380_v36 }
 0x2d6   :  { %1031 = vmatpush.msra.mxu2 %v2386_v37  ;;  %1051 = vmatpush.msra.mxu3 %v2392_v40 }
 0x2d7   :  { %992 = vmatpush.msra.mxu0 %v2398_v56  ;;  %1012 = vmatpush.msra.mxu1 %v2404_v45 }
 0x2d8   :  { %1032 = vmatpush.msra.mxu2 %v2410_v53  ;;  %1052 = vmatpush.msra.mxu3 %v2416_v46 }
 0x2d9   :  { %993 = vmatpush.msra.mxu0 %v2422_v62  ;;  %1013 = vmatpush.msra.mxu1 %v2428_v44 }
 0x2da   :  { %1033 = vmatpush.msra.mxu2 %v2434_v57  ;;  %1053 = vmatpush.msra.mxu3 %v2440_v2 }
 0x2db   :  { %994 = vmatpush.msra.mxu0 %v2446_v38  ;;  %1014 = vmatpush.msra.mxu1 %v2452_v55 }
 0x2dc   :  { %1034 = vmatpush.msra.mxu2 %v2458_v41  ;;  %1054 = vmatpush.msra.mxu3 %v2464_v58 }
 0x2dd   :  { %995 = vmatpush.msra.mxu0 %v2470_v52  ;;  %1015 = vmatpush.msra.mxu1 %v2476_v48 }
 0x2de   :  { %1035 = vmatpush.msra.mxu2 %v3070_v12  ;;  %1055 = vmatpush.msra.mxu3 %v3071_v51 }
 0x2df   :  { %996 = vmatpush.msra.mxu0 %v3072_v61  ;;  %1016 = vmatpush.msra.mxu1 %v3073_v59 }
 0x2e0   :  { %1036 = vmatpush.msra.mxu2 %v3074_v49  ;;  %1056 = vmatpush.msra.mxu3 %v3075_v54 }
 0x2e1   :  { %997 = vmatpush.msra.mxu0 %v3076_v16  ;;  %1017 = vmatpush.msra.mxu1 %v3077_v6 }
 0x2e2   :  { %1037 = vmatpush.msra.mxu2 %v3078_v13  ;;  %1057 = vmatpush.msra.mxu3 %v3079_v14 }
 0x2e3   :  { %998 = vmatpush.msra.mxu0 %v3080_v15  ;;  %1018 = vmatpush.msra.mxu1 %v3081_v20 }
 0x2e4   :  { %1038 = vmatpush.msra.mxu2 %v3082_v9  ;;  %1058 = vmatpush.msra.mxu3 %v3083_v19 }
 0x2e5   :  { %999 = vmatpush.msra.mxu0 %v3084_v10  ;;  %1019 = vmatpush.msra.mxu1 %v3085_v17  ;;  %v3095_v10 = vld [vmem:[#allocation30_spill] sm:$0xff] }
 0x2e6   :  { %1039 = vmatpush.msra.mxu2 %v3086_v8  ;;  %1059 = vmatpush.msra.mxu3 %v3087_v4  ;;  %v1314_v4 = vld [vmem:[%s2856_s0 + $0x80] sm:$0xff] }
 0x2e7   :  { %1000 = vmatpush.msra.mxu0 %v3088_v1  ;;  %1020 = vmatpush.msra.mxu1 %v3089_v42  ;;  %v1315_v42 = vld [vmem:[%s2856_s0 + $0x88] sm:$0xff] }
 0x2e8   :  { %1040 = vmatpush.msra.mxu2 %v3090_v3  ;;  %1060 = vmatpush.msra.mxu3 %v3091_v18 }
 0x2e9   :  { %1001 = vmatpush.msra.mxu0 %v3092_v0  ;;  %1021 = vmatpush.msra.mxu1 %v3093_v11 }
 0x2ea   :  { %1041 = vmatpush.msra.mxu2 %v3094_v7  ;;  %1061 = vmatpush.msra.mxu3 %v3095_v10  ;;  %v1317_v7 = vld [vmem:[%s2856_s0 + $0x98] sm:$0xff] }
 0x346   :  { %v703_v1 = vpop.f32.mrf.mxu0  ;;  %v723_v3 = vpop.f32.mrf.mxu1 }
 0x347   :  { %v704_v8 = vadd.f32 %v1314_v4, %v703_v1  ;;  %v724_v18 = vadd.f32 %v1315_v42, %v723_v3 }
 0x349   :  { %v1318_v17 = vmul.f32 -1.442695, %v704_v8  ;;  %v1319_v0 = vmul.f32 -1.442695, %v724_v18  ;;  %v1316_v8 = vld [vmem:[%s2856_s0 + $0x90] sm:$0xff] }
 0x34b   :  { %1411 = vpow2.f32 %v1318_v17 }
 0x34c   :  { %1413 = vpow2.f32 %v1319_v0 }
 0x34d   :  { %v763_v10 = vpop.f32.mrf.mxu3  ;;  %v743_v17 = vpop.f32.mrf.mxu2 }
 0x34e   :  { %v764_v11 = vadd.f32 %v1317_v7, %v763_v10  ;;  %v744_v3 = vadd.f32 %v1316_v8, %v743_v17 }
 0x350   :  { %v1320_v19 = vmul.f32 -1.442695, %v764_v11 }
 0x351   :  { %v1412_v9 = vpop.eup %1411 }
 0x352   :  { %v1414_v20 = vpop.eup %1413  ;;  %v769_v15 = vadd.f32 1.0, %v1412_v9  ;;  %1415 = vpow2.f32 %v1320_v19 }
 0x353   :  { %v788_v14 = vadd.f32 1.0, %v1414_v20 }
 0x354   :  { %1417 = vrcp.f32 %v769_v15  ;;  %v781_v9 = vand.u32 2147483648, %v769_v15  ;;  %v779_v13 = vand.u32 2147483647, %v769_v15  ;;  %vm775_vm2 = vweird.f32 %v769_v15 }
 0x355   :  { %1419 = vrcp.f32 %v788_v14  ;;  %v800_v20 = vand.u32 2147483648, %v788_v14  ;;  %v798_v16 = vand.u32 2147483647, %v788_v14  ;;  %vm794_vm3 = vweird.f32 %v788_v14 }
 0x356   :  { %v782_v8 = vor.u32 1.1754944e-38, %v781_v9  ;;  %vm780_vm6 = vcmp.eq.f32.partialorder %v779_v13, 8.507059e+37 }
 0x357   :  { %vm799_vm7 = vcmp.eq.f32.partialorder %v798_v16, 8.507059e+37 }
 0x358   :  { %v1416_v4 = vpop.eup %1415 }
 0x359   :  { %v808_v1 = vadd.f32 1.0, %v1416_v4 }
 0x35a   :  { %v1418_v42 = vpop.eup %1417 }
 0x35b   :  { %v1420_v18 = vpop.eup %1419  ;;  %v771_v0 = vmul.f32 %v1418_v42, %v769_v15  ;;  %1421 = vrcp.f32 %v808_v1  ;;  %vm776_vm0 = vweird.f32 %v1418_v42  ;;  %vm814_vm9 = vweird.f32 %v808_v1 }
 0x35c   :  { %v790_v10 = vmul.f32 %v1420_v18, %v788_v14  ;;  %1423 = vtanh.f32 %v744_v3  ;;  %vm795_vm1 = vweird.f32 %v1420_v18  ;;  %vm777_vm4 = vmor %vm775_vm2, %vm776_vm0 }
 0x35d   :  { %v772_v11 = vsub.f32 1.0, %v771_v0  ;;  %vm796_vm5 = vmor %vm794_vm3, %vm795_vm1  ;;  %v801_v0 = vor.u32 1.1754944e-38, %v800_v20 }
 0x35e   :  { %v791_v7 = vsub.f32 1.0, %v790_v10 }
 0x35f   :  { %v773_v19 = vmul.f32 %v1418_v42, %v772_v11 }
 0x360   :  { %v792_v6 = vmul.f32 %v1420_v18, %v791_v7 }
 0x361   :  { %v1422_v54 = vpop.eup %1421  ;;  %v774_v49 = vadd.f32 %v1418_v42, %v773_v19 }
 0x362   :  { %v793_v17 = vadd.f32 %v1420_v18, %v792_v6  ;;  %v810_v4 = vmul.f32 %v1422_v54, %v808_v1  ;;  %v1424_v3 = vpop.eup %1423  ;;  %vm815_vm8 = vweird.f32 %v1422_v54  ;;  %v820_v6 = vand.u32 2147483648, %v808_v1 }
 0x363   :  { %v778_v10 = vsel %vm777_vm4, %v1418_v42, %v774_v49  ;;  %v818_v49 = vand.u32 2147483647, %v808_v1  ;;  %vm816_vm10 = vmor %vm814_vm9, %vm815_vm8 }
 0x364   :  { %v783_v59 = vsel %vm780_vm6, %v782_v8, %v778_v10  ;;  %v797_v11 = vsel %vm796_vm5, %v1420_v18, %v793_v17  ;;  %v811_v61 = vsub.f32 1.0, %v810_v4  ;;  %v821_v42 = vor.u32 1.1754944e-38, %v820_v6 }
 0x365   :  { %v802_v7 = vsel %vm799_vm7, %v801_v0, %v797_v11  ;;  %v825_v51 = vmul.f32 %v1424_v3, %v783_v59  ;;  %vm819_vm11 = vcmp.eq.f32.partialorder %v818_v49, 8.507059e+37  ;;  %v1324_v59 = vld [vmem:[%s2856_s0 + $0xb0] sm:$0xff] }
 0x366   :  { %v824_v12 = vmul.f32 %v802_v7, %v2648_v5  ;;  %v812_v19 = vmul.f32 %v1422_v54, %v811_v61 }
 0x368   :  { %v2731_v15 = vadd.f32 %v825_v51, %v824_v12  ;;  %v813_v14 = vadd.f32 %v1422_v54, %v812_v19 }
 0x36a   :  { %1425 = vtanh.f32 %v2731_v15  ;;  %v817_v13 = vsel %vm816_vm10, %v1422_v54, %v813_v14 }
 0x36b   :  { %v822_v18 = vsel %vm819_vm11, %v821_v42, %v817_v13 }
 0x370   :  { %v1426_v16 = vpop.eup %1425 }
 0x371   :  { %v828_v9 = vmul.f32 %v1426_v16, %v822_v18 }
 0x373   :  { %1321 = vst [vmem:[%s2857_s2 + $0x20] sm:$0xff] %v828_v9  ;;  %852 = vmatmul.f32.vlgmr.msrb.gmra.mxu0 %v828_v9  ;;  %872 = vmatmul.f32.vlgmr.msrb.gmra.mxu1 %v828_v9 }
 0x374   :  { %892 = vmatmul.f32.vlgmr.msrb.gmra.mxu2 %v828_v9  ;;  %912 = vmatmul.f32.vlgmr.msrb.gmra.mxu3 %v828_v9 }
 0x375   :  { %1136 = vmatpush.msrb.mxu0 %v2254_v50  ;;  %1156 = vmatpush.msrb.mxu1 %v2260_v21  ;;  %v3096_v50 = vld [vmem:[#allocation4_spill] sm:$0xff]  ;;  %v3097_v21 = vld [vmem:[#allocation18_spill] sm:$0xff] }
 0x376   :  { %1176 = vmatpush.msrb.mxu2 %v2266_v22  ;;  %1196 = vmatpush.msrb.mxu3 %v2272_v23  ;;  %v3098_v22 = vld [vmem:[#allocation5_spill] sm:$0xff]  ;;  %v3099_v23 = vld [vmem:[#allocation6_spill] sm:$0xff] }
 0x377   :  { %1137 = vmatpush.msrb.mxu0 %v2278_v24  ;;  %1157 = vmatpush.msrb.mxu1 %v2284_v25  ;;  %v3100_v24 = vld [vmem:[#allocation7_spill] sm:$0xff]  ;;  %v3101_v25 = vld [vmem:[#allocation22_spill] sm:$0xff] }
 0x378   :  { %1177 = vmatpush.msrb.mxu2 %v2290_v26  ;;  %1197 = vmatpush.msrb.mxu3 %v2296_v27  ;;  %v3102_v26 = vld [vmem:[#allocation8_spill] sm:$0xff]  ;;  %v3103_v27 = vld [vmem:[#allocation9_spill] sm:$0xff] }
 0x379   :  { %1138 = vmatpush.msrb.mxu0 %v2302_v28  ;;  %1158 = vmatpush.msrb.mxu1 %v2308_v29  ;;  %v3104_v28 = vld [vmem:[#allocation10_spill] sm:$0xff] }
 0x37a   :  { %1178 = vmatpush.msrb.mxu2 %v2314_v30  ;;  %1198 = vmatpush.msrb.mxu3 %v2320_v31  ;;  %v3105_v29 = vld [vmem:[#allocation26_spill] sm:$0xff]  ;;  %v3106_v30 = vld [vmem:[#allocation11_spill] sm:$0xff]  ;;  %v3107_v31 = vld [vmem:[#allocation12_spill] sm:$0xff] }
 0x37b   :  { %1139 = vmatpush.msrb.mxu0 %v2326_v32  ;;  %1159 = vmatpush.msrb.mxu1 %v2332_v33  ;;  %v3108_v32 = vld [vmem:[#allocation13_spill] sm:$0xff]  ;;  %v3109_v33 = vld [vmem:[#allocation27_spill] sm:$0xff] }
 0x37c   :  { %1179 = vmatpush.msrb.mxu2 %v2338_v35  ;;  %1199 = vmatpush.msrb.mxu3 %v2344_v39  ;;  %v3110_v35 = vld [vmem:[#allocation14_spill] sm:$0xff]  ;;  %v3111_v39 = vld [vmem:[#allocation15_spill] sm:$0xff] }
 0x37d   :  { %1140 = vmatpush.msrb.mxu0 %v2350_v43  ;;  %1160 = vmatpush.msrb.mxu1 %v2356_v47  ;;  %v3112_v43 = vld [vmem:[#allocation16_spill] sm:$0xff] }
 0x37e   :  { %1180 = vmatpush.msrb.mxu2 %v2362_v60  ;;  %1200 = vmatpush.msrb.mxu3 %v2368_v63  ;;  %v3113_v47 = vld [vmem:[#allocation28_spill] sm:$0xff]  ;;  %v3114_v60 = vld [vmem:[#allocation17_spill] sm:$0xff]  ;;  %v3115_v63 = vld [vmem:[#allocation19_spill] sm:$0xff] }
 0x37f   :  { %1141 = vmatpush.msrb.mxu0 %v2374_v34  ;;  %1161 = vmatpush.msrb.mxu1 %v2380_v36  ;;  %v3116_v34 = vld [vmem:[#allocation20_spill] sm:$0xff]  ;;  %v3117_v36 = vld [vmem:[#allocation29_spill] sm:$0xff] }
 0x380   :  { %1181 = vmatpush.msrb.mxu2 %v2386_v37  ;;  %1201 = vmatpush.msrb.mxu3 %v2392_v40  ;;  %v3118_v37 = vld [vmem:[#allocation21_spill] sm:$0xff]  ;;  %v3119_v40 = vld [vmem:[#allocation23_spill] sm:$0xff] }
 0x381   :  { %1142 = vmatpush.msrb.mxu0 %v2398_v56  ;;  %1162 = vmatpush.msrb.mxu1 %v2404_v45  ;;  %v3120_v56 = vld [vmem:[#allocation24_spill] sm:$0xff]  ;;  %v3121_v45 = vld [vmem:[#allocation30_spill] sm:$0xff] }
 0x382   :  { %1182 = vmatpush.msrb.mxu2 %v2410_v53  ;;  %1202 = vmatpush.msrb.mxu3 %v2416_v46  ;;  %v1322_v53 = vld [vmem:[%s2856_s0 + $0xa0] sm:$0xff]  ;;  %v1323_v46 = vld [vmem:[%s2856_s0 + $0xa8] sm:$0xff] }
 0x383   :  { %1143 = vmatpush.msrb.mxu0 %v2422_v62  ;;  %1163 = vmatpush.msrb.mxu1 %v2428_v44 }
 0x384   :  { %1183 = vmatpush.msrb.mxu2 %v2434_v57  ;;  %1203 = vmatpush.msrb.mxu3 %v2440_v2 }
 0x385   :  { %1144 = vmatpush.msrb.mxu0 %v2446_v38  ;;  %1164 = vmatpush.msrb.mxu1 %v2452_v55 }
 0x386   :  { %1184 = vmatpush.msrb.mxu2 %v2458_v41  ;;  %1204 = vmatpush.msrb.mxu3 %v2464_v58  ;;  %v1325_v41 = vld [vmem:[%s2856_s0 + $0xb8] sm:$0xff] }
 0x387   :  { %1145 = vmatpush.msrb.mxu0 %v2470_v52  ;;  %1165 = vmatpush.msrb.mxu1 %v2476_v48 }
 0x388   :  { %1185 = vmatpush.msrb.mxu2 %v3096_v50  ;;  %1205 = vmatpush.msrb.mxu3 %v3097_v21 }
 0x389   :  { %1146 = vmatpush.msrb.mxu0 %v3098_v22  ;;  %1166 = vmatpush.msrb.mxu1 %v3099_v23 }
 0x38a   :  { %1186 = vmatpush.msrb.mxu2 %v3100_v24  ;;  %1206 = vmatpush.msrb.mxu3 %v3101_v25 }
 0x38b   :  { %1147 = vmatpush.msrb.mxu0 %v3102_v26  ;;  %1167 = vmatpush.msrb.mxu1 %v3103_v27 }
 0x38c   :  { %1187 = vmatpush.msrb.mxu2 %v3104_v28  ;;  %1207 = vmatpush.msrb.mxu3 %v3105_v29 }
 0x38d   :  { %1148 = vmatpush.msrb.mxu0 %v3106_v30  ;;  %1168 = vmatpush.msrb.mxu1 %v3107_v31 }
 0x38e   :  { %1188 = vmatpush.msrb.mxu2 %v3108_v32  ;;  %1208 = vmatpush.msrb.mxu3 %v3109_v33 }
 0x38f   :  { %1149 = vmatpush.msrb.mxu0 %v3110_v35  ;;  %1169 = vmatpush.msrb.mxu1 %v3111_v39 }
 0x390   :  { %1189 = vmatpush.msrb.mxu2 %v3112_v43  ;;  %1209 = vmatpush.msrb.mxu3 %v3113_v47 }
 0x391   :  { %1150 = vmatpush.msrb.mxu0 %v3114_v60  ;;  %1170 = vmatpush.msrb.mxu1 %v3115_v63 }
 0x392   :  { %1190 = vmatpush.msrb.mxu2 %v3116_v34  ;;  %1210 = vmatpush.msrb.mxu3 %v3117_v36  ;;  %v1331_v34 = vld [vmem:[%s2856_s0 + $0xc8] sm:$0xff] }
 0x393   :  { %1151 = vmatpush.msrb.mxu0 %v3118_v37  ;;  %1171 = vmatpush.msrb.mxu1 %v3119_v40 }
 0x394   :  { %1191 = vmatpush.msrb.mxu2 %v3120_v56  ;;  %1211 = vmatpush.msrb.mxu3 %v3121_v45 }
 0x3f0   :  { %v853_v62 = vpop.f32.mrf.mxu0  ;;  %v873_v44 = vpop.f32.mrf.mxu1 }
 0x3f1   :  { %v854_v57 = vadd.f32 %v1322_v53, %v853_v62  ;;  %v874_v2 = vadd.f32 %v1323_v46, %v873_v44  ;;  %v1333_v46 = vld [vmem:[%s2856_s0 + $0xd8] sm:$0xff] }
 0x3f3   :  { %v1326_v38 = vmul.f32 -1.442695, %v854_v57  ;;  %v1327_v55 = vmul.f32 -1.442695, %v874_v2 }
 0x3f5   :  { %1427 = vpow2.f32 %v1326_v38 }
 0x3f6   :  { %1429 = vpow2.f32 %v1327_v55 }
 0x3f7   :  { %v913_v58 = vpop.f32.mrf.mxu3  ;;  %v893_v54 = vpop.f32.mrf.mxu2 }
 0x3f8   :  { %v914_v52 = vadd.f32 %v1325_v41, %v913_v58  ;;  %v894_v17 = vadd.f32 %v1324_v59, %v893_v54  ;;  %v1332_v58 = vld [vmem:[%s2856_s0 + $0xd0] sm:$0xff] }
 0x3fa   :  { %v1328_v48 = vmul.f32 -1.442695, %v914_v52 }
 0x3fb   :  { %v1428_v5 = vpop.eup %1427 }
 0x3fc   :  { %v1430_v12 = vpop.eup %1429  ;;  %v919_v51 = vadd.f32 1.0, %v1428_v5  ;;  %1431 = vpow2.f32 %v1328_v48 }
 0x3fd   :  { %v938_v61 = vadd.f32 1.0, %v1430_v12 }
 0x3fe   :  { %1433 = vrcp.f32 %v919_v51  ;;  %v931_v7 = vand.u32 2147483648, %v919_v51  ;;  %v929_v6 = vand.u32 2147483647, %v919_v51  ;;  %vm925_vm14 = vweird.f32 %v919_v51 }
 0x3ff   :  { %1435 = vrcp.f32 %v938_v61  ;;  %v950_v19 = vand.u32 2147483648, %v938_v61  ;;  %v948_v13 = vand.u32 2147483647, %v938_v61  ;;  %vm944_vm15 = vweird.f32 %v938_v61 }
 0x400   :  { %v932_v18 = vor.u32 1.1754944e-38, %v931_v7  ;;  %vm930_vm2 = vcmp.eq.f32.partialorder %v929_v6, 8.507059e+37 }
 0x401   :  { %v951_v21 = vor.u32 1.1754944e-38, %v950_v19  ;;  %vm949_vm3 = vcmp.eq.f32.partialorder %v948_v13, 8.507059e+37 }
 0x402   :  { %v1432_v1 = vpop.eup %1431 }
 0x403   :  { %v958_v20 = vadd.f32 1.0, %v1432_v1 }
 0x404   :  { %v1434_v8 = vpop.eup %1433 }
 0x405   :  { %v1436_v4 = vpop.eup %1435  ;;  %v921_v0 = vmul.f32 %v1434_v8, %v919_v51  ;;  %1437 = vrcp.f32 %v958_v20  ;;  %vm926_vm12 = vweird.f32 %v1434_v8  ;;  %v970_v33 = vand.u32 2147483648, %v958_v20 }
 0x406   :  { %v940_v10 = vmul.f32 %v1436_v4, %v938_v61  ;;  %1439 = vtanh.f32 %v894_v17  ;;  %vm945_vm13 = vweird.f32 %v1436_v4  ;;  %vm927_vm0 = vmor %vm925_vm14, %vm926_vm12  ;;  %vm964_vm5 = vweird.f32 %v958_v20 }
 0x407   :  { %v922_v3 = vsub.f32 1.0, %v921_v0  ;;  %vm946_vm1 = vmor %vm944_vm15, %vm945_vm13  ;;  %v968_v35 = vand.u32 2147483647, %v958_v20  ;;  %v971_v43 = vor.u32 1.1754944e-38, %v970_v33 }
 0x408   :  { %v941_v11 = vsub.f32 1.0, %v940_v10 }
 0x409   :  { %v923_v14 = vmul.f32 %v1434_v8, %v922_v3  ;;  %vm969_vm7 = vcmp.eq.f32.partialorder %v968_v35, 8.507059e+37  ;;  %v1339_v35 = vld [vmem:[%s2856_s0 + $0xe8] sm:$0xff] }
 0x40a   :  { %v942_v49 = vmul.f32 %v1436_v4, %v941_v11 }
 0x40b   :  { %v1438_v42 = vpop.eup %1437  ;;  %v924_v16 = vadd.f32 %v1434_v8, %v923_v14 }
 0x40c   :  { %v943_v9 = vadd.f32 %v1436_v4, %v942_v49  ;;  %v960_v50 = vmul.f32 %v1438_v42, %v958_v20  ;;  %v1440_v23 = vpop.eup %1439  ;;  %vm965_vm4 = vweird.f32 %v1438_v42 }
 0x40d   :  { %v928_v22 = vsel %vm927_vm0, %v1434_v8, %v924_v16  ;;  %vm966_vm6 = vmor %vm964_vm5, %vm965_vm4 }
 0x40e   :  { %v933_v24 = vsel %vm930_vm2, %v932_v18, %v928_v22  ;;  %v947_v25 = vsel %vm946_vm1, %v1436_v4, %v943_v9  ;;  %v961_v26 = vsub.f32 1.0, %v960_v50 }
 0x40f   :  { %v952_v27 = vsel %vm949_vm3, %v951_v21, %v947_v25  ;;  %v975_v28 = vmul.f32 %v1440_v23, %v933_v24 }
 0x410   :  { %v974_v29 = vmul.f32 %v952_v27, %v2731_v15  ;;  %v962_v30 = vmul.f32 %v1438_v42, %v961_v26  ;;  %v1330_v15 = vld [vmem:[%s2856_s0 + $0xc0] sm:$0xff] }
 0x412   :  { %v2814_v31 = vadd.f32 %v975_v28, %v974_v29  ;;  %v963_v32 = vadd.f32 %v1438_v42, %v962_v30 }
 0x414   :  { %1441 = vtanh.f32 %v2814_v31  ;;  %v967_v39 = vsel %vm966_vm6, %v1438_v42, %v963_v32 }
 0x415   :  { %v972_v60 = vsel %vm969_vm7, %v971_v43, %v967_v39 }
 0x41a   :  { %v1442_v47 = vpop.eup %1441 }
 0x41b   :  { %v978_v63 = vmul.f32 %v1442_v47, %v972_v60 }
 0x41d   :  { %1329 = vst [vmem:[%s2857_s2 + $0x28] sm:$0xff] %v978_v63  ;;  %1002 = vmatmul.f32.vlgmr.msra.gmra.mxu0 %v978_v63  ;;  %1022 = vmatmul.f32.vlgmr.msra.gmra.mxu1 %v978_v63 }
 0x41e   :  { %1042 = vmatmul.f32.vlgmr.msra.gmra.mxu2 %v978_v63  ;;  %1062 = vmatmul.f32.vlgmr.msra.gmra.mxu3 %v978_v63 }
 0x49a   :  { %v1003_v36 = vpop.f32.mrf.mxu0  ;;  %v1023_v37 = vpop.f32.mrf.mxu1 }
 0x49b   :  { %v1004_v40 = vadd.f32 %v1330_v15, %v1003_v36  ;;  %v1024_v56 = vadd.f32 %v1331_v34, %v1023_v37  ;;  %v1341_v34 = vld [vmem:[%s2856_s0 + $0xf8] sm:$0xff] }
 0x49d   :  { %v1334_v45 = vmul.f32 -1.442695, %v1004_v40  ;;  %v1335_v53 = vmul.f32 -1.442695, %v1024_v56 }
 0x49f   :  { %1443 = vpow2.f32 %v1334_v45 }
 0x4a0   :  { %1445 = vpow2.f32 %v1335_v53 }
 0x4a1   :  { %v1063_v62 = vpop.f32.mrf.mxu3  ;;  %v1043_v52 = vpop.f32.mrf.mxu2 }
 0x4a2   :  { %v1064_v44 = vadd.f32 %v1333_v46, %v1063_v62  ;;  %v1044_v51 = vadd.f32 %v1332_v58, %v1043_v52  ;;  %v1340_v62 = vld [vmem:[%s2856_s0 + $0xf0] sm:$0xff] }
 0x4a4   :  { %v1336_v57 = vmul.f32 -1.442695, %v1064_v44 }
 0x4a5   :  { %v1444_v2 = vpop.eup %1443 }
 0x4a6   :  { %v1446_v38 = vpop.eup %1445  ;;  %v1069_v55 = vadd.f32 1.0, %v1444_v2  ;;  %1447 = vpow2.f32 %v1336_v57 }
 0x4a7   :  { %v1088_v41 = vadd.f32 1.0, %v1446_v38 }
 0x4a8   :  { %1449 = vrcp.f32 %v1069_v55  ;;  %v1081_v8 = vand.u32 2147483648, %v1069_v55  ;;  %v1079_v0 = vand.u32 2147483647, %v1069_v55  ;;  %vm1075_vm10 = vweird.f32 %v1069_v55 }
 0x4a9   :  { %1451 = vrcp.f32 %v1088_v41  ;;  %v1100_v17 = vand.u32 2147483648, %v1088_v41  ;;  %v1098_v3 = vand.u32 2147483647, %v1088_v41  ;;  %vm1094_vm11 = vweird.f32 %v1088_v41 }
 0x4aa   :  { %v1082_v19 = vor.u32 1.1754944e-38, %v1081_v8  ;;  %vm1080_vm14 = vcmp.eq.f32.partialorder %v1079_v0, 8.507059e+37 }
 0x4ab   :  { %v1101_v49 = vor.u32 1.1754944e-38, %v1100_v17  ;;  %vm1099_vm15 = vcmp.eq.f32.partialorder %v1098_v3, 8.507059e+37 }
 0x4ac   :  { %v1448_v48 = vpop.eup %1447 }
 0x4ad   :  { %v1108_v5 = vadd.f32 1.0, %v1448_v48 }
 0x4ae   :  { %v1450_v12 = vpop.eup %1449 }
 0x4af   :  { %v1452_v61 = vpop.eup %1451  ;;  %v1071_v59 = vmul.f32 %v1450_v12, %v1069_v55  ;;  %1453 = vrcp.f32 %v1108_v5  ;;  %vm1076_vm8 = vweird.f32 %v1450_v12  ;;  %v1120_v26 = vand.u32 2147483648, %v1108_v5 }
 0x4b0   :  { %v1090_v54 = vmul.f32 %v1452_v61, %v1088_v41  ;;  %1455 = vtanh.f32 %v1044_v51  ;;  %vm1095_vm9 = vweird.f32 %v1452_v61  ;;  %vm1077_vm12 = vmor %vm1075_vm10, %vm1076_vm8  ;;  %vm1114_vm1 = vweird.f32 %v1108_v5 }
 0x4b1   :  { %v1072_v1 = vsub.f32 1.0, %v1071_v59  ;;  %vm1096_vm13 = vmor %vm1094_vm11, %vm1095_vm9  ;;  %v1118_v27 = vand.u32 2147483647, %v1108_v5  ;;  %v1121_v29 = vor.u32 1.1754944e-38, %v1120_v26 }
 0x4b2   :  { %v1091_v20 = vsub.f32 1.0, %v1090_v54 }
 0x4b3   :  { %v1073_v4 = vmul.f32 %v1450_v12, %v1072_v1  ;;  %vm1119_vm3 = vcmp.eq.f32.partialorder %v1118_v27, 8.507059e+37 }
 0x4b4   :  { %v1092_v10 = vmul.f32 %v1452_v61, %v1091_v20 }
 0x4b5   :  { %v1454_v11 = vpop.eup %1453  ;;  %v1074_v7 = vadd.f32 %v1450_v12, %v1073_v4 }
 0x4b6   :  { %v1093_v14 = vadd.f32 %v1452_v61, %v1092_v10  ;;  %v1110_v6 = vmul.f32 %v1454_v11, %v1108_v5  ;;  %v1456_v42 = vpop.eup %1455  ;;  %vm1115_vm0 = vweird.f32 %v1454_v11 }
 0x4b7   :  { %v1078_v13 = vsel %vm1077_vm12, %v1450_v12, %v1074_v7  ;;  %vm1116_vm2 = vmor %vm1114_vm1, %vm1115_vm0 }
 0x4b8   :  { %v1083_v16 = vsel %vm1080_vm14, %v1082_v19, %v1078_v13  ;;  %v1097_v18 = vsel %vm1096_vm13, %v1452_v61, %v1093_v14  ;;  %v1111_v9 = vsub.f32 1.0, %v1110_v6 }
 0x4b9   :  { %v1102_v50 = vsel %vm1099_vm15, %v1101_v49, %v1097_v18  ;;  %v1125_v21 = vmul.f32 %v1456_v42, %v1083_v16 }
 0x4ba   :  { %v1124_v22 = vmul.f32 %v1102_v50, %v2814_v31  ;;  %v1112_v23 = vmul.f32 %v1454_v11, %v1111_v9  ;;  %v1338_v31 = vld [vmem:[%s2856_s0 + $0xe0] sm:$0xff] }
 0x4bc   :  { %v2833_v24 = vadd.f32 %v1125_v21, %v1124_v22  ;;  %v1113_v25 = vadd.f32 %v1454_v11, %v1112_v23 }
 0x4be   :  { %1457 = vtanh.f32 %v2833_v24  ;;  %v1117_v28 = vsel %vm1116_vm2, %v1454_v11, %v1113_v25 }
 0x4bf   :  { %v1122_v32 = vsel %vm1119_vm3, %v1121_v29, %v1117_v28 }
 0x4c4   :  { %v1458_v30 = vpop.eup %1457 }
 0x4c5   :  { %v1128_v33 = vmul.f32 %v1458_v30, %v1122_v32 }
 0x4c7   :  { %1337 = vst [vmem:[%s2857_s2 + $0x30] sm:$0xff] %v1128_v33  ;;  %1152 = vmatmul.f32.vlgmr.msrb.gmra.mxu0 %v1128_v33  ;;  %1172 = vmatmul.f32.vlgmr.msrb.gmra.mxu1 %v1128_v33 }
 0x4c8   :  { %1192 = vmatmul.f32.vlgmr.msrb.gmra.mxu2 %v1128_v33  ;;  %1212 = vmatmul.f32.vlgmr.msrb.gmra.mxu3 %v1128_v33 }
 0x544   :  { %v1153_v39 = vpop.f32.mrf.mxu0  ;;  %v1173_v43 = vpop.f32.mrf.mxu1 }
 0x545   :  { %v1154_v47 = vadd.f32 %v1338_v31, %v1153_v39  ;;  %v1174_v60 = vadd.f32 %v1339_v35, %v1173_v43 }
 0x547   :  { %v1342_v63 = vmul.f32 -1.442695, %v1154_v47  ;;  %v1343_v15 = vmul.f32 -1.442695, %v1174_v60 }
 0x549   :  { %1459 = vpow2.f32 %v1342_v63 }
 0x54a   :  { %1461 = vpow2.f32 %v1343_v15 }
 0x54b   :  { %v1213_v36 = vpop.f32.mrf.mxu3  ;;  %v1193_v44 = vpop.f32.mrf.mxu2 }
 0x54c   :  { %v1214_v37 = vadd.f32 %v1341_v34, %v1213_v36  ;;  %v1194_v55 = vadd.f32 %v1340_v62, %v1193_v44 }
 0x54e   :  { %v1344_v40 = vmul.f32 -1.442695, %v1214_v37 }
 0x54f   :  { %v1460_v56 = vpop.eup %1459 }
 0x550   :  { %v1462_v45 = vpop.eup %1461  ;;  %v1219_v53 = vadd.f32 1.0, %v1460_v56  ;;  %1463 = vpow2.f32 %v1344_v40 }
 0x551   :  { %v1238_v46 = vadd.f32 1.0, %v1462_v45 }
 0x552   :  { %1465 = vrcp.f32 %v1219_v53  ;;  %v1231_v12 = vand.u32 2147483648, %v1219_v53  ;;  %v1229_v59 = vand.u32 2147483647, %v1219_v53  ;;  %vm1225_vm6 = vweird.f32 %v1219_v53 }
 0x553   :  { %1467 = vrcp.f32 %v1238_v46  ;;  %v1250_v51 = vand.u32 2147483648, %v1238_v46  ;;  %v1248_v1 = vand.u32 2147483647, %v1238_v46  ;;  %vm1244_vm7 = vweird.f32 %v1238_v46 }
 0x554   :  { %v1232_v17 = vor.u32 1.1754944e-38, %v1231_v12  ;;  %vm1230_vm10 = vcmp.eq.f32.partialorder %v1229_v59, 8.507059e+37 }
 0x555   :  { %v1251_v10 = vor.u32 1.1754944e-38, %v1250_v51  ;;  %vm1249_vm11 = vcmp.eq.f32.partialorder %v1248_v1, 8.507059e+37 }
 0x556   :  { %v1464_v57 = vpop.eup %1463 }
 0x557   :  { %v1258_v2 = vadd.f32 1.0, %v1464_v57 }
 0x558   :  { %v1466_v38 = vpop.eup %1465 }
 0x559   :  { %v1468_v41 = vpop.eup %1467  ;;  %v1221_v58 = vmul.f32 %v1466_v38, %v1219_v53  ;;  %1469 = vrcp.f32 %v1258_v2  ;;  %vm1226_vm4 = vweird.f32 %v1466_v38  ;;  %v1270_v9 = vand.u32 2147483648, %v1258_v2 }
 0x55a   :  { %v1240_v52 = vmul.f32 %v1468_v41, %v1238_v46  ;;  %1471 = vtanh.f32 %v1194_v55  ;;  %vm1245_vm5 = vweird.f32 %v1468_v41  ;;  %vm1227_vm8 = vmor %vm1225_vm6, %vm1226_vm4  ;;  %vm1264_vm13 = vweird.f32 %v1258_v2 }
 0x55b   :  { %v1222_v48 = vsub.f32 1.0, %v1221_v58  ;;  %vm1246_vm9 = vmor %vm1244_vm7, %vm1245_vm5  ;;  %v1268_v50 = vand.u32 2147483647, %v1258_v2  ;;  %v1271_v22 = vor.u32 1.1754944e-38, %v1270_v9 }
 0x55c   :  { %v1241_v5 = vsub.f32 1.0, %v1240_v52 }
 0x55d   :  { %v1223_v61 = vmul.f32 %v1466_v38, %v1222_v48  ;;  %vm1269_vm15 = vcmp.eq.f32.partialorder %v1268_v50, 8.507059e+37 }
 0x55e   :  { %v1242_v54 = vmul.f32 %v1468_v41, %v1241_v5 }
 0x55f   :  { %v1470_v20 = vpop.eup %1469  ;;  %v1224_v8 = vadd.f32 %v1466_v38, %v1223_v61 }
 0x560   :  { %v1243_v4 = vadd.f32 %v1468_v41, %v1242_v54  ;;  %v1260_v0 = vmul.f32 %v1470_v20, %v1258_v2  ;;  %v1472_v11 = vpop.eup %1471  ;;  %vm1265_vm12 = vweird.f32 %v1470_v20 }
 0x561   :  { %v1228_v3 = vsel %vm1227_vm8, %v1466_v38, %v1224_v8  ;;  %vm1266_vm14 = vmor %vm1264_vm13, %vm1265_vm12 }
 0x562   :  { %v1233_v7 = vsel %vm1230_vm10, %v1232_v17, %v1228_v3  ;;  %v1247_v19 = vsel %vm1246_vm9, %v1468_v41, %v1243_v4  ;;  %v1261_v14 = vsub.f32 1.0, %v1260_v0 }
 0x563   :  { %v1252_v6 = vsel %vm1249_vm11, %v1251_v10, %v1247_v19  ;;  %v1275_v49 = vmul.f32 %v1472_v11, %v1233_v7 }
 0x564   :  { %v1274_v13 = vmul.f32 %v1252_v6, %v2833_v24  ;;  %v1262_v42 = vmul.f32 %v1470_v20, %v1261_v14 }
 0x566   :  { %v1276_v16 = vadd.f32 %v1275_v49, %v1274_v13  ;;  %v1263_v18 = vadd.f32 %v1470_v20, %v1262_v42 }
 0x568   :  { %1473 = vtanh.f32 %v1276_v16  ;;  %v1267_v21 = vsel %vm1266_vm14, %v1470_v20, %v1263_v18 }
 0x569   :  { %v1272_v25 = vsel %vm1269_vm15, %v1271_v22, %v1267_v21 }
 0x56e   :  { %v1474_v23 = vpop.eup %1473 }
 0x56f   :  { %v1278_v26 = vmul.f32 %v1474_v23, %v1272_v25 }
 0x571   :  { %1345 = vst [vmem:[%s2857_s2 + $0x38] sm:$0xff] %v1278_v26 }

</bundles_post_ra>
